<compile_context>
chip_gen: v7x
topology: tpu7x:2x2x1
jax: 0.10.0
libtpu: 0.0.40
codegen_flags: <defaults>
</compile_context>

<pallas_src>
import jax
import jax.numpy as jnp
from jax.experimental import pallas as pl
from jax.experimental.pallas import tpu as pltpu


def _round_up(x, m):
    return ((x + m - 1) // m) * m


# ---------------------------------------------------------------------------
# Pallas kernel: the serial recurrence only (h-side matmul + gate math).
# ---------------------------------------------------------------------------
def lstm_kernel(xproj_ref, wh_hbm_ref, h0_ref, c0_ref, out_ref,
                h_scr, c_scr, wh_scr, wh_sem):
    Hp = h_scr.shape[-1]
    t_tile = xproj_ref.shape[0]

    # First time-tile of this batch tile: (re)load carries and the resident
    # h-side weight (single VMEM copy, manually DMA'd from HBM).
    @pl.when(pl.program_id(1) == 0)
    def _():
        h_scr[...] = h0_ref[...].astype(jnp.float32)
        c_scr[...] = c0_ref[...].astype(jnp.float32)
        cp = pltpu.make_async_copy(wh_hbm_ref, wh_scr, wh_sem)
        cp.start()
        cp.wait()

    wh = wh_scr[...]                      # [Hp, 4Hp] bf16, read once per tile
    h = h_scr[...]                        # f32 carries
    c = c_scr[...]

    hs = []
    # Fully unrolled inner time loop (t_tile is a static Python int): lets the
    # LLO scheduler overlap step t's VPU/EUP gate math with step t+1's MXU push.
    for k in range(t_tile):
        # gates = x_t @ Wx + b (precomputed, bf16) + h @ Wh (bf16 MXU, f32 acc)
        gates = xproj_ref[k].astype(jnp.float32) + jnp.dot(
            h.astype(wh.dtype), wh, preferred_element_type=jnp.float32)
        # One sigmoid over the contiguous [i|o|f] block (lane-aligned slices,
        # keeps EUP transcendental work fused); tanh on the memory gate.
        sig = jax.nn.sigmoid(gates[:, :3 * Hp])
        gi = sig[:, 0 * Hp:1 * Hp]        # input gate
        go = sig[:, 1 * Hp:2 * Hp]        # output gate
        gf = sig[:, 2 * Hp:3 * Hp]        # forget gate
        gg = jnp.tanh(gates[:, 3 * Hp:4 * Hp])   # memory gate
        c = gf * c + gi * gg
        h = go * jnp.tanh(c)
        hs.append(h)

    h_scr[...] = h
    c_scr[...] = c
    # Single unmasked, lane-dense block store for the whole tile (replaces
    # t_tile masked (b_tile, 1, Hp) sublane stores).
    out_ref[...] = jnp.stack(hs, axis=1).astype(out_ref.dtype)


# ---------------------------------------------------------------------------
# Wrapper: hoisted input projection + pallas_call over (batch tiles, time tiles)
# ---------------------------------------------------------------------------
def lstm_forward(embedding, fused, init_h=None, init_c=None, *,
                 t_tile=None, b_tile=None):
    """embedding: [T, B, E]; returns [B, T, H] (== torch.stack(hidden, dim=1))."""
    T, B, E = embedding.shape
    H = fused["wh"].shape[0]
    dtype = embedding.dtype
    itemsize = jnp.dtype(dtype).itemsize

    if init_h is None:
        init_h = jnp.zeros((B, H), dtype)
    if init_c is None:
        init_c = jnp.zeros((B, H), dtype)

    # --- pad hidden width to a lane multiple of 128 --------------------------
    # Padded gate columns carry zero weights/bias, so padded h/c entries stay
    # exactly zero through the recurrence and never pollute the real outputs.
    Hp = max(128, _round_up(H, 128))
    wx = fused["wx"].astype(jnp.float32)          # [E, 4H]
    wh = fused["wh"].astype(jnp.float32)          # [H, 4H]
    bias = fused["b"].astype(jnp.float32).reshape(4, H)
    if Hp != H:
        wx = jnp.pad(wx.reshape(E, 4, H),
                     ((0, 0), (0, 0), (0, Hp - H))).reshape(E, 4 * Hp)
        wh = jnp.pad(wh.reshape(H, 4, H),
                     ((0, Hp - H), (0, 0), (0, Hp - H))).reshape(Hp, 4 * Hp)
        bias = jnp.pad(bias, ((0, 0), (0, Hp - H)))
    bias = bias.reshape(1, 4 * Hp)

    wx_bf = wx.astype(jnp.bfloat16)               # [E, 4Hp]
    wh_bf = wh.astype(jnp.bfloat16)               # [Hp, 4Hp]

    # Hoisted x-side projection for all four gates (one big bf16 matmul, f32
    # accumulation, biases folded in), then streamed to the kernel in bf16.
    xproj = (jnp.dot(embedding.astype(jnp.bfloat16), wx_bf,
                     preferred_element_type=jnp.float32)
             + bias).astype(jnp.bfloat16)          # [T, B, 4Hp] bf16

    # --- tile-size selection --------------------------------------------------
    if b_tile is None:
        B8 = _round_up(B, 8)
        if B8 >= 512:
            b_tile = 256                           # fill MXU M dim (v6e/v7x)
        elif B8 >= 16:
            b_tile = _round_up(max(B8 // 2, 8), 8)  # >=2 batch tiles (v7x, 2 TCs)
        else:
            b_tile = 8                             # architectural ceiling: small B
    if t_tile is None:
        t_tile = 32
        while t_tile > 8 and t_tile > T:
            t_tile //= 2

    def vmem_estimate(tt, bt):
        xproj_blk = tt * bt * 4 * Hp * 2           # bf16, double-buffered
        out_blk = bt * tt * Hp * itemsize          # double-buffered
        wh_blk = Hp * 4 * Hp * 2                   # single copy (scratch)
        carries = 2 * bt * Hp * 4                  # f32 h/c scratch
        inits = 2 * 2 * bt * Hp * itemsize         # h0/c0, double-buffered
        return 2 * xproj_blk + 2 * out_blk + wh_blk + carries + inits

    VMEM_BUDGET = 48 << 20                         # headroom under v7x 64 MiB
    while t_tile > 8 and vmem_estimate(t_tile, b_tile) > VMEM_BUDGET:
        t_tile //= 2
    while b_tile > 8 and vmem_estimate(t_tile, b_tile) > VMEM_BUDGET:
        b_tile = _round_up(b_tile // 2, 8)

    # --- pad time / batch to tile multiples ----------------------------------
    T_pad = _round_up(T, t_tile)
    B_pad = _round_up(B, b_tile)
    if T_pad != T or B_pad != B:
        xproj = jnp.pad(xproj, ((0, T_pad - T), (0, B_pad - B), (0, 0)))
    init_h_p = jnp.pad(init_h.astype(dtype), ((0, B_pad - B), (0, Hp - H)))
    init_c_p = jnp.pad(init_c.astype(dtype), ((0, B_pad - B), (0, Hp - H)))

    vmem_est = vmem_estimate(t_tile, b_tile)
    out = pl.pallas_call(
        lstm_kernel,
        out_shape=jax.ShapeDtypeStruct((B_pad, T_pad, Hp), dtype),
        grid_spec=pltpu.PrefetchScalarGridSpec(
            num_scalar_prefetch=0,
            # (batch tiles, time tiles). Time MUST stay the last, sequential axis
            # ("arbitrary") because the h/c carries live in VMEM scratch.
            grid=(B_pad // b_tile, T_pad // t_tile),
            in_specs=[
                # Pre-activations for this (batch, time) tile: [t_tile, b_tile, 4Hp]
                pl.BlockSpec((t_tile, b_tile, 4 * Hp), lambda bi, ti: (ti, bi, 0)),
                # Resident h-side weight: left in HBM, DMA'd once per batch tile
                # into a single-buffered VMEM scratch inside the kernel.
                pl.BlockSpec(memory_space=pl.ANY),
                # Initial hidden / cell state for this batch tile.
                pl.BlockSpec((b_tile, Hp), lambda bi, ti: (bi, 0)),
                pl.BlockSpec((b_tile, Hp), lambda bi, ti: (bi, 0)),
            ],
            # Output written directly in [B, T, H] order (lane-dense in Hp).
            out_specs=pl.BlockSpec((b_tile, t_tile, Hp), lambda bi, ti: (bi, ti, 0)),
            scratch_shapes=[
                pltpu.VMEM((b_tile, Hp), jnp.float32),      # h carry
                pltpu.VMEM((b_tile, Hp), jnp.float32),      # c carry
                pltpu.VMEM((Hp, 4 * Hp), jnp.bfloat16),     # resident wh (1 copy)
                pltpu.SemaphoreType.DMA,                    # wh DMA semaphore
            ],
        ),
        compiler_params=pltpu.CompilerParams(
            # batch tiles are independent (v7x megacore); time is sequential.
            dimension_semantics=("parallel", "arbitrary"),
            vmem_limit_bytes=int(min(max(vmem_est + (8 << 20), 32 << 20), 96 << 20)),
        ),
    )(xproj, wh_bf, init_h_p, init_c_p)

    return out[:B, :T, :H]


# ---------------------------------------------------------------------------
# Parameter construction (PyTorch nn.Linear layout) and fusion for the kernel.
# ---------------------------------------------------------------------------
def init_params(key, input_size, hidden_size):
    """Mimics nn.Linear(E+H, H) default init: U(-1/sqrt(E+H), 1/sqrt(E+H))."""
    E, H = input_size, hidden_size
    bound = 1.0 / float(E + H) ** 0.5
    keys = jax.random.split(key, 8)
    params = {}
    for idx, name in enumerate(("input", "output", "forget", "memory")):
        params[f"{name}_w"] = jax.random.uniform(
            keys[2 * idx], (H, E + H), jnp.float32, -bound, bound)
        params[f"{name}_b"] = jax.random.uniform(
            keys[2 * idx + 1], (H,), jnp.float32, -bound, bound)
    return params


def fuse_params(torch_params):
    """Split each Linear(cat([x, h])) weight into x-/h-side parts and fuse the
    four gates: wx [E, 4H], wh [H, 4H], b [1, 4H] (gate order i, o, f, g)."""
    H = torch_params["input_b"].shape[0]
    E = torch_params["input_w"].shape[1] - H
    names = ("input", "output", "forget", "memory")
    W = jnp.concatenate([torch_params[f"{n}_w"] for n in names], axis=0)  # [4H, E+H]
    b = jnp.concatenate([torch_params[f"{n}_b"] for n in names], axis=0)  # [4H]
    return {"wx": W[:, :E].T, "wh": W[:, E:].T, "b": b.reshape(1, 4 * H)}


# ---------------------------------------------------------------------------
# References.
# ---------------------------------------------------------------------------
def lstm_reference_kernel_numerics(embedding, fused, init_h, init_c):
    """Pure-JAX mirror of the kernel's exact numerics (bf16 xproj + bf16 MXU
    operands, f32 accumulation and f32 carries)."""
    T, B, E = embedding.shape
    H = fused["wh"].shape[0]
    wx = fused["wx"].astype(jnp.bfloat16)
    wh = fused["wh"].astype(jnp.bfloat16)
    b = fused["b"].astype(jnp.float32)
    xproj = (jnp.dot(embedding.astype(jnp.bfloat16), wx,
                     preferred_element_type=jnp.float32) + b).astype(jnp.bfloat16)
    h = init_h.astype(jnp.float32)
    c = init_c.astype(jnp.float32)
    outs = []
    for t in range(T):
        gates = xproj[t].astype(jnp.float32) + jnp.dot(
            h.astype(jnp.bfloat16), wh, preferred_element_type=jnp.float32)
        gi = jax.nn.sigmoid(gates[:, 0 * H:1 * H])
        go = jax.nn.sigmoid(gates[:, 1 * H:2 * H])
        gf = jax.nn.sigmoid(gates[:, 2 * H:3 * H])
        gg = jnp.tanh(gates[:, 3 * H:4 * H])
        c = gf * c + gi * gg
        h = go * jnp.tanh(c)
        outs.append(h)
    return jnp.stack(outs, axis=1).astype(embedding.dtype)   # [B, T, H]


def lstm_reference(embedding, torch_params, init_h=None, init_c=None):
    """Faithful f32 cat([x, h]) @ W.T + b reference mirroring the torch module."""
    T, B, E = embedding.shape
    H = torch_params["input_b"].shape[0]
    h = (jnp.zeros((B, H), jnp.float32) if init_h is None
         else init_h.astype(jnp.float32))
    c = (jnp.zeros((B, H), jnp.float32) if init_c is None
         else init_c.astype(jnp.float32))

    def linear(z, name):
        return jnp.dot(z, torch_params[f"{name}_w"].T,
                       preferred_element_type=jnp.float32) + torch_params[f"{name}_b"]

    outs = []
    for t in range(T):
        z = jnp.concatenate([embedding[t].astype(jnp.float32), h], axis=1)
        gi = jax.nn.sigmoid(linear(z, "input"))
        go = jax.nn.sigmoid(linear(z, "output"))
        gf = jax.nn.sigmoid(linear(z, "forget"))
        gg = jnp.tanh(linear(z, "memory"))
        c = gf * c + gi * gg
        h = go * jnp.tanh(c)
        outs.append(h)
    return jnp.stack(outs, axis=1).astype(embedding.dtype)   # [B, T, H]


if __name__ == "__main__":
    key = jax.random.PRNGKey(0)
    configs = [
        (16, 8, 64, 128),    # hardware-aligned: H multiple of 128
        (8, 2, 16, 32),      # tiny unaligned shape -> exercises H/B/T padding
        (12, 24, 32, 64),    # multiple batch tiles + time padding
    ]
    for (T, B, E, H) in configs:
        key, k_emb, k_h, k_c, k_p = jax.random.split(key, 5)
        emb = jax.random.normal(k_emb, (T, B, E), dtype=jnp.float32)
        h0 = jax.random.normal(k_h, (B, H), dtype=jnp.float32)
        c0 = jax.random.normal(k_c, (B, H), dtype=jnp.float32)
        torch_params = init_params(k_p, E, H)
        fused = fuse_params(torch_params)

        out = jax.block_until_ready(lstm_forward(emb, fused, h0, c0))
        assert out.shape == (B, T, H)

        # Tight check vs. a reference with identical bf16/MXU numerics.
        ref_km = lstm_reference_kernel_numerics(emb, fused, h0, c0)
        assert jnp.allclose(out, ref_km, atol=2e-3, rtol=2e-3), \
            f"mismatch vs kernel-numerics reference for config {(T, B, E, H)}"

        # Loose check vs. the exact f32 PyTorch-style math (difference = bf16
        # rounding of MXU operands and the streamed pre-activation only).
        ref_f32 = lstm_reference(emb, torch_params, h0, c0)
        assert jnp.allclose(out, ref_f32, atol=7e-2, rtol=7e-2), \
            f"mismatch vs f32 reference for config {(T, B, E, H)}"

    print("KERNEL_OK")
</pallas_src>

<mosaic_0001>
module attributes {stable_mosaic.version = 11 : i64} {
  func.func @lstm_kernel(%arg0: i32, %arg1: i32, %arg2: memref<16x8x512xbf16, #tpu.memory_space<vmem>>, %arg3: memref<128x512xbf16, #tpu.memory_space<any>>, %arg4: memref<8x128xf32, #tpu.memory_space<vmem>>, %arg5: memref<8x128xf32, #tpu.memory_space<vmem>>, %arg6: memref<8x16x128xf32, #tpu.memory_space<vmem>>, %arg7: memref<8x128xf32, #tpu.memory_space<vmem>>, %arg8: memref<8x128xf32, #tpu.memory_space<vmem>>, %arg9: memref<128x512xbf16, #tpu.memory_space<vmem>>, %arg10: memref<!tpu.dma_semaphore, #tpu.memory_space<semaphore_mem>>) attributes {dimension_semantics = [#tpu.dimension_semantics<parallel>, #tpu.dimension_semantics<arbitrary>], iteration_bounds = array<i64: 1, 1>, scalar_prefetch = 0 : i64, scratch_operands = 4 : i64, tpu.core_type = #tpu.core_type<tc>, window_params = [{transform_indices = @transform_0, window_bounds = array<i64: 16, 8, 512>}, {}, {transform_indices = @transform_2, window_bounds = array<i64: 8, 128>}, {transform_indices = @transform_3, window_bounds = array<i64: 8, 128>}, {transform_indices = @transform_4, window_bounds = array<i64: 8, 16, 128>}]} {
    %c0_i32 = arith.constant 0 : i32
    %0 = arith.cmpi eq, %arg1, %c0_i32 : i32
    %1 = arith.extui %0 : i1 to i32
    %c0_i32_0 = arith.constant 0 : i32
    %2 = arith.cmpi ne, %1, %c0_i32_0 : i32
    scf.if %2 {
      %c0_77 = arith.constant 0 : index
      %c0_78 = arith.constant 0 : index
      %378 = vector.load %arg4[%c0_77, %c0_78] : memref<8x128xf32, #tpu.memory_space<vmem>>, vector<8x128xf32>
      %c0_79 = arith.constant 0 : index
      %c0_80 = arith.constant 0 : index
      %379 = vector.load %arg7[%c0_79, %c0_80] : memref<8x128xf32, #tpu.memory_space<vmem>>, vector<8x128xf32>
      tpu.vector_store %arg7[%c0_79, %c0_80], %378 {strides = array<i32>} : memref<8x128xf32, #tpu.memory_space<vmem>>, vector<8x128xf32>,
      %c0_81 = arith.constant 0 : index
      %c0_82 = arith.constant 0 : index
      %380 = vector.load %arg5[%c0_81, %c0_82] : memref<8x128xf32, #tpu.memory_space<vmem>>, vector<8x128xf32>
      %c0_83 = arith.constant 0 : index
      %c0_84 = arith.constant 0 : index
      %381 = vector.load %arg8[%c0_83, %c0_84] : memref<8x128xf32, #tpu.memory_space<vmem>>, vector<8x128xf32>
      tpu.vector_store %arg8[%c0_83, %c0_84], %380 {strides = array<i32>} : memref<8x128xf32, #tpu.memory_space<vmem>>, vector<8x128xf32>,
      tpu.enqueue_dma source(%arg3 : memref<128x512xbf16, #tpu.memory_space<any>>) target(%arg9 : memref<128x512xbf16, #tpu.memory_space<vmem>>) target_semaphore(%arg10 : memref<!tpu.dma_semaphore, #tpu.memory_space<semaphore_mem>>)
      tpu.wait_dma2 semaphore(%arg10 : memref<!tpu.dma_semaphore, #tpu.memory_space<semaphore_mem>>) src(%arg3 : memref<128x512xbf16, #tpu.memory_space<any>>) dst(%arg9 : memref<128x512xbf16, #tpu.memory_space<vmem>>)
    } else {
    }
    %c0 = arith.constant 0 : index
    %c0_1 = arith.constant 0 : index
    %3 = vector.load %arg9[%c0, %c0_1] : memref<128x512xbf16, #tpu.memory_space<vmem>>, vector<128x512xbf16>
    %c0_2 = arith.constant 0 : index
    %c0_3 = arith.constant 0 : index
    %4 = vector.load %arg7[%c0_2, %c0_3] : memref<8x128xf32, #tpu.memory_space<vmem>>, vector<8x128xf32>
    %c0_4 = arith.constant 0 : index
    %c0_5 = arith.constant 0 : index
    %5 = vector.load %arg8[%c0_4, %c0_5] : memref<8x128xf32, #tpu.memory_space<vmem>>, vector<8x128xf32>
    %c0_6 = arith.constant 0 : index
    %c0_7 = arith.constant 0 : index
    %c0_8 = arith.constant 0 : index
    %6 = vector.load %arg2[%c0_6, %c0_7, %c0_8] : memref<16x8x512xbf16, #tpu.memory_space<vmem>>, vector<1x8x512xbf16>
    %7 = vector.shape_cast %6 : vector<1x8x512xbf16> to vector<8x512xbf16>
    %8 = arith.extf %7 : vector<8x512xbf16> to vector<8x512xf32>
    %9 = arith.truncf %4 : vector<8x128xf32> to vector<8x128xbf16>
    %cst = arith.constant dense<0.000000e+00> : vector<8x512xf32>
    %10 = tpu.matmul %9, %3, %cst {dimension_numbers = #tpu.dot_dimension_numbers<[1], [0], [0], [1], [0, 0, 1, 1], [], []>} : vector<8x128xbf16>, vector<128x512xbf16>, vector<8x512xf32> -> vector<8x512xf32>
    %11 = arith.addf %8, %10 : vector<8x512xf32>
    %12 = vector.extract_strided_slice %11 {offsets = [0, 0], sizes = [8, 384], strides = [1, 1]} : vector<8x512xf32> to vector<8x384xf32>
    %13 = arith.negf %12 : vector<8x384xf32>
    %14 = math.exp %13 : vector<8x384xf32>
    %cst_9 = arith.constant 1.000000e+00 : f32
    %15 = vector.broadcast %cst_9 : f32 to vector<8x384xf32>
    %16 = arith.addf %15, %14 : vector<8x384xf32>
    %17 = arith.divf %15, %16 : vector<8x384xf32>
    %18 = vector.extract_strided_slice %17 {offsets = [0, 0], sizes = [8, 128], strides = [1, 1]} : vector<8x384xf32> to vector<8x128xf32>
    %19 = vector.extract_strided_slice %17 {offsets = [0, 128], sizes = [8, 128], strides = [1, 1]} : vector<8x384xf32> to vector<8x128xf32>
    %20 = vector.extract_strided_slice %17 {offsets = [0, 256], sizes = [8, 128], strides = [1, 1]} : vector<8x384xf32> to vector<8x128xf32>
    %21 = vector.extract_strided_slice %11 {offsets = [0, 384], sizes = [8, 128], strides = [1, 1]} : vector<8x512xf32> to vector<8x128xf32>
    %22 = math.tanh %21 : vector<8x128xf32>
    %23 = arith.mulf %20, %5 : vector<8x128xf32>
    %24 = arith.mulf %18, %22 : vector<8x128xf32>
    %25 = arith.addf %23, %24 : vector<8x128xf32>
    %26 = math.tanh %25 : vector<8x128xf32>
    %27 = arith.mulf %19, %26 : vector<8x128xf32>
    %c1 = arith.constant 1 : index
    %c0_10 = arith.constant 0 : index
    %c0_11 = arith.constant 0 : index
    %28 = vector.load %arg2[%c1, %c0_10, %c0_11] : memref<16x8x512xbf16, #tpu.memory_space<vmem>>, vector<1x8x512xbf16>
    %29 = vector.shape_cast %28 : vector<1x8x512xbf16> to vector<8x512xbf16>
    %30 = arith.extf %29 : vector<8x512xbf16> to vector<8x512xf32>
    %31 = arith.truncf %27 : vector<8x128xf32> to vector<8x128xbf16>
    %cst_12 = arith.constant dense<0.000000e+00> : vector<8x512xf32>
    %32 = tpu.matmul %31, %3, %cst_12 {dimension_numbers = #tpu.dot_dimension_numbers<[1], [0], [0], [1], [0, 0, 1, 1], [], []>} : vector<8x128xbf16>, vector<128x512xbf16>, vector<8x512xf32> -> vector<8x512xf32>
    %33 = arith.addf %30, %32 : vector<8x512xf32>
    %34 = vector.extract_strided_slice %33 {offsets = [0, 0], sizes = [8, 384], strides = [1, 1]} : vector<8x512xf32> to vector<8x384xf32>
    %35 = arith.negf %34 : vector<8x384xf32>
    %36 = math.exp %35 : vector<8x384xf32>
    %cst_13 = arith.constant 1.000000e+00 : f32
    %37 = vector.broadcast %cst_13 : f32 to vector<8x384xf32>
    %38 = arith.addf %37, %36 : vector<8x384xf32>
    %39 = arith.divf %37, %38 : vector<8x384xf32>
    %40 = vector.extract_strided_slice %39 {offsets = [0, 0], sizes = [8, 128], strides = [1, 1]} : vector<8x384xf32> to vector<8x128xf32>
    %41 = vector.extract_strided_slice %39 {offsets = [0, 128], sizes = [8, 128], strides = [1, 1]} : vector<8x384xf32> to vector<8x128xf32>
    %42 = vector.extract_strided_slice %39 {offsets = [0, 256], sizes = [8, 128], strides = [1, 1]} : vector<8x384xf32> to vector<8x128xf32>
    %43 = vector.extract_strided_slice %33 {offsets = [0, 384], sizes = [8, 128], strides = [1, 1]} : vector<8x512xf32> to vector<8x128xf32>
    %44 = math.tanh %43 : vector<8x128xf32>
    %45 = arith.mulf %42, %25 : vector<8x128xf32>
    %46 = arith.mulf %40, %44 : vector<8x128xf32>
    %47 = arith.addf %45, %46 : vector<8x128xf32>
    %48 = math.tanh %47 : vector<8x128xf32>
    %49 = arith.mulf %41, %48 : vector<8x128xf32>
    %c2 = arith.constant 2 : index
    %c0_14 = arith.constant 0 : index
    %c0_15 = arith.constant 0 : index
    %50 = vector.load %arg2[%c2, %c0_14, %c0_15] : memref<16x8x512xbf16, #tpu.memory_space<vmem>>, vector<1x8x512xbf16>
    %51 = vector.shape_cast %50 : vector<1x8x512xbf16> to vector<8x512xbf16>
    %52 = arith.extf %51 : vector<8x512xbf16> to vector<8x512xf32>
    %53 = arith.truncf %49 : vector<8x128xf32> to vector<8x128xbf16>
    %cst_16 = arith.constant dense<0.000000e+00> : vector<8x512xf32>
    %54 = tpu.matmul %53, %3, %cst_16 {dimension_numbers = #tpu.dot_dimension_numbers<[1], [0], [0], [1], [0, 0, 1, 1], [], []>} : vector<8x128xbf16>, vector<128x512xbf16>, vector<8x512xf32> -> vector<8x512xf32>
    %55 = arith.addf %52, %54 : vector<8x512xf32>
    %56 = vector.extract_strided_slice %55 {offsets = [0, 0], sizes = [8, 384], strides = [1, 1]} : vector<8x512xf32> to vector<8x384xf32>
    %57 = arith.negf %56 : vector<8x384xf32>
    %58 = math.exp %57 : vector<8x384xf32>
    %cst_17 = arith.constant 1.000000e+00 : f32
    %59 = vector.broadcast %cst_17 : f32 to vector<8x384xf32>
    %60 = arith.addf %59, %58 : vector<8x384xf32>
    %61 = arith.divf %59, %60 : vector<8x384xf32>
    %62 = vector.extract_strided_slice %61 {offsets = [0, 0], sizes = [8, 128], strides = [1, 1]} : vector<8x384xf32> to vector<8x128xf32>
    %63 = vector.extract_strided_slice %61 {offsets = [0, 128], sizes = [8, 128], strides = [1, 1]} : vector<8x384xf32> to vector<8x128xf32>
    %64 = vector.extract_strided_slice %61 {offsets = [0, 256], sizes = [8, 128], strides = [1, 1]} : vector<8x384xf32> to vector<8x128xf32>
    %65 = vector.extract_strided_slice %55 {offsets = [0, 384], sizes = [8, 128], strides = [1, 1]} : vector<8x512xf32> to vector<8x128xf32>
    %66 = math.tanh %65 : vector<8x128xf32>
    %67 = arith.mulf %64, %47 : vector<8x128xf32>
    %68 = arith.mulf %62, %66 : vector<8x128xf32>
    %69 = arith.addf %67, %68 : vector<8x128xf32>
    %70 = math.tanh %69 : vector<8x128xf32>
    %71 = arith.mulf %63, %70 : vector<8x128xf32>
    %c3 = arith.constant 3 : index
    %c0_18 = arith.constant 0 : index
    %c0_19 = arith.constant 0 : index
    %72 = vector.load %arg2[%c3, %c0_18, %c0_19] : memref<16x8x512xbf16, #tpu.memory_space<vmem>>, vector<1x8x512xbf16>
    %73 = vector.shape_cast %72 : vector<1x8x512xbf16> to vector<8x512xbf16>
    %74 = arith.extf %73 : vector<8x512xbf16> to vector<8x512xf32>
    %75 = arith.truncf %71 : vector<8x128xf32> to vector<8x128xbf16>
    %cst_20 = arith.constant dense<0.000000e+00> : vector<8x512xf32>
    %76 = tpu.matmul %75, %3, %cst_20 {dimension_numbers = #tpu.dot_dimension_numbers<[1], [0], [0], [1], [0, 0, 1, 1], [], []>} : vector<8x128xbf16>, vector<128x512xbf16>, vector<8x512xf32> -> vector<8x512xf32>
    %77 = arith.addf %74, %76 : vector<8x512xf32>
    %78 = vector.extract_strided_slice %77 {offsets = [0, 0], sizes = [8, 384], strides = [1, 1]} : vector<8x512xf32> to vector<8x384xf32>
    %79 = arith.negf %78 : vector<8x384xf32>
    %80 = math.exp %79 : vector<8x384xf32>
    %cst_21 = arith.constant 1.000000e+00 : f32
    %81 = vector.broadcast %cst_21 : f32 to vector<8x384xf32>
    %82 = arith.addf %81, %80 : vector<8x384xf32>
    %83 = arith.divf %81, %82 : vector<8x384xf32>
    %84 = vector.extract_strided_slice %83 {offsets = [0, 0], sizes = [8, 128], strides = [1, 1]} : vector<8x384xf32> to vector<8x128xf32>
    %85 = vector.extract_strided_slice %83 {offsets = [0, 128], sizes = [8, 128], strides = [1, 1]} : vector<8x384xf32> to vector<8x128xf32>
    %86 = vector.extract_strided_slice %83 {offsets = [0, 256], sizes = [8, 128], strides = [1, 1]} : vector<8x384xf32> to vector<8x128xf32>
    %87 = vector.extract_strided_slice %77 {offsets = [0, 384], sizes = [8, 128], strides = [1, 1]} : vector<8x512xf32> to vector<8x128xf32>
    %88 = math.tanh %87 : vector<8x128xf32>
    %89 = arith.mulf %86, %69 : vector<8x128xf32>
    %90 = arith.mulf %84, %88 : vector<8x128xf32>
    %91 = arith.addf %89, %90 : vector<8x128xf32>
    %92 = math.tanh %91 : vector<8x128xf32>
    %93 = arith.mulf %85, %92 : vector<8x128xf32>
    %c4 = arith.constant 4 : index
    %c0_22 = arith.constant 0 : index
    %c0_23 = arith.constant 0 : index
    %94 = vector.load %arg2[%c4, %c0_22, %c0_23] : memref<16x8x512xbf16, #tpu.memory_space<vmem>>, vector<1x8x512xbf16>
    %95 = vector.shape_cast %94 : vector<1x8x512xbf16> to vector<8x512xbf16>
    %96 = arith.extf %95 : vector<8x512xbf16> to vector<8x512xf32>
    %97 = arith.truncf %93 : vector<8x128xf32> to vector<8x128xbf16>
    %cst_24 = arith.constant dense<0.000000e+00> : vector<8x512xf32>
    %98 = tpu.matmul %97, %3, %cst_24 {dimension_numbers = #tpu.dot_dimension_numbers<[1], [0], [0], [1], [0, 0, 1, 1], [], []>} : vector<8x128xbf16>, vector<128x512xbf16>, vector<8x512xf32> -> vector<8x512xf32>
    %99 = arith.addf %96, %98 : vector<8x512xf32>
    %100 = vector.extract_strided_slice %99 {offsets = [0, 0], sizes = [8, 384], strides = [1, 1]} : vector<8x512xf32> to vector<8x384xf32>
    %101 = arith.negf %100 : vector<8x384xf32>
    %102 = math.exp %101 : vector<8x384xf32>
    %cst_25 = arith.constant 1.000000e+00 : f32
    %103 = vector.broadcast %cst_25 : f32 to vector<8x384xf32>
    %104 = arith.addf %103, %102 : vector<8x384xf32>
    %105 = arith.divf %103, %104 : vector<8x384xf32>
    %106 = vector.extract_strided_slice %105 {offsets = [0, 0], sizes = [8, 128], strides = [1, 1]} : vector<8x384xf32> to vector<8x128xf32>
    %107 = vector.extract_strided_slice %105 {offsets = [0, 128], sizes = [8, 128], strides = [1, 1]} : vector<8x384xf32> to vector<8x128xf32>
    %108 = vector.extract_strided_slice %105 {offsets = [0, 256], sizes = [8, 128], strides = [1, 1]} : vector<8x384xf32> to vector<8x128xf32>
    %109 = vector.extract_strided_slice %99 {offsets = [0, 384], sizes = [8, 128], strides = [1, 1]} : vector<8x512xf32> to vector<8x128xf32>
    %110 = math.tanh %109 : vector<8x128xf32>
    %111 = arith.mulf %108, %91 : vector<8x128xf32>
    %112 = arith.mulf %106, %110 : vector<8x128xf32>
    %113 = arith.addf %111, %112 : vector<8x128xf32>
    %114 = math.tanh %113 : vector<8x128xf32>
    %115 = arith.mulf %107, %114 : vector<8x128xf32>
    %c5 = arith.constant 5 : index
    %c0_26 = arith.constant 0 : index
    %c0_27 = arith.constant 0 : index
    %116 = vector.load %arg2[%c5, %c0_26, %c0_27] : memref<16x8x512xbf16, #tpu.memory_space<vmem>>, vector<1x8x512xbf16>
    %117 = vector.shape_cast %116 : vector<1x8x512xbf16> to vector<8x512xbf16>
    %118 = arith.extf %117 : vector<8x512xbf16> to vector<8x512xf32>
    %119 = arith.truncf %115 : vector<8x128xf32> to vector<8x128xbf16>
    %cst_28 = arith.constant dense<0.000000e+00> : vector<8x512xf32>
    %120 = tpu.matmul %119, %3, %cst_28 {dimension_numbers = #tpu.dot_dimension_numbers<[1], [0], [0], [1], [0, 0, 1, 1], [], []>} : vector<8x128xbf16>, vector<128x512xbf16>, vector<8x512xf32> -> vector<8x512xf32>
    %121 = arith.addf %118, %120 : vector<8x512xf32>
    %122 = vector.extract_strided_slice %121 {offsets = [0, 0], sizes = [8, 384], strides = [1, 1]} : vector<8x512xf32> to vector<8x384xf32>
    %123 = arith.negf %122 : vector<8x384xf32>
    %124 = math.exp %123 : vector<8x384xf32>
    %cst_29 = arith.constant 1.000000e+00 : f32
    %125 = vector.broadcast %cst_29 : f32 to vector<8x384xf32>
    %126 = arith.addf %125, %124 : vector<8x384xf32>
    %127 = arith.divf %125, %126 : vector<8x384xf32>
    %128 = vector.extract_strided_slice %127 {offsets = [0, 0], sizes = [8, 128], strides = [1, 1]} : vector<8x384xf32> to vector<8x128xf32>
    %129 = vector.extract_strided_slice %127 {offsets = [0, 128], sizes = [8, 128], strides = [1, 1]} : vector<8x384xf32> to vector<8x128xf32>
    %130 = vector.extract_strided_slice %127 {offsets = [0, 256], sizes = [8, 128], strides = [1, 1]} : vector<8x384xf32> to vector<8x128xf32>
    %131 = vector.extract_strided_slice %121 {offsets = [0, 384], sizes = [8, 128], strides = [1, 1]} : vector<8x512xf32> to vector<8x128xf32>
    %132 = math.tanh %131 : vector<8x128xf32>
    %133 = arith.mulf %130, %113 : vector<8x128xf32>
    %134 = arith.mulf %128, %132 : vector<8x128xf32>
    %135 = arith.addf %133, %134 : vector<8x128xf32>
    %136 = math.tanh %135 : vector<8x128xf32>
    %137 = arith.mulf %129, %136 : vector<8x128xf32>
    %c6 = arith.constant 6 : index
    %c0_30 = arith.constant 0 : index
    %c0_31 = arith.constant 0 : index
    %138 = vector.load %arg2[%c6, %c0_30, %c0_31] : memref<16x8x512xbf16, #tpu.memory_space<vmem>>, vector<1x8x512xbf16>
    %139 = vector.shape_cast %138 : vector<1x8x512xbf16> to vector<8x512xbf16>
    %140 = arith.extf %139 : vector<8x512xbf16> to vector<8x512xf32>
    %141 = arith.truncf %137 : vector<8x128xf32> to vector<8x128xbf16>
    %cst_32 = arith.constant dense<0.000000e+00> : vector<8x512xf32>
    %142 = tpu.matmul %141, %3, %cst_32 {dimension_numbers = #tpu.dot_dimension_numbers<[1], [0], [0], [1], [0, 0, 1, 1], [], []>} : vector<8x128xbf16>, vector<128x512xbf16>, vector<8x512xf32> -> vector<8x512xf32>
    %143 = arith.addf %140, %142 : vector<8x512xf32>
    %144 = vector.extract_strided_slice %143 {offsets = [0, 0], sizes = [8, 384], strides = [1, 1]} : vector<8x512xf32> to vector<8x384xf32>
    %145 = arith.negf %144 : vector<8x384xf32>
    %146 = math.exp %145 : vector<8x384xf32>
    %cst_33 = arith.constant 1.000000e+00 : f32
    %147 = vector.broadcast %cst_33 : f32 to vector<8x384xf32>
    %148 = arith.addf %147, %146 : vector<8x384xf32>
    %149 = arith.divf %147, %148 : vector<8x384xf32>
    %150 = vector.extract_strided_slice %149 {offsets = [0, 0], sizes = [8, 128], strides = [1, 1]} : vector<8x384xf32> to vector<8x128xf32>
    %151 = vector.extract_strided_slice %149 {offsets = [0, 128], sizes = [8, 128], strides = [1, 1]} : vector<8x384xf32> to vector<8x128xf32>
    %152 = vector.extract_strided_slice %149 {offsets = [0, 256], sizes = [8, 128], strides = [1, 1]} : vector<8x384xf32> to vector<8x128xf32>
    %153 = vector.extract_strided_slice %143 {offsets = [0, 384], sizes = [8, 128], strides = [1, 1]} : vector<8x512xf32> to vector<8x128xf32>
    %154 = math.tanh %153 : vector<8x128xf32>
    %155 = arith.mulf %152, %135 : vector<8x128xf32>
    %156 = arith.mulf %150, %154 : vector<8x128xf32>
    %157 = arith.addf %155, %156 : vector<8x128xf32>
    %158 = math.tanh %157 : vector<8x128xf32>
    %159 = arith.mulf %151, %158 : vector<8x128xf32>
    %c7 = arith.constant 7 : index
    %c0_34 = arith.constant 0 : index
    %c0_35 = arith.constant 0 : index
    %160 = vector.load %arg2[%c7, %c0_34, %c0_35] : memref<16x8x512xbf16, #tpu.memory_space<vmem>>, vector<1x8x512xbf16>
    %161 = vector.shape_cast %160 : vector<1x8x512xbf16> to vector<8x512xbf16>
    %162 = arith.extf %161 : vector<8x512xbf16> to vector<8x512xf32>
    %163 = arith.truncf %159 : vector<8x128xf32> to vector<8x128xbf16>
    %cst_36 = arith.constant dense<0.000000e+00> : vector<8x512xf32>
    %164 = tpu.matmul %163, %3, %cst_36 {dimension_numbers = #tpu.dot_dimension_numbers<[1], [0], [0], [1], [0, 0, 1, 1], [], []>} : vector<8x128xbf16>, vector<128x512xbf16>, vector<8x512xf32> -> vector<8x512xf32>
    %165 = arith.addf %162, %164 : vector<8x512xf32>
    %166 = vector.extract_strided_slice %165 {offsets = [0, 0], sizes = [8, 384], strides = [1, 1]} : vector<8x512xf32> to vector<8x384xf32>
    %167 = arith.negf %166 : vector<8x384xf32>
    %168 = math.exp %167 : vector<8x384xf32>
    %cst_37 = arith.constant 1.000000e+00 : f32
    %169 = vector.broadcast %cst_37 : f32 to vector<8x384xf32>
    %170 = arith.addf %169, %168 : vector<8x384xf32>
    %171 = arith.divf %169, %170 : vector<8x384xf32>
    %172 = vector.extract_strided_slice %171 {offsets = [0, 0], sizes = [8, 128], strides = [1, 1]} : vector<8x384xf32> to vector<8x128xf32>
    %173 = vector.extract_strided_slice %171 {offsets = [0, 128], sizes = [8, 128], strides = [1, 1]} : vector<8x384xf32> to vector<8x128xf32>
    %174 = vector.extract_strided_slice %171 {offsets = [0, 256], sizes = [8, 128], strides = [1, 1]} : vector<8x384xf32> to vector<8x128xf32>
    %175 = vector.extract_strided_slice %165 {offsets = [0, 384], sizes = [8, 128], strides = [1, 1]} : vector<8x512xf32> to vector<8x128xf32>
    %176 = math.tanh %175 : vector<8x128xf32>
    %177 = arith.mulf %174, %157 : vector<8x128xf32>
    %178 = arith.mulf %172, %176 : vector<8x128xf32>
    %179 = arith.addf %177, %178 : vector<8x128xf32>
    %180 = math.tanh %179 : vector<8x128xf32>
    %181 = arith.mulf %173, %180 : vector<8x128xf32>
    %c8 = arith.constant 8 : index
    %c0_38 = arith.constant 0 : index
    %c0_39 = arith.constant 0 : index
    %182 = vector.load %arg2[%c8, %c0_38, %c0_39] : memref<16x8x512xbf16, #tpu.memory_space<vmem>>, vector<1x8x512xbf16>
    %183 = vector.shape_cast %182 : vector<1x8x512xbf16> to vector<8x512xbf16>
    %184 = arith.extf %183 : vector<8x512xbf16> to vector<8x512xf32>
    %185 = arith.truncf %181 : vector<8x128xf32> to vector<8x128xbf16>
    %cst_40 = arith.constant dense<0.000000e+00> : vector<8x512xf32>
    %186 = tpu.matmul %185, %3, %cst_40 {dimension_numbers = #tpu.dot_dimension_numbers<[1], [0], [0], [1], [0, 0, 1, 1], [], []>} : vector<8x128xbf16>, vector<128x512xbf16>, vector<8x512xf32> -> vector<8x512xf32>
    %187 = arith.addf %184, %186 : vector<8x512xf32>
    %188 = vector.extract_strided_slice %187 {offsets = [0, 0], sizes = [8, 384], strides = [1, 1]} : vector<8x512xf32> to vector<8x384xf32>
    %189 = arith.negf %188 : vector<8x384xf32>
    %190 = math.exp %189 : vector<8x384xf32>
    %cst_41 = arith.constant 1.000000e+00 : f32
    %191 = vector.broadcast %cst_41 : f32 to vector<8x384xf32>
    %192 = arith.addf %191, %190 : vector<8x384xf32>
    %193 = arith.divf %191, %192 : vector<8x384xf32>
    %194 = vector.extract_strided_slice %193 {offsets = [0, 0], sizes = [8, 128], strides = [1, 1]} : vector<8x384xf32> to vector<8x128xf32>
    %195 = vector.extract_strided_slice %193 {offsets = [0, 128], sizes = [8, 128], strides = [1, 1]} : vector<8x384xf32> to vector<8x128xf32>
    %196 = vector.extract_strided_slice %193 {offsets = [0, 256], sizes = [8, 128], strides = [1, 1]} : vector<8x384xf32> to vector<8x128xf32>
    %197 = vector.extract_strided_slice %187 {offsets = [0, 384], sizes = [8, 128], strides = [1, 1]} : vector<8x512xf32> to vector<8x128xf32>
    %198 = math.tanh %197 : vector<8x128xf32>
    %199 = arith.mulf %196, %179 : vector<8x128xf32>
    %200 = arith.mulf %194, %198 : vector<8x128xf32>
    %201 = arith.addf %199, %200 : vector<8x128xf32>
    %202 = math.tanh %201 : vector<8x128xf32>
    %203 = arith.mulf %195, %202 : vector<8x128xf32>
    %c9 = arith.constant 9 : index
    %c0_42 = arith.constant 0 : index
    %c0_43 = arith.constant 0 : index
    %204 = vector.load %arg2[%c9, %c0_42, %c0_43] : memref<16x8x512xbf16, #tpu.memory_space<vmem>>, vector<1x8x512xbf16>
    %205 = vector.shape_cast %204 : vector<1x8x512xbf16> to vector<8x512xbf16>
    %206 = arith.extf %205 : vector<8x512xbf16> to vector<8x512xf32>
    %207 = arith.truncf %203 : vector<8x128xf32> to vector<8x128xbf16>
    %cst_44 = arith.constant dense<0.000000e+00> : vector<8x512xf32>
    %208 = tpu.matmul %207, %3, %cst_44 {dimension_numbers = #tpu.dot_dimension_numbers<[1], [0], [0], [1], [0, 0, 1, 1], [], []>} : vector<8x128xbf16>, vector<128x512xbf16>, vector<8x512xf32> -> vector<8x512xf32>
    %209 = arith.addf %206, %208 : vector<8x512xf32>
    %210 = vector.extract_strided_slice %209 {offsets = [0, 0], sizes = [8, 384], strides = [1, 1]} : vector<8x512xf32> to vector<8x384xf32>
    %211 = arith.negf %210 : vector<8x384xf32>
    %212 = math.exp %211 : vector<8x384xf32>
    %cst_45 = arith.constant 1.000000e+00 : f32
    %213 = vector.broadcast %cst_45 : f32 to vector<8x384xf32>
    %214 = arith.addf %213, %212 : vector<8x384xf32>
    %215 = arith.divf %213, %214 : vector<8x384xf32>
    %216 = vector.extract_strided_slice %215 {offsets = [0, 0], sizes = [8, 128], strides = [1, 1]} : vector<8x384xf32> to vector<8x128xf32>
    %217 = vector.extract_strided_slice %215 {offsets = [0, 128], sizes = [8, 128], strides = [1, 1]} : vector<8x384xf32> to vector<8x128xf32>
    %218 = vector.extract_strided_slice %215 {offsets = [0, 256], sizes = [8, 128], strides = [1, 1]} : vector<8x384xf32> to vector<8x128xf32>
    %219 = vector.extract_strided_slice %209 {offsets = [0, 384], sizes = [8, 128], strides = [1, 1]} : vector<8x512xf32> to vector<8x128xf32>
    %220 = math.tanh %219 : vector<8x128xf32>
    %221 = arith.mulf %218, %201 : vector<8x128xf32>
    %222 = arith.mulf %216, %220 : vector<8x128xf32>
    %223 = arith.addf %221, %222 : vector<8x128xf32>
    %224 = math.tanh %223 : vector<8x128xf32>
    %225 = arith.mulf %217, %224 : vector<8x128xf32>
    %c10 = arith.constant 10 : index
    %c0_46 = arith.constant 0 : index
    %c0_47 = arith.constant 0 : index
    %226 = vector.load %arg2[%c10, %c0_46, %c0_47] : memref<16x8x512xbf16, #tpu.memory_space<vmem>>, vector<1x8x512xbf16>
    %227 = vector.shape_cast %226 : vector<1x8x512xbf16> to vector<8x512xbf16>
    %228 = arith.extf %227 : vector<8x512xbf16> to vector<8x512xf32>
    %229 = arith.truncf %225 : vector<8x128xf32> to vector<8x128xbf16>
    %cst_48 = arith.constant dense<0.000000e+00> : vector<8x512xf32>
    %230 = tpu.matmul %229, %3, %cst_48 {dimension_numbers = #tpu.dot_dimension_numbers<[1], [0], [0], [1], [0, 0, 1, 1], [], []>} : vector<8x128xbf16>, vector<128x512xbf16>, vector<8x512xf32> -> vector<8x512xf32>
    %231 = arith.addf %228, %230 : vector<8x512xf32>
    %232 = vector.extract_strided_slice %231 {offsets = [0, 0], sizes = [8, 384], strides = [1, 1]} : vector<8x512xf32> to vector<8x384xf32>
    %233 = arith.negf %232 : vector<8x384xf32>
    %234 = math.exp %233 : vector<8x384xf32>
    %cst_49 = arith.constant 1.000000e+00 : f32
    %235 = vector.broadcast %cst_49 : f32 to vector<8x384xf32>
    %236 = arith.addf %235, %234 : vector<8x384xf32>
    %237 = arith.divf %235, %236 : vector<8x384xf32>
    %238 = vector.extract_strided_slice %237 {offsets = [0, 0], sizes = [8, 128], strides = [1, 1]} : vector<8x384xf32> to vector<8x128xf32>
    %239 = vector.extract_strided_slice %237 {offsets = [0, 128], sizes = [8, 128], strides = [1, 1]} : vector<8x384xf32> to vector<8x128xf32>
    %240 = vector.extract_strided_slice %237 {offsets = [0, 256], sizes = [8, 128], strides = [1, 1]} : vector<8x384xf32> to vector<8x128xf32>
    %241 = vector.extract_strided_slice %231 {offsets = [0, 384], sizes = [8, 128], strides = [1, 1]} : vector<8x512xf32> to vector<8x128xf32>
    %242 = math.tanh %241 : vector<8x128xf32>
    %243 = arith.mulf %240, %223 : vector<8x128xf32>
    %244 = arith.mulf %238, %242 : vector<8x128xf32>
    %245 = arith.addf %243, %244 : vector<8x128xf32>
    %246 = math.tanh %245 : vector<8x128xf32>
    %247 = arith.mulf %239, %246 : vector<8x128xf32>
    %c11 = arith.constant 11 : index
    %c0_50 = arith.constant 0 : index
    %c0_51 = arith.constant 0 : index
    %248 = vector.load %arg2[%c11, %c0_50, %c0_51] : memref<16x8x512xbf16, #tpu.memory_space<vmem>>, vector<1x8x512xbf16>
    %249 = vector.shape_cast %248 : vector<1x8x512xbf16> to vector<8x512xbf16>
    %250 = arith.extf %249 : vector<8x512xbf16> to vector<8x512xf32>
    %251 = arith.truncf %247 : vector<8x128xf32> to vector<8x128xbf16>
    %cst_52 = arith.constant dense<0.000000e+00> : vector<8x512xf32>
    %252 = tpu.matmul %251, %3, %cst_52 {dimension_numbers = #tpu.dot_dimension_numbers<[1], [0], [0], [1], [0, 0, 1, 1], [], []>} : vector<8x128xbf16>, vector<128x512xbf16>, vector<8x512xf32> -> vector<8x512xf32>
    %253 = arith.addf %250, %252 : vector<8x512xf32>
    %254 = vector.extract_strided_slice %253 {offsets = [0, 0], sizes = [8, 384], strides = [1, 1]} : vector<8x512xf32> to vector<8x384xf32>
    %255 = arith.negf %254 : vector<8x384xf32>
    %256 = math.exp %255 : vector<8x384xf32>
    %cst_53 = arith.constant 1.000000e+00 : f32
    %257 = vector.broadcast %cst_53 : f32 to vector<8x384xf32>
    %258 = arith.addf %257, %256 : vector<8x384xf32>
    %259 = arith.divf %257, %258 : vector<8x384xf32>
    %260 = vector.extract_strided_slice %259 {offsets = [0, 0], sizes = [8, 128], strides = [1, 1]} : vector<8x384xf32> to vector<8x128xf32>
    %261 = vector.extract_strided_slice %259 {offsets = [0, 128], sizes = [8, 128], strides = [1, 1]} : vector<8x384xf32> to vector<8x128xf32>
    %262 = vector.extract_strided_slice %259 {offsets = [0, 256], sizes = [8, 128], strides = [1, 1]} : vector<8x384xf32> to vector<8x128xf32>
    %263 = vector.extract_strided_slice %253 {offsets = [0, 384], sizes = [8, 128], strides = [1, 1]} : vector<8x512xf32> to vector<8x128xf32>
    %264 = math.tanh %263 : vector<8x128xf32>
    %265 = arith.mulf %262, %245 : vector<8x128xf32>
    %266 = arith.mulf %260, %264 : vector<8x128xf32>
    %267 = arith.addf %265, %266 : vector<8x128xf32>
    %268 = math.tanh %267 : vector<8x128xf32>
    %269 = arith.mulf %261, %268 : vector<8x128xf32>
    %c12 = arith.constant 12 : index
    %c0_54 = arith.constant 0 : index
    %c0_55 = arith.constant 0 : index
    %270 = vector.load %arg2[%c12, %c0_54, %c0_55] : memref<16x8x512xbf16, #tpu.memory_space<vmem>>, vector<1x8x512xbf16>
    %271 = vector.shape_cast %270 : vector<1x8x512xbf16> to vector<8x512xbf16>
    %272 = arith.extf %271 : vector<8x512xbf16> to vector<8x512xf32>
    %273 = arith.truncf %269 : vector<8x128xf32> to vector<8x128xbf16>
    %cst_56 = arith.constant dense<0.000000e+00> : vector<8x512xf32>
    %274 = tpu.matmul %273, %3, %cst_56 {dimension_numbers = #tpu.dot_dimension_numbers<[1], [0], [0], [1], [0, 0, 1, 1], [], []>} : vector<8x128xbf16>, vector<128x512xbf16>, vector<8x512xf32> -> vector<8x512xf32>
    %275 = arith.addf %272, %274 : vector<8x512xf32>
    %276 = vector.extract_strided_slice %275 {offsets = [0, 0], sizes = [8, 384], strides = [1, 1]} : vector<8x512xf32> to vector<8x384xf32>
    %277 = arith.negf %276 : vector<8x384xf32>
    %278 = math.exp %277 : vector<8x384xf32>
    %cst_57 = arith.constant 1.000000e+00 : f32
    %279 = vector.broadcast %cst_57 : f32 to vector<8x384xf32>
    %280 = arith.addf %279, %278 : vector<8x384xf32>
    %281 = arith.divf %279, %280 : vector<8x384xf32>
    %282 = vector.extract_strided_slice %281 {offsets = [0, 0], sizes = [8, 128], strides = [1, 1]} : vector<8x384xf32> to vector<8x128xf32>
    %283 = vector.extract_strided_slice %281 {offsets = [0, 128], sizes = [8, 128], strides = [1, 1]} : vector<8x384xf32> to vector<8x128xf32>
    %284 = vector.extract_strided_slice %281 {offsets = [0, 256], sizes = [8, 128], strides = [1, 1]} : vector<8x384xf32> to vector<8x128xf32>
    %285 = vector.extract_strided_slice %275 {offsets = [0, 384], sizes = [8, 128], strides = [1, 1]} : vector<8x512xf32> to vector<8x128xf32>
    %286 = math.tanh %285 : vector<8x128xf32>
    %287 = arith.mulf %284, %267 : vector<8x128xf32>
    %288 = arith.mulf %282, %286 : vector<8x128xf32>
    %289 = arith.addf %287, %288 : vector<8x128xf32>
    %290 = math.tanh %289 : vector<8x128xf32>
    %291 = arith.mulf %283, %290 : vector<8x128xf32>
    %c13 = arith.constant 13 : index
    %c0_58 = arith.constant 0 : index
    %c0_59 = arith.constant 0 : index
    %292 = vector.load %arg2[%c13, %c0_58, %c0_59] : memref<16x8x512xbf16, #tpu.memory_space<vmem>>, vector<1x8x512xbf16>
    %293 = vector.shape_cast %292 : vector<1x8x512xbf16> to vector<8x512xbf16>
    %294 = arith.extf %293 : vector<8x512xbf16> to vector<8x512xf32>
    %295 = arith.truncf %291 : vector<8x128xf32> to vector<8x128xbf16>
    %cst_60 = arith.constant dense<0.000000e+00> : vector<8x512xf32>
    %296 = tpu.matmul %295, %3, %cst_60 {dimension_numbers = #tpu.dot_dimension_numbers<[1], [0], [0], [1], [0, 0, 1, 1], [], []>} : vector<8x128xbf16>, vector<128x512xbf16>, vector<8x512xf32> -> vector<8x512xf32>
    %297 = arith.addf %294, %296 : vector<8x512xf32>
    %298 = vector.extract_strided_slice %297 {offsets = [0, 0], sizes = [8, 384], strides = [1, 1]} : vector<8x512xf32> to vector<8x384xf32>
    %299 = arith.negf %298 : vector<8x384xf32>
    %300 = math.exp %299 : vector<8x384xf32>
    %cst_61 = arith.constant 1.000000e+00 : f32
    %301 = vector.broadcast %cst_61 : f32 to vector<8x384xf32>
    %302 = arith.addf %301, %300 : vector<8x384xf32>
    %303 = arith.divf %301, %302 : vector<8x384xf32>
    %304 = vector.extract_strided_slice %303 {offsets = [0, 0], sizes = [8, 128], strides = [1, 1]} : vector<8x384xf32> to vector<8x128xf32>
    %305 = vector.extract_strided_slice %303 {offsets = [0, 128], sizes = [8, 128], strides = [1, 1]} : vector<8x384xf32> to vector<8x128xf32>
    %306 = vector.extract_strided_slice %303 {offsets = [0, 256], sizes = [8, 128], strides = [1, 1]} : vector<8x384xf32> to vector<8x128xf32>
    %307 = vector.extract_strided_slice %297 {offsets = [0, 384], sizes = [8, 128], strides = [1, 1]} : vector<8x512xf32> to vector<8x128xf32>
    %308 = math.tanh %307 : vector<8x128xf32>
    %309 = arith.mulf %306, %289 : vector<8x128xf32>
    %310 = arith.mulf %304, %308 : vector<8x128xf32>
    %311 = arith.addf %309, %310 : vector<8x128xf32>
    %312 = math.tanh %311 : vector<8x128xf32>
    %313 = arith.mulf %305, %312 : vector<8x128xf32>
    %c14 = arith.constant 14 : index
    %c0_62 = arith.constant 0 : index
    %c0_63 = arith.constant 0 : index
    %314 = vector.load %arg2[%c14, %c0_62, %c0_63] : memref<16x8x512xbf16, #tpu.memory_space<vmem>>, vector<1x8x512xbf16>
    %315 = vector.shape_cast %314 : vector<1x8x512xbf16> to vector<8x512xbf16>
    %316 = arith.extf %315 : vector<8x512xbf16> to vector<8x512xf32>
    %317 = arith.truncf %313 : vector<8x128xf32> to vector<8x128xbf16>
    %cst_64 = arith.constant dense<0.000000e+00> : vector<8x512xf32>
    %318 = tpu.matmul %317, %3, %cst_64 {dimension_numbers = #tpu.dot_dimension_numbers<[1], [0], [0], [1], [0, 0, 1, 1], [], []>} : vector<8x128xbf16>, vector<128x512xbf16>, vector<8x512xf32> -> vector<8x512xf32>
    %319 = arith.addf %316, %318 : vector<8x512xf32>
    %320 = vector.extract_strided_slice %319 {offsets = [0, 0], sizes = [8, 384], strides = [1, 1]} : vector<8x512xf32> to vector<8x384xf32>
    %321 = arith.negf %320 : vector<8x384xf32>
    %322 = math.exp %321 : vector<8x384xf32>
    %cst_65 = arith.constant 1.000000e+00 : f32
    %323 = vector.broadcast %cst_65 : f32 to vector<8x384xf32>
    %324 = arith.addf %323, %322 : vector<8x384xf32>
    %325 = arith.divf %323, %324 : vector<8x384xf32>
    %326 = vector.extract_strided_slice %325 {offsets = [0, 0], sizes = [8, 128], strides = [1, 1]} : vector<8x384xf32> to vector<8x128xf32>
    %327 = vector.extract_strided_slice %325 {offsets = [0, 128], sizes = [8, 128], strides = [1, 1]} : vector<8x384xf32> to vector<8x128xf32>
    %328 = vector.extract_strided_slice %325 {offsets = [0, 256], sizes = [8, 128], strides = [1, 1]} : vector<8x384xf32> to vector<8x128xf32>
    %329 = vector.extract_strided_slice %319 {offsets = [0, 384], sizes = [8, 128], strides = [1, 1]} : vector<8x512xf32> to vector<8x128xf32>
    %330 = math.tanh %329 : vector<8x128xf32>
    %331 = arith.mulf %328, %311 : vector<8x128xf32>
    %332 = arith.mulf %326, %330 : vector<8x128xf32>
    %333 = arith.addf %331, %332 : vector<8x128xf32>
    %334 = math.tanh %333 : vector<8x128xf32>
    %335 = arith.mulf %327, %334 : vector<8x128xf32>
    %c15 = arith.constant 15 : index
    %c0_66 = arith.constant 0 : index
    %c0_67 = arith.constant 0 : index
    %336 = vector.load %arg2[%c15, %c0_66, %c0_67] : memref<16x8x512xbf16, #tpu.memory_space<vmem>>, vector<1x8x512xbf16>
    %337 = vector.shape_cast %336 : vector<1x8x512xbf16> to vector<8x512xbf16>
    %338 = arith.extf %337 : vector<8x512xbf16> to vector<8x512xf32>
    %339 = arith.truncf %335 : vector<8x128xf32> to vector<8x128xbf16>
    %cst_68 = arith.constant dense<0.000000e+00> : vector<8x512xf32>
    %340 = tpu.matmul %339, %3, %cst_68 {dimension_numbers = #tpu.dot_dimension_numbers<[1], [0], [0], [1], [0, 0, 1, 1], [], []>} : vector<8x128xbf16>, vector<128x512xbf16>, vector<8x512xf32> -> vector<8x512xf32>
    %341 = arith.addf %338, %340 : vector<8x512xf32>
    %342 = vector.extract_strided_slice %341 {offsets = [0, 0], sizes = [8, 384], strides = [1, 1]} : vector<8x512xf32> to vector<8x384xf32>
    %343 = arith.negf %342 : vector<8x384xf32>
    %344 = math.exp %343 : vector<8x384xf32>
    %cst_69 = arith.constant 1.000000e+00 : f32
    %345 = vector.broadcast %cst_69 : f32 to vector<8x384xf32>
    %346 = arith.addf %345, %344 : vector<8x384xf32>
    %347 = arith.divf %345, %346 : vector<8x384xf32>
    %348 = vector.extract_strided_slice %347 {offsets = [0, 0], sizes = [8, 128], strides = [1, 1]} : vector<8x384xf32> to vector<8x128xf32>
    %349 = vector.extract_strided_slice %347 {offsets = [0, 128], sizes = [8, 128], strides = [1, 1]} : vector<8x384xf32> to vector<8x128xf32>
    %350 = vector.extract_strided_slice %347 {offsets = [0, 256], sizes = [8, 128], strides = [1, 1]} : vector<8x384xf32> to vector<8x128xf32>
    %351 = vector.extract_strided_slice %341 {offsets = [0, 384], sizes = [8, 128], strides = [1, 1]} : vector<8x512xf32> to vector<8x128xf32>
    %352 = math.tanh %351 : vector<8x128xf32>
    %353 = arith.mulf %350, %333 : vector<8x128xf32>
    %354 = arith.mulf %348, %352 : vector<8x128xf32>
    %355 = arith.addf %353, %354 : vector<8x128xf32>
    %356 = math.tanh %355 : vector<8x128xf32>
    %357 = arith.mulf %349, %356 : vector<8x128xf32>
    %c0_70 = arith.constant 0 : index
    %c0_71 = arith.constant 0 : index
    %358 = vector.load %arg7[%c0_70, %c0_71] : memref<8x128xf32, #tpu.memory_space<vmem>>, vector<8x128xf32>
    tpu.vector_store %arg7[%c0_70, %c0_71], %357 {strides = array<i32>} : memref<8x128xf32, #tpu.memory_space<vmem>>, vector<8x128xf32>,
    %c0_72 = arith.constant 0 : index
    %c0_73 = arith.constant 0 : index
    %359 = vector.load %arg8[%c0_72, %c0_73] : memref<8x128xf32, #tpu.memory_space<vmem>>, vector<8x128xf32>
    tpu.vector_store %arg8[%c0_72, %c0_73], %355 {strides = array<i32>} : memref<8x128xf32, #tpu.memory_space<vmem>>, vector<8x128xf32>,
    %360 = vector.shape_cast %27 : vector<8x128xf32> to vector<8x1x128xf32>
    %361 = vector.shape_cast %49 : vector<8x128xf32> to vector<8x1x128xf32>
    %362 = vector.shape_cast %71 : vector<8x128xf32> to vector<8x1x128xf32>
    %363 = vector.shape_cast %93 : vector<8x128xf32> to vector<8x1x128xf32>
    %364 = vector.shape_cast %115 : vector<8x128xf32> to vector<8x1x128xf32>
    %365 = vector.shape_cast %137 : vector<8x128xf32> to vector<8x1x128xf32>
    %366 = vector.shape_cast %159 : vector<8x128xf32> to vector<8x1x128xf32>
    %367 = vector.shape_cast %181 : vector<8x128xf32> to vector<8x1x128xf32>
    %368 = vector.shape_cast %203 : vector<8x128xf32> to vector<8x1x128xf32>
    %369 = vector.shape_cast %225 : vector<8x128xf32> to vector<8x1x128xf32>
    %370 = vector.shape_cast %247 : vector<8x128xf32> to vector<8x1x128xf32>
    %371 = vector.shape_cast %269 : vector<8x128xf32> to vector<8x1x128xf32>
    %372 = vector.shape_cast %291 : vector<8x128xf32> to vector<8x1x128xf32>
    %373 = vector.shape_cast %313 : vector<8x128xf32> to vector<8x1x128xf32>
    %374 = vector.shape_cast %335 : vector<8x128xf32> to vector<8x1x128xf32>
    %375 = vector.shape_cast %357 : vector<8x128xf32> to vector<8x1x128xf32>
    %376 = tpu.concatenate %360, %361, %362, %363, %364, %365, %366, %367, %368, %369, %370, %371, %372, %373, %374, %375 in 1 : vector<8x1x128xf32>, vector<8x1x128xf32>, vector<8x1x128xf32>, vector<8x1x128xf32>, vector<8x1x128xf32>, vector<8x1x128xf32>, vector<8x1x128xf32>, vector<8x1x128xf32>, vector<8x1x128xf32>, vector<8x1x128xf32>, vector<8x1x128xf32>, vector<8x1x128xf32>, vector<8x1x128xf32>, vector<8x1x128xf32>, vector<8x1x128xf32>, vector<8x1x128xf32> -> vector<8x16x128xf32>
    %c0_74 = arith.constant 0 : index
    %c0_75 = arith.constant 0 : index
    %c0_76 = arith.constant 0 : index
    %377 = vector.load %arg6[%c0_74, %c0_75, %c0_76] : memref<8x16x128xf32, #tpu.memory_space<vmem>>, vector<8x16x128xf32>
    tpu.vector_store %arg6[%c0_74, %c0_75, %c0_76], %376 {strides = array<i32>} : memref<8x16x128xf32, #tpu.memory_space<vmem>>, vector<8x16x128xf32>,
    return
  }
  func.func @transform_0(%arg0: i32, %arg1: i32) -> (i32, i32, i32) {
    %c0_i32 = arith.constant 0 : i32
    %c0_i32_0 = arith.constant 0 : i32
    return %arg1, %arg0, %c0_i32 : i32, i32, i32
  }
  func.func @transform_2(%arg0: i32, %arg1: i32) -> (i32, i32) {
    %c0_i32 = arith.constant 0 : i32
    %c0_i32_0 = arith.constant 0 : i32
    return %arg0, %c0_i32 : i32, i32
  }
  func.func @transform_3(%arg0: i32, %arg1: i32) -> (i32, i32) {
    %c0_i32 = arith.constant 0 : i32
    %c0_i32_0 = arith.constant 0 : i32
    return %arg0, %c0_i32 : i32, i32
  }
  func.func @transform_4(%arg0: i32, %arg1: i32) -> (i32, i32, i32) {
    %c0_i32 = arith.constant 0 : i32
    %c0_i32_0 = arith.constant 0 : i32
    return %arg0, %arg1, %c0_i32 : i32, i32, i32
  }
}

</mosaic_0001>

<bundles_post_ra>
// kernel: tpu_custom_call.1
= control target key start
LH: loop header
LB: loop body
LE: loop exit
PB: predicated region body
PF: predicated region fallthrough
CT: control target
= control target key end

     0   :  { %9 = vsyncpa [#allocation7], 0  ;;  %s5525_s0 = inlined_call_operand.hbm [shape: bf16[16,8,512], index: 0, kind: input, shape index: {}]   ;;  %s5526_s1 = inlined_call_operand.hbm [shape: bf16[128,512], index: 1, kind: input, shape index: {}]   ;;  %s5527_s2 = inlined_call_operand.hbm [shape: f32[8,128], index: 2, kind: input, shape index: {}]   ;;  %s5528_s3 = inlined_call_operand.vmem [shape: f32[8,128], index: 3, kind: input, shape index: {}]   ;;  %s5529_s4 = inlined_call_operand.hbm [shape: f32[8,16,128], index: 4, kind: output, shape index: {}]  }
   0x1   :  { %10 = vsyncpa [#allocation10], 0 }
   0x2   :  { %11 = vsyncpa [#allocation8], 0  ;;  %s4011_s15 = smov [#allocation6]   ;;  %s3937_s19 = scalar_lea.hbm %s5525_s0, 4096 }
   0x3   :  { %s17_s16 = sshll.u32 %s4011_s15, 4  ;;  %p3938_p0 = scmp.ne.s32.totalorder %s5525_s0, %s3937_s19  ;;  %s18_s16 = int_to_ptr.vmem [resolvable:$true] %s17_s16 }
   0x4   :  { %p3941_p1 = scmp.lt.u32.totalorder %s3937_s19, %s5525_s0 }
   0x6   :  { %p3943_p2 = pnand %p3941_p1, %p3938_p0 }
   0x8   :  { %3946 = shalt.err (!%p3943_p2)
}
   0x9   :  { %s3947_s24 = scalar_lea.vmem %s18_s16, 4096  ;;  %p3952_p4 = scmp.lt.s32.totalorder %s18_s16, %s18_s16 }
   0xa   :  { %p3948_p3 = scmp.ne.s32.totalorder %s18_s16, %s3947_s24  ;;  %p3953_p5 = scmp.lt.s32.totalorder %s3947_s24, %s3947_s24 }
   0xc   :  { %p3954_p6 = por %p3953_p5, %p3952_p4 }
   0xe   :  { %p3955_p7 = pnand %p3954_p6, %p3948_p3 }
  0x10   :  { %3958 = shalt.err (!%p3955_p7)
}
  0x11   :  { %s4012_s25 = smov 256   ;;  %s4013_s26 = smov 16  }
  0x12   :  { %23 = dma.hbm_to_vmem [thread:$0]  %s5525_s0, 4096, %s18_s16, [#allocation7], %s4012_s25, %s4012_s25, %s4013_s26  }
  0x13   :  { %s4014_s29 = smov [#allocation9]   ;;  %s3959_s7 = scalar_lea.hbm %s5527_s2, 128 }
  0x14   :  { %s30_s30 = sshll.u32 %s4014_s29, 4  ;;  %p3960_p8 = scmp.ne.s32.totalorder %s5527_s2, %s3959_s7  ;;  %s31_s30 = int_to_ptr.vmem [resolvable:$true] %s30_s30 }
  0x15   :  { %p3963_p9 = scmp.lt.u32.totalorder %s3959_s7, %s5527_s2 }
  0x17   :  { %p3965_p10 = pnand %p3963_p9, %p3960_p8 }
  0x19   :  { %3968 = shalt.err (!%p3965_p10)
}
  0x1a   :  { %s3969_s12 = scalar_lea.vmem %s31_s30, 128  ;;  %p3974_p12 = scmp.lt.s32.totalorder %s31_s30, %s31_s30 }
  0x1b   :  { %p3970_p11 = scmp.ne.s32.totalorder %s31_s30, %s3969_s12  ;;  %p3975_p13 = scmp.lt.s32.totalorder %s3969_s12, %s3969_s12 }
  0x1d   :  { %p3976_p0 = por %p3975_p13, %p3974_p12 }
  0x1f   :  { %p3977_p1 = pnand %p3976_p0, %p3970_p11 }
  0x21   :  { %3980 = shalt.err (!%p3977_p1)
}
  0x22   :  { %33 = dma.hbm_to_vmem [thread:$0]  %s5527_s2, 128, %s31_s30, [#allocation10]  }
  0x23   :  { %4003 = dma.done.wait [#allocation7], 4096  }
  0x24   :  { %4004 = vsyncadd [#allocation7], 4294963200 }
  0x25   :  { %4005 = dma.done.wait [#allocation10], 128  }
  0x26   :  { %4006 = vsyncadd [#allocation10], 4294967168 }
  0x27   :  { %v4078_v0 = vld [vmem:[#allocation9] sm:$0xff]  ;;  %s55_s16 = sld [smem:[#allocation0]]   ;;  %s4015_s17 = smov [#allocation4]  }
  0x28   :  { %v4083_v1 = vld [vmem:[%s5528_s3] sm:$0xff]  ;;  %s63_s18 = sshll.u32 %s4015_s17, 4  ;;  %s4016_s19 = smov 512   ;;  %s64_s18 = int_to_ptr.vmem [resolvable:$true] %s63_s18 }
  0x29   :  { %67 = sst [smem:[#allocation13]] %s4016_s19  ;;  %s4017_s20 = smov 4  }
  0x2a   :  { %69 = sst [smem:[#allocation13 + $0x1]] %s4016_s19  ;;  %s4018_s2 = smov 64  }
  0x2b   :  { %71 = sst [smem:[#allocation13 + $0x2]] %s4017_s20  ;;  %s4019_s22 = smov 128  }
  0x2c   :  { %73 = sst [smem:[#allocation13 + $0x3]] %s4018_s2  ;;  %s4020_s24 = smov 2  }
  0x2d   :  { %s3548_s21 = sshll.u32 %s55_s16, 26  ;;  %75 = sst [smem:[#allocation13 + $0x4]] %s4019_s22 }
  0x2e   :  { %s3549_s23 = sadd.s32 134217728, %s3548_s21  ;;  %77 = sst [smem:[#allocation13 + $0x5]] %s4020_s24 }
  0x2f   :  { %s4021_s25 = smov 256   ;;  %81 = sst [smem:[#allocation13 + $0x7]] %s4018_s2 }
  0x30   :  { %79 = sst [smem:[#allocation13 + $0x6]] %s4021_s25  ;;  %s4022_s3 = smov [#allocation5]  }
  0x31   :  { %83 = sst [smem:[#allocation13 + $0x8]] %s4017_s20  ;;  %s4023_s26 = smov [#allocation12]  }
  0x32   :  { %85 = dma.general %s5526_s1, 4096, %s64_s18, %s4022_s3, %s4023_s26, [#allocation13], %s3549_s23, 0  }
  0x33   :  { %4007 = dma.done.wait [#allocation5], 4096 }
  0x34   :  { %4008 = vsyncadd [#allocation5], 4294963200  ;;  %v4088_v2 = vld [vmem:[#allocation4 + $0x8] sm:$0xff]  ;;  %v4090_v3 = vld [vmem:[#allocation4 + $0x18] sm:$0xff]  ;;  %v5530_v12 = vmov 0   ;;  %v130_v35 = vpack.c.bf16 %v4078_v0, %v4078_v0  ;;  %vm3389_vm0 = vcmask 1040384  }
  0x35   :  { %5553 = vst [vmem:[#allocation18_spill] sm:$0xff] %v4088_v2  ;;  %5554 = vst [vmem:[#allocation19_spill] sm:$0xff] %v4090_v3  ;;  %v4092_v4 = vld [vmem:[#allocation4] sm:$0xff]  ;;  %131 = vmatprep.subr.bf16.mxu0 %v4088_v2  ;;  %172 = vmatprep.subr.bf16.mxu1 %v4090_v3  ;;  %v4096_v5 = vld [vmem:[#allocation4 + $0x10] sm:$0xff]  ;;  %vm3398_vm1 = vcmask 1041408   ;;  %vm3407_vm2 = vcmask 1042432  }
  0x36   :  { %v4098_v6 = vld [vmem:[#allocation4 + $0x28] sm:$0xff]  ;;  %v4100_v7 = vld [vmem:[#allocation4 + $0x38] sm:$0xff]  ;;  %132 = vmatpush1.bf16.msra.mxu0 %v4092_v4  ;;  %173 = vmatpush1.bf16.msra.mxu1 %v4096_v5  ;;  %v4106_v8 = vld [vmem:[#allocation4 + $0x20] sm:$0xff]  ;;  %vm3416_vm3 = vcmask 1043456   ;;  %vm3425_vm4 = vcmask 1044480   ;;  %vm3434_vm5 = vcmask 1045504  }
  0x37   :  { %133 = vmatprep.subr.bf16.mxu0 %v4098_v6  ;;  %174 = vmatprep.subr.bf16.mxu1 %v4100_v7  ;;  %v4108_v9 = vld [vmem:[#allocation4 + $0x30] sm:$0xff]  ;;  %v4110_v10 = vld [vmem:[#allocation4 + $0x48] sm:$0xff]  ;;  %v4112_v11 = vld [vmem:[#allocation4 + $0x58] sm:$0xff]  ;;  %vm3443_vm6 = vcmask 1046528   ;;  %s4026_s1 = smov [#allocation11]  }
  0x38   :  { %163 = vmatprep.mubr.bf16.mxu0 %v5530_v12  ;;  %204 = vmatprep.mubr.bf16.mxu1 %v5530_v12  ;;  %v4120_v13 = vld [vmem:[#allocation4 + $0x40] sm:$0xff]  ;;  %v4122_v14 = vld [vmem:[#allocation4 + $0x50] sm:$0xff]  ;;  %v4124_v15 = vld [vmem:[#allocation4 + $0x68] sm:$0xff]  ;;  %s3529_s29 = sshll.u32 %s4026_s1, 4  ;;  %s3530_s29 = int_to_ptr.vmem [resolvable:$true] %s3529_s29 }
  0x39   :  { %v4126_v16 = vld [vmem:[#allocation4 + $0x78] sm:$0xff]  ;;  %v4132_v17 = vld [vmem:[#allocation4 + $0x60] sm:$0xff]  ;;  %v4134_v18 = vld [vmem:[#allocation4 + $0x70] sm:$0xff]  ;;  %s3981_s30 = scalar_lea.vmem %s3530_s29, 2048  ;;  %p3986_p3 = scmp.lt.s32.totalorder %s3530_s29, %s3530_s29 }
  0x3a   :  { %134 = vmatpush1.bf16.msra.mxu0 %v4106_v8  ;;  %175 = vmatpush1.bf16.msra.mxu1 %v4108_v9  ;;  %v4136_v19 = vld [vmem:[#allocation4 + $0x88] sm:$0xff]  ;;  %v4138_v20 = vld [vmem:[#allocation4 + $0x98] sm:$0xff]  ;;  %v4144_v21 = vld [vmem:[#allocation4 + $0x80] sm:$0xff]  ;;  %p3982_p2 = scmp.ne.s32.totalorder %s3530_s29, %s3981_s30  ;;  %p3987_p4 = scmp.lt.s32.totalorder %s3981_s30, %s3981_s30 }
  0x3b   :  { %135 = vmatprep.subr.bf16.mxu0 %v4110_v10  ;;  %176 = vmatprep.subr.bf16.mxu1 %v4112_v11  ;;  %v4146_v22 = vld [vmem:[#allocation4 + $0x90] sm:$0xff]  ;;  %v4148_v23 = vld [vmem:[#allocation4 + $0xa8] sm:$0xff]  ;;  %v4150_v24 = vld [vmem:[#allocation4 + $0xb8] sm:$0xff] }
  0x3c   :  { %v4156_v25 = vld [vmem:[#allocation4 + $0xa0] sm:$0xff]  ;;  %v4158_v26 = vld [vmem:[#allocation4 + $0xb0] sm:$0xff]  ;;  %v4160_v27 = vld [vmem:[#allocation4 + $0xc8] sm:$0xff]  ;;  %p3988_p5 = por %p3987_p4, %p3986_p3 }
  0x3d   :  { %v4162_v28 = vld [vmem:[#allocation4 + $0xd8] sm:$0xff]  ;;  %v4168_v29 = vld [vmem:[#allocation4 + $0xc0] sm:$0xff]  ;;  %v4170_v30 = vld [vmem:[#allocation4 + $0xd0] sm:$0xff] }
  0x3e   :  { %136 = vmatpush1.bf16.msra.mxu0 %v4120_v13  ;;  %177 = vmatpush1.bf16.msra.mxu1 %v4122_v14  ;;  %v4172_v31 = vld [vmem:[#allocation4 + $0xe8] sm:$0xff]  ;;  %v4174_v32 = vld [vmem:[#allocation4 + $0xf8] sm:$0xff]  ;;  %v4180_v33 = vld [vmem:[#allocation4 + $0xe0] sm:$0xff]  ;;  %p3989_p6 = pnand %p3988_p5, %p3982_p2 }
  0x3f   :  { %137 = vmatprep.subr.bf16.mxu0 %v4124_v15  ;;  %178 = vmatprep.subr.bf16.mxu1 %v4126_v16  ;;  %5555 = vst [vmem:[#allocation20_spill] sm:$0xff] %v4180_v33  ;;  %v4182_v34 = vld [vmem:[#allocation4 + $0xf0] sm:$0xff]  ;;  %v124_v36 = vld [vmem:[#allocation6] sm:$0xff]  ;;  %v125_v37 = vld [vmem:[#allocation6 + $0x8] sm:$0xff] }
  0x40   :  { %5556 = vst [vmem:[#allocation21_spill] sm:$0xff] %v4182_v34  ;;  %v126_v38 = vunpack.c.l.bf16 %v124_v36  ;;  %v128_v39 = vunpack.c.l.bf16 %v125_v37  ;;  %v127_v52 = vunpack.c.h.bf16 %v124_v36  ;;  %v129_v54 = vunpack.c.h.bf16 %v125_v37 }
  0x42   :  { %138 = vmatpush1.bf16.msra.mxu0 %v4132_v17  ;;  %179 = vmatpush1.bf16.msra.mxu1 %v4134_v18 }
  0x43   :  { %139 = vmatprep.subr.bf16.mxu0 %v4136_v19  ;;  %180 = vmatprep.subr.bf16.mxu1 %v4138_v20 }
  0x46   :  { %140 = vmatpush1.bf16.msra.mxu0 %v4144_v21  ;;  %181 = vmatpush1.bf16.msra.mxu1 %v4146_v22 }
  0x47   :  { %141 = vmatprep.subr.bf16.mxu0 %v4148_v23  ;;  %182 = vmatprep.subr.bf16.mxu1 %v4150_v24 }
  0x4a   :  { %142 = vmatpush1.bf16.msra.mxu0 %v4156_v25  ;;  %183 = vmatpush1.bf16.msra.mxu1 %v4158_v26 }
  0x4b   :  { %143 = vmatprep.subr.bf16.mxu0 %v4160_v27  ;;  %184 = vmatprep.subr.bf16.mxu1 %v4162_v28 }
  0x4e   :  { %144 = vmatpush1.bf16.msra.mxu0 %v4168_v29  ;;  %185 = vmatpush1.bf16.msra.mxu1 %v4170_v30 }
  0x4f   :  { %145 = vmatprep.subr.bf16.mxu0 %v4172_v31  ;;  %186 = vmatprep.subr.bf16.mxu1 %v4174_v32 }
  0x52   :  { %146 = vmatpush1.bf16.msra.mxu0 %v4180_v33  ;;  %187 = vmatpush1.bf16.msra.mxu1 %v4182_v34 }
  0x53   :  { %249 = vmatprep.subr.bf16.mxu0 %v4088_v2  ;;  %290 = vmatprep.subr.bf16.mxu1 %v4090_v3 }
  0x55   :  { %164 = vmatmul.mubr.bf16.vlgmr.msra.gmra.mrb[0].mxu0 %v130_v35  ;;  %205 = vmatmul.mubr.bf16.vlgmr.msra.gmra.mrb[0].mxu1 %v130_v35 }
  0x56   :  { %250 = vmatpush1.bf16.msra.mxu0 %v4092_v4  ;;  %291 = vmatpush1.bf16.msra.mxu1 %v4096_v5 }
  0x57   :  { %251 = vmatprep.subr.bf16.mxu0 %v4098_v6  ;;  %292 = vmatprep.subr.bf16.mxu1 %v4100_v7 }
  0x58   :  { %281 = vmatprep.mubr.bf16.mxu0 %v5530_v12  ;;  %322 = vmatprep.mubr.bf16.mxu1 %v5530_v12 }
  0x5a   :  { %252 = vmatpush1.bf16.msra.mxu0 %v4106_v8  ;;  %293 = vmatpush1.bf16.msra.mxu1 %v4108_v9 }
  0x5b   :  { %253 = vmatprep.subr.bf16.mxu0 %v4110_v10  ;;  %294 = vmatprep.subr.bf16.mxu1 %v4112_v11 }
  0x5e   :  { %254 = vmatpush1.bf16.msra.mxu0 %v4120_v13  ;;  %295 = vmatpush1.bf16.msra.mxu1 %v4122_v14 }
  0x5f   :  { %255 = vmatprep.subr.bf16.mxu0 %v4124_v15  ;;  %296 = vmatprep.subr.bf16.mxu1 %v4126_v16 }
  0x62   :  { %256 = vmatpush1.bf16.msra.mxu0 %v4132_v17  ;;  %297 = vmatpush1.bf16.msra.mxu1 %v4134_v18 }
  0x63   :  { %257 = vmatprep.subr.bf16.mxu0 %v4136_v19  ;;  %298 = vmatprep.subr.bf16.mxu1 %v4138_v20 }
  0x66   :  { %258 = vmatpush1.bf16.msra.mxu0 %v4144_v21  ;;  %299 = vmatpush1.bf16.msra.mxu1 %v4146_v22 }
  0x67   :  { %259 = vmatprep.subr.bf16.mxu0 %v4148_v23  ;;  %300 = vmatprep.subr.bf16.mxu1 %v4150_v24 }
  0x6a   :  { %260 = vmatpush1.bf16.msra.mxu0 %v4156_v25  ;;  %301 = vmatpush1.bf16.msra.mxu1 %v4158_v26 }
  0x6b   :  { %261 = vmatprep.subr.bf16.mxu0 %v4160_v27  ;;  %302 = vmatprep.subr.bf16.mxu1 %v4162_v28 }
  0x6e   :  { %262 = vmatpush1.bf16.msra.mxu0 %v4168_v29  ;;  %303 = vmatpush1.bf16.msra.mxu1 %v4170_v30 }
  0x6f   :  { %263 = vmatprep.subr.bf16.mxu0 %v4172_v31  ;;  %304 = vmatprep.subr.bf16.mxu1 %v4174_v32 }
  0x72   :  { %264 = vmatpush1.bf16.msra.mxu0 %v4180_v33  ;;  %305 = vmatpush1.bf16.msra.mxu1 %v4182_v34 }
  0x73   :  { %367 = vmatprep.subr.bf16.mxu0 %v4088_v2  ;;  %408 = vmatprep.subr.bf16.mxu1 %v4090_v3 }
 0x128   :  { %v165_v40 = vpop.f32.mrb[0].mxu0  ;;  %v206_v41 = vpop.f32.mrb[0].mxu1 }
 0x129   :  { %v213_v42 = vadd.f32 %v165_v40, %v126_v38  ;;  %v215_v43 = vadd.f32 %v206_v41, %v128_v39  ;;  %v167_v44 = vpop.f32.mrb[1].mxu0  ;;  %v208_v45 = vpop.f32.mrb[1].mxu1 }
 0x12a   :  { %v169_v46 = vpop.f32.mrb[2].mxu0  ;;  %v210_v47 = vpop.f32.mrb[2].mxu1  ;;  %v214_v53 = vadd.f32 %v167_v44, %v127_v52  ;;  %v216_v56 = vadd.f32 %v208_v45, %v129_v54 }
 0x12b   :  { %v3550_v48 = vmul.f32 -1.442695, %v213_v42  ;;  %v3552_v49 = vmul.f32 -1.442695, %v215_v43  ;;  %v170_v50 = vpop.f32.mrb[3].mxu0  ;;  %v211_v51 = vpop.f32.mrb[3].mxu1 }
 0x12c   :  { %v3551_v55 = vmul.f32 -1.442695, %v214_v53  ;;  %v243_v43 = vld [vmem:[#allocation6 + $0x18] sm:$0xff] }
 0x12d   :  { %3617 = vpow2.f32 %v3550_v48  ;;  %v246_v45 = vunpack.c.l.bf16 %v243_v43 }
 0x12e   :  { %3619 = vpow2.f32 %v3552_v49 }
 0x12f   :  { %3621 = vpow2.f32 %v3551_v55 }
 0x130   :  { %3623 = vtanh.f32 %v216_v56 }
 0x137   :  { %v3618_v57 = vpop.eup %3617 }
 0x138   :  { %v3620_v58 = vpop.eup %3619  ;;  %v226_v59 = vadd.f32 1.0, %v3618_v57 }
 0x139   :  { %v228_v60 = vadd.f32 1.0, %v3620_v58  ;;  %v3622_v61 = vpop.eup %3621 }
 0x13a   :  { %3625 = vrcp.f32 %v226_v59  ;;  %v3624_v62 = vpop.eup %3623  ;;  %v227_v35 = vadd.f32 1.0, %v3622_v61 }
 0x13b   :  { %3627 = vrcp.f32 %v228_v60  ;;  %v247_v60 = vunpack.c.h.bf16 %v243_v43 }
 0x13c   :  { %3629 = vrcp.f32 %v227_v35 }
 0x144   :  { %v3626_v63 = vpop.eup %3625 }
 0x145   :  { %v3628_v0 = vpop.eup %3627  ;;  %v237_v36 = vmul.f32 %v3626_v63, %v3624_v62 }
 0x146   :  { %v236_v38 = vmul.f32 %v3628_v0, %v4083_v1  ;;  %v3630_v37 = vpop.eup %3629  ;;  %v242_v1 = vld [vmem:[#allocation6 + $0x10] sm:$0xff] }
 0x147   :  { %v244_v44 = vunpack.c.l.bf16 %v242_v1  ;;  %v245_v58 = vunpack.c.h.bf16 %v242_v1  ;;  %v2018_v1 = vlaneseq }
 0x148   :  { %v4225_v39 = vadd.f32 %v237_v36, %v236_v38 }
 0x14a   :  { %3631 = vtanh.f32 %v4225_v39 }
 0x154   :  { %v3632_v40 = vpop.eup %3631 }
 0x155   :  { %v4228_v41 = vmul.f32 %v3632_v40, %v3630_v37 }
 0x157   :  { %v248_v42 = vpack.c.bf16 %v4228_v41, %v4228_v41 }
 0x159   :  { %282 = vmatmul.mubr.bf16.vlgmr.msra.gmra.mrb[4].mxu0 %v248_v42  ;;  %323 = vmatmul.mubr.bf16.vlgmr.msra.gmra.mrb[4].mxu1 %v248_v42  ;;  %v4025_v42 = vmov 1966171168  }
 0x15a   :  { %368 = vmatpush1.bf16.msra.mxu0 %v4092_v4  ;;  %409 = vmatpush1.bf16.msra.mxu1 %v4096_v5 }
 0x15b   :  { %369 = vmatprep.subr.bf16.mxu0 %v4098_v6  ;;  %410 = vmatprep.subr.bf16.mxu1 %v4100_v7 }
 0x15c   :  { %399 = vmatprep.mubr.bf16.mxu0 %v5530_v12  ;;  %440 = vmatprep.mubr.bf16.mxu1 %v5530_v12 }
 0x15e   :  { %370 = vmatpush1.bf16.msra.mxu0 %v4106_v8  ;;  %411 = vmatpush1.bf16.msra.mxu1 %v4108_v9 }
 0x15f   :  { %371 = vmatprep.subr.bf16.mxu0 %v4110_v10  ;;  %412 = vmatprep.subr.bf16.mxu1 %v4112_v11 }
 0x162   :  { %372 = vmatpush1.bf16.msra.mxu0 %v4120_v13  ;;  %413 = vmatpush1.bf16.msra.mxu1 %v4122_v14 }
 0x163   :  { %373 = vmatprep.subr.bf16.mxu0 %v4124_v15  ;;  %414 = vmatprep.subr.bf16.mxu1 %v4126_v16 }
 0x166   :  { %374 = vmatpush1.bf16.msra.mxu0 %v4132_v17  ;;  %415 = vmatpush1.bf16.msra.mxu1 %v4134_v18 }
 0x167   :  { %375 = vmatprep.subr.bf16.mxu0 %v4136_v19  ;;  %416 = vmatprep.subr.bf16.mxu1 %v4138_v20 }
 0x16a   :  { %376 = vmatpush1.bf16.msra.mxu0 %v4144_v21  ;;  %417 = vmatpush1.bf16.msra.mxu1 %v4146_v22 }
 0x16b   :  { %377 = vmatprep.subr.bf16.mxu0 %v4148_v23  ;;  %418 = vmatprep.subr.bf16.mxu1 %v4150_v24 }
 0x16e   :  { %378 = vmatpush1.bf16.msra.mxu0 %v4156_v25  ;;  %419 = vmatpush1.bf16.msra.mxu1 %v4158_v26 }
 0x16f   :  { %379 = vmatprep.subr.bf16.mxu0 %v4160_v27  ;;  %420 = vmatprep.subr.bf16.mxu1 %v4162_v28 }
 0x172   :  { %380 = vmatpush1.bf16.msra.mxu0 %v4168_v29  ;;  %421 = vmatpush1.bf16.msra.mxu1 %v4170_v30 }
 0x173   :  { %381 = vmatprep.subr.bf16.mxu0 %v4172_v31  ;;  %422 = vmatprep.subr.bf16.mxu1 %v4174_v32 }
 0x176   :  { %382 = vmatpush1.bf16.msra.mxu0 %v4180_v33  ;;  %423 = vmatpush1.bf16.msra.mxu1 %v4182_v34 }
 0x177   :  { %485 = vmatprep.subr.bf16.mxu0 %v4088_v2  ;;  %526 = vmatprep.subr.bf16.mxu1 %v4090_v3 }
 0x22c   :  { %v283_v46 = vpop.f32.mrb[4].mxu0  ;;  %v324_v47 = vpop.f32.mrb[4].mxu1 }
 0x22d   :  { %v331_v48 = vadd.f32 %v283_v46, %v244_v44  ;;  %v333_v49 = vadd.f32 %v324_v47, %v246_v45  ;;  %v285_v50 = vpop.f32.mrb[5].mxu0  ;;  %v326_v51 = vpop.f32.mrb[5].mxu1  ;;  %v2016_v44 = vunpack.c.l.s4 %v4025_v42 }
 0x22e   :  { %v287_v52 = vpop.f32.mrb[6].mxu0  ;;  %v328_v53 = vpop.f32.mrb[6].mxu1  ;;  %v332_v59 = vadd.f32 %v285_v50, %v245_v58  ;;  %v334_v62 = vadd.f32 %v326_v51, %v247_v60 }
 0x22f   :  { %v3553_v54 = vmul.f32 -1.442695, %v331_v48  ;;  %v3555_v55 = vmul.f32 -1.442695, %v333_v49  ;;  %v288_v56 = vpop.f32.mrb[7].mxu0  ;;  %v329_v57 = vpop.f32.mrb[7].mxu1  ;;  %v2017_v48 = vunpack.c.0.s8 %v2016_v44  ;;  %v2014_v52 = vcombine.high %v4228_v41, %v4228_v41 }
 0x230   :  { %v3554_v61 = vmul.f32 -1.442695, %v332_v59  ;;  %v2019_v49 = vshrl.u32 %v2018_v1, 7 }
 0x231   :  { %3633 = vpow2.f32 %v3553_v54 }
 0x232   :  { %3635 = vpow2.f32 %v3555_v55  ;;  %v4270_v51 = vsub.s32 %v2017_v48, %v2019_v49 }
 0x233   :  { %3637 = vpow2.f32 %v3554_v61 }
 0x234   :  { %3639 = vtanh.f32 %v334_v62  ;;  %v2021_v53 = vrot.slane %v4228_v41, %v4270_v51  ;;  %v2028_v54 = vrot.slane %v2014_v52, %v4270_v51 }
 0x236   :  { %v2030_v58 = vcombine.high %v2028_v54, %v2028_v54  ;;  %v2037_v59 = vrot.slane %v2021_v53, %v4270_v51 }
 0x23b   :  { %v3634_v63 = vpop.eup %3633 }
 0x23c   :  { %v3636_v0 = vpop.eup %3635  ;;  %v344_v35 = vadd.f32 1.0, %v3634_v63  ;;  %v2044_v63 = vrot.slane %v2028_v54, %v4270_v51 }
 0x23d   :  { %v346_v36 = vadd.f32 1.0, %v3636_v0  ;;  %v3638_v38 = vpop.eup %3637 }
 0x23e   :  { %3641 = vrcp.f32 %v344_v35  ;;  %v3640_v37 = vpop.eup %3639  ;;  %v345_v46 = vadd.f32 1.0, %v3638_v38  ;;  %v4281_v35 = vsub.s32 0, %v2019_v49 }
 0x23f   :  { %3643 = vrcp.f32 %v346_v36 }
 0x240   :  { %3645 = vrcp.f32 %v345_v46  ;;  %v2060_v46 = vcombine.high %v2044_v63, %v2044_v63 }
 0x248   :  { %v3642_v40 = vpop.eup %3641 }
 0x249   :  { %v3644_v45 = vpop.eup %3643  ;;  %v355_v47 = vmul.f32 %v3642_v40, %v3640_v37  ;;  %v2058_v37 = vrot.slane %v2030_v58, %v4270_v51  ;;  %v2059_v40 = vcombine.high %v2037_v59, %v2037_v59 }
 0x24a   :  { %v354_v43 = vmul.f32 %v3644_v45, %v4225_v39  ;;  %v3646_v55 = vpop.eup %3645  ;;  %v2029_v39 = vcombine.high %v2021_v53, %v2021_v53 }
 0x24c   :  { %v4267_v50 = vadd.f32 %v355_v47, %v354_v43  ;;  %v2051_v0 = vrot.slane %v2029_v39, %v4270_v51 }
 0x24e   :  { %3647 = vtanh.f32 %v4267_v50  ;;  %v2061_v47 = vcombine.high %v2051_v0, %v2051_v0 }
 0x258   :  { %v3648_v56 = vpop.eup %3647 }
 0x259   :  { %v358_v57 = vmul.f32 %v3648_v56, %v3646_v55 }
 0x25b   :  { %v366_v60 = vpack.c.bf16 %v358_v57, %v358_v57  ;;  %v2072_v61 = vcombine.high %v358_v57, %v358_v57  ;;  %v2079_v62 = vrot.slane %v358_v57, %v4270_v51 }
 0x25d   :  { %400 = vmatmul.mubr.bf16.vlgmr.msra.gmra.mrb[8].mxu0 %v366_v60  ;;  %v2086_v41 = vrot.slane %v2072_v61, %v4270_v51  ;;  %v2087_v36 = vcombine.high %v2079_v62, %v2079_v62  ;;  %v2095_v38 = vrot.slane %v2079_v62, %v4270_v51  ;;  %441 = vmatmul.mubr.bf16.vlgmr.msra.gmra.mrb[8].mxu1 %v366_v60 }
 0x25e   :  { %486 = vmatpush1.bf16.msra.mxu0 %v4092_v4  ;;  %527 = vmatpush1.bf16.msra.mxu1 %v4096_v5  ;;  %v2062_v61 = vcombine.high %v2058_v37, %v2058_v37 }
 0x25f   :  { %v2088_v42 = vcombine.high %v2086_v41, %v2086_v41  ;;  %v2102_v44 = vrot.slane %v2086_v41, %v4270_v51  ;;  %v2109_v1 = vrot.slane %v2087_v36, %v4270_v51  ;;  %v2117_v45 = vcombine.high %v2095_v38, %v2095_v38  ;;  %487 = vmatprep.subr.bf16.mxu0 %v4098_v6 }
 0x260   :  { %v2832_v43 = vrot.slane %v2095_v38, %v4281_v35  ;;  %528 = vmatprep.subr.bf16.mxu1 %v4100_v7  ;;  %517 = vmatprep.mubr.bf16.mxu0 %v5530_v12 }
 0x261   :  { %v2116_v48 = vrot.slane %v2088_v42, %v4270_v51  ;;  %v2118_v49 = vcombine.high %v2102_v44, %v2102_v44  ;;  %v2119_v52 = vcombine.high %v2109_v1, %v2109_v1  ;;  %v2836_v53 = vrot.slane %v2109_v1, %v4281_v35  ;;  %558 = vmatprep.mubr.bf16.mxu1 %v5530_v12 }
 0x262   :  { %v2840_v54 = vrot.slane %v2117_v45, %v4281_v35  ;;  %v2848_v55 = vrot.slane %v2102_v44, %v4281_v35  ;;  %v4300_v56 = vsel %vm3389_vm0, %v2037_v59, %v2832_v43  ;;  %488 = vmatpush1.bf16.msra.mxu0 %v4106_v8  ;;  %529 = vmatpush1.bf16.msra.mxu1 %v4108_v9 }
 0x263   :  { %v2120_v39 = vcombine.high %v2116_v48, %v2116_v48  ;;  %v2844_v57 = vrot.slane %v2119_v52, %v4281_v35  ;;  %v2852_v58 = vrot.slane %v2116_v48, %v4281_v35  ;;  %v2856_v60 = vrot.slane %v2118_v49, %v4281_v35  ;;  %489 = vmatprep.subr.bf16.mxu0 %v4110_v10 }
 0x264   :  { %v4309_v62 = vsel %vm3389_vm0, %v2051_v0, %v2836_v53  ;;  %v4312_v59 = vsel %vm3389_vm0, %v2059_v40, %v2840_v54  ;;  %v4315_v41 = vsel %vm3389_vm0, %v2044_v63, %v2848_v55  ;;  %530 = vmatprep.subr.bf16.mxu1 %v4112_v11  ;;  %v360_v0 = vld [vmem:[#allocation6 + $0x20] sm:$0xff] }
 0x265   :  { %v2860_v36 = vrot.slane %v2120_v39, %v4281_v35  ;;  %v4320_v38 = vsel %vm3389_vm0, %v2061_v47, %v2844_v57  ;;  %v4323_v42 = vsel %vm3389_vm0, %v2058_v37, %v2852_v58  ;;  %v4326_v44 = vsel %vm3389_vm0, %v2060_v46, %v2856_v60  ;;  %v361_v37 = vld [vmem:[#allocation6 + $0x28] sm:$0xff] }
 0x266   :  { %490 = vmatpush1.bf16.msra.mxu0 %v4120_v13  ;;  %531 = vmatpush1.bf16.msra.mxu1 %v4122_v14  ;;  %v362_v40 = vunpack.c.l.bf16 %v360_v0  ;;  %v364_v1 = vunpack.c.l.bf16 %v361_v37  ;;  %v363_v58 = vunpack.c.h.bf16 %v360_v0 }
 0x267   :  { %v4331_v63 = vsel %vm3389_vm0, %v2062_v61, %v2860_v36  ;;  %491 = vmatprep.subr.bf16.mxu0 %v4124_v15  ;;  %532 = vmatprep.subr.bf16.mxu1 %v4126_v16  ;;  %v365_v61 = vunpack.c.h.bf16 %v361_v37 }
 0x26a   :  { %492 = vmatpush1.bf16.msra.mxu0 %v4132_v17  ;;  %533 = vmatpush1.bf16.msra.mxu1 %v4134_v18 }
 0x26b   :  { %493 = vmatprep.subr.bf16.mxu0 %v4136_v19  ;;  %534 = vmatprep.subr.bf16.mxu1 %v4138_v20 }
 0x26e   :  { %494 = vmatpush1.bf16.msra.mxu0 %v4144_v21  ;;  %535 = vmatpush1.bf16.msra.mxu1 %v4146_v22 }
 0x26f   :  { %495 = vmatprep.subr.bf16.mxu0 %v4148_v23  ;;  %536 = vmatprep.subr.bf16.mxu1 %v4150_v24 }
 0x272   :  { %496 = vmatpush1.bf16.msra.mxu0 %v4156_v25  ;;  %537 = vmatpush1.bf16.msra.mxu1 %v4158_v26 }
 0x273   :  { %497 = vmatprep.subr.bf16.mxu0 %v4160_v27  ;;  %538 = vmatprep.subr.bf16.mxu1 %v4162_v28 }
 0x276   :  { %498 = vmatpush1.bf16.msra.mxu0 %v4168_v29  ;;  %539 = vmatpush1.bf16.msra.mxu1 %v4170_v30 }
 0x277   :  { %499 = vmatprep.subr.bf16.mxu0 %v4172_v31  ;;  %540 = vmatprep.subr.bf16.mxu1 %v4174_v32 }
 0x27a   :  { %500 = vmatpush1.bf16.msra.mxu0 %v4180_v33  ;;  %541 = vmatpush1.bf16.msra.mxu1 %v4182_v34 }
 0x27b   :  { %603 = vmatprep.subr.bf16.mxu0 %v4088_v2  ;;  %644 = vmatprep.subr.bf16.mxu1 %v4090_v3 }
 0x330   :  { %v401_v45 = vpop.f32.mrb[8].mxu0  ;;  %v442_v46 = vpop.f32.mrb[8].mxu1 }
 0x331   :  { %v449_v47 = vadd.f32 %v401_v45, %v362_v40  ;;  %v451_v43 = vadd.f32 %v442_v46, %v364_v1  ;;  %v403_v48 = vpop.f32.mrb[9].mxu0  ;;  %v444_v49 = vpop.f32.mrb[9].mxu1 }
 0x332   :  { %v405_v52 = vpop.f32.mrb[10].mxu0  ;;  %v446_v53 = vpop.f32.mrb[10].mxu1  ;;  %v450_v60 = vadd.f32 %v403_v48, %v363_v58  ;;  %v452_v12 = vadd.f32 %v444_v49, %v365_v61  ;;  %v5557_v61 = vmov 0  }
 0x333   :  { %v3556_v54 = vmul.f32 -1.442695, %v449_v47  ;;  %v3558_v55 = vmul.f32 -1.442695, %v451_v43  ;;  %v406_v39 = vpop.f32.mrb[11].mxu0  ;;  %v447_v57 = vpop.f32.mrb[11].mxu1 }
 0x334   :  { %v3557_v36 = vmul.f32 -1.442695, %v450_v60 }
 0x335   :  { %3649 = vpow2.f32 %v3556_v54 }
 0x336   :  { %3651 = vpow2.f32 %v3558_v55 }
 0x337   :  { %3653 = vpow2.f32 %v3557_v36 }
 0x338   :  { %3655 = vtanh.f32 %v452_v12 }
 0x33f   :  { %v3650_v3 = vpop.eup %3649 }
 0x340   :  { %v3652_v2 = vpop.eup %3651  ;;  %v462_v34 = vadd.f32 1.0, %v3650_v3 }
 0x341   :  { %v464_v40 = vadd.f32 1.0, %v3652_v2  ;;  %v3654_v1 = vpop.eup %3653 }
 0x342   :  { %3657 = vrcp.f32 %v462_v34  ;;  %v3656_v45 = vpop.eup %3655  ;;  %v463_v43 = vadd.f32 1.0, %v3654_v1 }
 0x343   :  { %3659 = vrcp.f32 %v464_v40 }
 0x344   :  { %3661 = vrcp.f32 %v463_v43 }
 0x34c   :  { %v3658_v46 = vpop.eup %3657 }
 0x34d   :  { %v3660_v47 = vpop.eup %3659  ;;  %v473_v0 = vmul.f32 %v3658_v46, %v3656_v45 }
 0x34e   :  { %v472_v52 = vmul.f32 %v3660_v47, %v4267_v50  ;;  %v3662_v37 = vpop.eup %3661 }
 0x350   :  { %v4356_v48 = vadd.f32 %v473_v0, %v472_v52 }
 0x352   :  { %3663 = vtanh.f32 %v4356_v48 }
 0x35c   :  { %v3664_v3 = vpop.eup %3663 }
 0x35d   :  { %v476_v49 = vmul.f32 %v3664_v3, %v3662_v37 }
 0x35f   :  { %v484_v2 = vpack.c.bf16 %v476_v49, %v476_v49  ;;  %v2122_v12 = vcombine.high %v476_v49, %v476_v49  ;;  %v2129_v34 = vrot.slane %v476_v49, %v4270_v51 }
 0x361   :  { %518 = vmatmul.mubr.bf16.vlgmr.msra.gmra.mrb[12].mxu0 %v484_v2  ;;  %v2136_v53 = vrot.slane %v2122_v12, %v4270_v51  ;;  %v2137_v54 = vcombine.high %v2129_v34, %v2129_v34  ;;  %v2145_v55 = vrot.slane %v2129_v34, %v4270_v51  ;;  %559 = vmatmul.mubr.bf16.vlgmr.msra.gmra.mrb[12].mxu1 %v484_v2 }
 0x362   :  { %604 = vmatpush1.bf16.msra.mxu0 %v4092_v4  ;;  %645 = vmatpush1.bf16.msra.mxu1 %v4096_v5 }
 0x363   :  { %v2138_v50 = vcombine.high %v2136_v53, %v2136_v53  ;;  %v2152_v39 = vrot.slane %v2136_v53, %v4270_v51  ;;  %v2159_v57 = vrot.slane %v2137_v54, %v4270_v51  ;;  %v2167_v58 = vcombine.high %v2145_v55, %v2145_v55  ;;  %605 = vmatprep.subr.bf16.mxu0 %v4098_v6  ;;  %v479_v53 = vld [vmem:[#allocation6 + $0x38] sm:$0xff] }
 0x364   :  { %v2872_v60 = vrot.slane %v2145_v55, %v4281_v35  ;;  %646 = vmatprep.subr.bf16.mxu1 %v4100_v7  ;;  %635 = vmatprep.mubr.bf16.mxu0 %v5557_v61  ;;  %v482_v55 = vunpack.c.l.bf16 %v479_v53 }
 0x365   :  { %v2166_v36 = vrot.slane %v2138_v50, %v4270_v51  ;;  %v2168_v40 = vcombine.high %v2152_v39, %v2152_v39  ;;  %v2169_v1 = vcombine.high %v2159_v57, %v2159_v57  ;;  %v2876_v45 = vrot.slane %v2159_v57, %v4281_v35  ;;  %676 = vmatprep.mubr.bf16.mxu1 %v5557_v61 }
 0x366   :  { %v2880_v46 = vrot.slane %v2167_v58, %v4281_v35  ;;  %v2888_v47 = vrot.slane %v2152_v39, %v4281_v35  ;;  %v4377_v43 = vsel %vm3398_vm1, %v4300_v56, %v2872_v60  ;;  %606 = vmatpush1.bf16.msra.mxu0 %v4106_v8  ;;  %647 = vmatpush1.bf16.msra.mxu1 %v4108_v9 }
 0x367   :  { %v2170_v0 = vcombine.high %v2166_v36, %v2166_v36  ;;  %v2884_v52 = vrot.slane %v2169_v1, %v4281_v35  ;;  %v2892_v37 = vrot.slane %v2166_v36, %v4281_v35  ;;  %v2896_v3 = vrot.slane %v2168_v40, %v4281_v35  ;;  %607 = vmatprep.subr.bf16.mxu0 %v4110_v10 }
 0x368   :  { %v4387_v49 = vsel %vm3398_vm1, %v4309_v62, %v2876_v45  ;;  %v4391_v56 = vsel %vm3398_vm1, %v4312_v59, %v2880_v46  ;;  %v4395_v2 = vsel %vm3398_vm1, %v4315_v41, %v2888_v47  ;;  %648 = vmatprep.subr.bf16.mxu1 %v4112_v11 }
 0x369   :  { %v2900_v12 = vrot.slane %v2170_v0, %v4281_v35  ;;  %v4401_v34 = vsel %vm3398_vm1, %v4320_v38, %v2884_v52  ;;  %v4405_v62 = vsel %vm3398_vm1, %v4323_v42, %v2892_v37  ;;  %v4409_v59 = vsel %vm3398_vm1, %v4326_v44, %v2896_v3  ;;  %v5558_v38 = vld [vmem:[#allocation21_spill] sm:$0xff]  ;;  %v5559_v42 = vld [vmem:[#allocation18_spill] sm:$0xff]  ;;  %v5560_v44 = vld [vmem:[#allocation19_spill] sm:$0xff] }
 0x36a   :  { %608 = vmatpush1.bf16.msra.mxu0 %v4120_v13  ;;  %649 = vmatpush1.bf16.msra.mxu1 %v4122_v14  ;;  %v483_v3 = vunpack.c.h.bf16 %v479_v53 }
 0x36b   :  { %v4415_v41 = vsel %vm3398_vm1, %v4331_v63, %v2900_v12  ;;  %609 = vmatprep.subr.bf16.mxu0 %v4124_v15  ;;  %650 = vmatprep.subr.bf16.mxu1 %v4126_v16  ;;  %v478_v63 = vld [vmem:[#allocation6 + $0x30] sm:$0xff] }
 0x36c   :  { %v480_v54 = vunpack.c.l.bf16 %v478_v63  ;;  %v481_v52 = vunpack.c.h.bf16 %v478_v63 }
 0x36e   :  { %610 = vmatpush1.bf16.msra.mxu0 %v4132_v17  ;;  %651 = vmatpush1.bf16.msra.mxu1 %v4134_v18 }
 0x36f   :  { %611 = vmatprep.subr.bf16.mxu0 %v4136_v19  ;;  %652 = vmatprep.subr.bf16.mxu1 %v4138_v20 }
 0x372   :  { %612 = vmatpush1.bf16.msra.mxu0 %v4144_v21  ;;  %653 = vmatpush1.bf16.msra.mxu1 %v4146_v22 }
 0x373   :  { %613 = vmatprep.subr.bf16.mxu0 %v4148_v23  ;;  %654 = vmatprep.subr.bf16.mxu1 %v4150_v24 }
 0x376   :  { %614 = vmatpush1.bf16.msra.mxu0 %v4156_v25  ;;  %655 = vmatpush1.bf16.msra.mxu1 %v4158_v26 }
 0x377   :  { %615 = vmatprep.subr.bf16.mxu0 %v4160_v27  ;;  %656 = vmatprep.subr.bf16.mxu1 %v4162_v28 }
 0x37a   :  { %616 = vmatpush1.bf16.msra.mxu0 %v4168_v29  ;;  %657 = vmatpush1.bf16.msra.mxu1 %v4170_v30 }
 0x37b   :  { %617 = vmatprep.subr.bf16.mxu0 %v4172_v31  ;;  %658 = vmatprep.subr.bf16.mxu1 %v4174_v32 }
 0x37e   :  { %618 = vmatpush1.bf16.msra.mxu0 %v4180_v33  ;;  %659 = vmatpush1.bf16.msra.mxu1 %v5558_v38 }
 0x37f   :  { %721 = vmatprep.subr.bf16.mxu0 %v5559_v42  ;;  %762 = vmatprep.subr.bf16.mxu1 %v5560_v44 }
 0x434   :  { %v519_v50 = vpop.f32.mrb[12].mxu0  ;;  %v560_v39 = vpop.f32.mrb[12].mxu1 }
 0x435   :  { %v567_v57 = vadd.f32 %v519_v50, %v480_v54  ;;  %v569_v58 = vadd.f32 %v560_v39, %v482_v55  ;;  %v521_v60 = vpop.f32.mrb[13].mxu0  ;;  %v562_v36 = vpop.f32.mrb[13].mxu1 }
 0x436   :  { %v523_v40 = vpop.f32.mrb[14].mxu0  ;;  %v564_v1 = vpop.f32.mrb[14].mxu1  ;;  %v568_v37 = vadd.f32 %v521_v60, %v481_v52  ;;  %v570_v42 = vadd.f32 %v562_v36, %v483_v3 }
 0x437   :  { %v3559_v45 = vmul.f32 -1.442695, %v567_v57  ;;  %v3561_v46 = vmul.f32 -1.442695, %v569_v58  ;;  %v524_v47 = vpop.f32.mrb[15].mxu0  ;;  %v565_v0 = vpop.f32.mrb[15].mxu1 }
 0x438   :  { %v3560_v12 = vmul.f32 -1.442695, %v568_v37 }
 0x439   :  { %3665 = vpow2.f32 %v3559_v45 }
 0x43a   :  { %3667 = vpow2.f32 %v3561_v46 }
 0x43b   :  { %3669 = vpow2.f32 %v3560_v12 }
 0x43c   :  { %3671 = vtanh.f32 %v570_v42 }
 0x443   :  { %v3666_v44 = vpop.eup %3665 }
 0x444   :  { %v3668_v38 = vpop.eup %3667  ;;  %v580_v33 = vadd.f32 1.0, %v3666_v44 }
 0x445   :  { %v582_v54 = vadd.f32 1.0, %v3668_v38  ;;  %v3670_v55 = vpop.eup %3669 }
 0x446   :  { %3673 = vrcp.f32 %v580_v33  ;;  %v3672_v50 = vpop.eup %3671  ;;  %v581_v58 = vadd.f32 1.0, %v3670_v55 }
 0x447   :  { %3675 = vrcp.f32 %v582_v54 }
 0x448   :  { %3677 = vrcp.f32 %v581_v58 }
 0x450   :  { %v3674_v39 = vpop.eup %3673 }
 0x451   :  { %v3676_v57 = vpop.eup %3675  ;;  %v591_v63 = vmul.f32 %v3674_v39, %v3672_v50 }
 0x452   :  { %v590_v40 = vmul.f32 %v3676_v57, %v4356_v48  ;;  %v3678_v53 = vpop.eup %3677 }
 0x454   :  { %v4440_v60 = vadd.f32 %v591_v63, %v590_v40 }
 0x456   :  { %3679 = vtanh.f32 %v4440_v60 }
 0x460   :  { %v3680_v36 = vpop.eup %3679 }
 0x461   :  { %v594_v1 = vmul.f32 %v3680_v36, %v3678_v53 }
 0x463   :  { %v602_v38 = vpack.c.bf16 %v594_v1, %v594_v1  ;;  %v2172_v45 = vcombine.high %v594_v1, %v594_v1  ;;  %v2179_v33 = vrot.slane %v594_v1, %v4270_v51 }
 0x465   :  { %636 = vmatmul.mubr.bf16.vlgmr.msra.gmra.mrb[16].mxu0 %v602_v38  ;;  %v2186_v46 = vrot.slane %v2172_v45, %v4270_v51  ;;  %v2187_v47 = vcombine.high %v2179_v33, %v2179_v33  ;;  %v2195_v0 = vrot.slane %v2179_v33, %v4270_v51  ;;  %677 = vmatmul.mubr.bf16.vlgmr.msra.gmra.mrb[16].mxu1 %v602_v38 }
 0x466   :  { %722 = vmatpush1.bf16.msra.mxu0 %v4092_v4  ;;  %763 = vmatpush1.bf16.msra.mxu1 %v4096_v5 }
 0x467   :  { %v2188_v48 = vcombine.high %v2186_v46, %v2186_v46  ;;  %v2202_v52 = vrot.slane %v2186_v46, %v4270_v51  ;;  %v2209_v37 = vrot.slane %v2187_v47, %v4270_v51  ;;  %v2217_v3 = vcombine.high %v2195_v0, %v2195_v0  ;;  %723 = vmatprep.subr.bf16.mxu0 %v4098_v6 }
 0x468   :  { %v2912_v12 = vrot.slane %v2195_v0, %v4281_v35  ;;  %764 = vmatprep.subr.bf16.mxu1 %v4100_v7  ;;  %753 = vmatprep.mubr.bf16.mxu0 %v5557_v61 }
 0x469   :  { %v2216_v42 = vrot.slane %v2188_v48, %v4270_v51  ;;  %v2218_v44 = vcombine.high %v2202_v52, %v2202_v52  ;;  %v2219_v4 = vcombine.high %v2209_v37, %v2209_v37  ;;  %v2916_v5 = vrot.slane %v2209_v37, %v4281_v35  ;;  %794 = vmatprep.mubr.bf16.mxu1 %v5557_v61 }
 0x46a   :  { %v2920_v54 = vrot.slane %v2217_v3, %v4281_v35  ;;  %v2928_v55 = vrot.slane %v2202_v52, %v4281_v35  ;;  %v4461_v6 = vsel %vm3407_vm2, %v4377_v43, %v2912_v12  ;;  %724 = vmatpush1.bf16.msra.mxu0 %v4106_v8  ;;  %765 = vmatpush1.bf16.msra.mxu1 %v4108_v9 }
 0x46b   :  { %v2220_v7 = vcombine.high %v2216_v42, %v2216_v42  ;;  %v2924_v50 = vrot.slane %v2219_v4, %v4281_v35  ;;  %v2932_v39 = vrot.slane %v2216_v42, %v4281_v35  ;;  %v2936_v57 = vrot.slane %v2218_v44, %v4281_v35  ;;  %725 = vmatprep.subr.bf16.mxu0 %v4110_v10 }
 0x46c   :  { %v4471_v58 = vsel %vm3407_vm2, %v4387_v49, %v2916_v5  ;;  %v4475_v43 = vsel %vm3407_vm2, %v4391_v56, %v2920_v54  ;;  %v4479_v8 = vsel %vm3407_vm2, %v4395_v2, %v2928_v55  ;;  %766 = vmatprep.subr.bf16.mxu1 %v4112_v11  ;;  %v4537_v55 = vld [vmem:[#allocation4 + $0x10] sm:$0xff] }
 0x46d   :  { %v2940_v9 = vrot.slane %v2220_v7, %v4281_v35  ;;  %v4485_v63 = vsel %vm3407_vm2, %v4401_v34, %v2924_v50  ;;  %v4489_v10 = vsel %vm3407_vm2, %v4405_v62, %v2932_v39  ;;  %v4493_v49 = vsel %vm3407_vm2, %v4409_v59, %v2936_v57 }
 0x46e   :  { %726 = vmatpush1.bf16.msra.mxu0 %v4120_v13  ;;  %767 = vmatpush1.bf16.msra.mxu1 %v4122_v14  ;;  %v5561_v13 = vld [vmem:[#allocation20_spill] sm:$0xff]  ;;  %v5562_v14 = vld [vmem:[#allocation21_spill] sm:$0xff] }
 0x46f   :  { %v4499_v11 = vsel %vm3407_vm2, %v4415_v41, %v2940_v9  ;;  %727 = vmatprep.subr.bf16.mxu0 %v4124_v15  ;;  %768 = vmatprep.subr.bf16.mxu1 %v4126_v16  ;;  %v4521_v15 = vld [vmem:[#allocation4 + $0x8] sm:$0xff]  ;;  %v4524_v16 = vld [vmem:[#allocation4 + $0x18] sm:$0xff] }
 0x470   :  { %5563 = vst [vmem:[#allocation18_spill] sm:$0xff] %v4521_v15  ;;  %5564 = vst [vmem:[#allocation19_spill] sm:$0xff] %v4524_v16  ;;  %v4542_v9 = vld [vmem:[#allocation4 + $0x28] sm:$0xff] }
 0x472   :  { %728 = vmatpush1.bf16.msra.mxu0 %v4132_v17  ;;  %769 = vmatpush1.bf16.msra.mxu1 %v4134_v18  ;;  %v596_v17 = vld [vmem:[#allocation6 + $0x40] sm:$0xff]  ;;  %v597_v18 = vld [vmem:[#allocation6 + $0x48] sm:$0xff] }
 0x473   :  { %729 = vmatprep.subr.bf16.mxu0 %v4136_v19  ;;  %770 = vmatprep.subr.bf16.mxu1 %v4138_v20  ;;  %v598_v19 = vunpack.c.l.bf16 %v596_v17  ;;  %v600_v20 = vunpack.c.l.bf16 %v597_v18  ;;  %v599_v56 = vunpack.c.h.bf16 %v596_v17  ;;  %v601_v34 = vunpack.c.h.bf16 %v597_v18 }
 0x476   :  { %730 = vmatpush1.bf16.msra.mxu0 %v4144_v21  ;;  %771 = vmatpush1.bf16.msra.mxu1 %v4146_v22 }
 0x477   :  { %731 = vmatprep.subr.bf16.mxu0 %v4148_v23  ;;  %772 = vmatprep.subr.bf16.mxu1 %v4150_v24 }
 0x47a   :  { %732 = vmatpush1.bf16.msra.mxu0 %v4156_v25  ;;  %773 = vmatpush1.bf16.msra.mxu1 %v4158_v26 }
 0x47b   :  { %733 = vmatprep.subr.bf16.mxu0 %v4160_v27  ;;  %774 = vmatprep.subr.bf16.mxu1 %v4162_v28 }
 0x47e   :  { %734 = vmatpush1.bf16.msra.mxu0 %v4168_v29  ;;  %775 = vmatpush1.bf16.msra.mxu1 %v4170_v30 }
 0x47f   :  { %735 = vmatprep.subr.bf16.mxu0 %v4172_v31  ;;  %776 = vmatprep.subr.bf16.mxu1 %v4174_v32 }
 0x482   :  { %736 = vmatpush1.bf16.msra.mxu0 %v5561_v13  ;;  %777 = vmatpush1.bf16.msra.mxu1 %v5562_v14  ;;  %v4546_v14 = vld [vmem:[#allocation4 + $0x38] sm:$0xff] }
 0x483   :  { %839 = vmatprep.subr.bf16.mxu0 %v4521_v15  ;;  %880 = vmatprep.subr.bf16.mxu1 %v4524_v16 }
 0x538   :  { %v637_v21 = vpop.f32.mrb[16].mxu0  ;;  %v678_v22 = vpop.f32.mrb[16].mxu1 }
 0x539   :  { %v685_v23 = vadd.f32 %v637_v21, %v598_v19  ;;  %v687_v24 = vadd.f32 %v678_v22, %v600_v20  ;;  %v639_v25 = vpop.f32.mrb[17].mxu0  ;;  %v680_v26 = vpop.f32.mrb[17].mxu1 }
 0x53a   :  { %v641_v27 = vpop.f32.mrb[18].mxu0  ;;  %v682_v28 = vpop.f32.mrb[18].mxu1  ;;  %v686_v2 = vadd.f32 %v639_v25, %v599_v56  ;;  %v688_v59 = vadd.f32 %v680_v26, %v601_v34  ;;  %v4562_v25 = vld [vmem:[#allocation4 + $0x30] sm:$0xff]  ;;  %v4583_v56 = vld [vmem:[#allocation4 + $0x58] sm:$0xff] }
 0x53b   :  { %v3562_v29 = vmul.f32 -1.442695, %v685_v23  ;;  %v3564_v30 = vmul.f32 -1.442695, %v687_v24  ;;  %v642_v31 = vpop.f32.mrb[19].mxu0  ;;  %v683_v32 = vpop.f32.mrb[19].mxu1 }
 0x53c   :  { %v3563_v62 = vmul.f32 -1.442695, %v686_v2  ;;  %v4559_v24 = vld [vmem:[#allocation4 + $0x20] sm:$0xff] }
 0x53d   :  { %3681 = vpow2.f32 %v3562_v29 }
 0x53e   :  { %3683 = vpow2.f32 %v3564_v30  ;;  %v4568_v30 = vld [vmem:[#allocation4 + $0x48] sm:$0xff] }
 0x53f   :  { %3685 = vpow2.f32 %v3563_v62  ;;  %v4602_v62 = vld [vmem:[#allocation4 + $0x50] sm:$0xff] }
 0x540   :  { %3687 = vtanh.f32 %v688_v59  ;;  %v4609_v59 = vld [vmem:[#allocation4 + $0x68] sm:$0xff] }
 0x547   :  { %v3682_v41 = vpop.eup %3681 }
 0x548   :  { %v3684_v40 = vpop.eup %3683  ;;  %v698_v53 = vadd.f32 1.0, %v3682_v41  ;;  %v4618_v41 = vld [vmem:[#allocation4 + $0x70] sm:$0xff] }
 0x549   :  { %v700_v36 = vadd.f32 1.0, %v3684_v40  ;;  %v3686_v1 = vpop.eup %3685  ;;  %v4621_v40 = vld [vmem:[#allocation4 + $0x88] sm:$0xff] }
 0x54a   :  { %3689 = vrcp.f32 %v698_v53  ;;  %v3688_v38 = vpop.eup %3687  ;;  %v699_v46 = vadd.f32 1.0, %v3686_v1  ;;  %v4627_v53 = vld [vmem:[#allocation4 + $0x80] sm:$0xff]  ;;  %v4633_v1 = vld [vmem:[#allocation4 + $0xa8] sm:$0xff] }
 0x54b   :  { %3691 = vrcp.f32 %v700_v36  ;;  %v4630_v36 = vld [vmem:[#allocation4 + $0x90] sm:$0xff] }
 0x54c   :  { %3693 = vrcp.f32 %v699_v46  ;;  %v4645_v46 = vld [vmem:[#allocation4 + $0xc8] sm:$0xff] }
 0x554   :  { %v3690_v45 = vpop.eup %3689 }
 0x555   :  { %v3692_v33 = vpop.eup %3691  ;;  %v709_v47 = vmul.f32 %v3690_v45, %v3688_v38  ;;  %v4636_v38 = vld [vmem:[#allocation4 + $0xb8] sm:$0xff]  ;;  %v4639_v45 = vld [vmem:[#allocation4 + $0xa0] sm:$0xff] }
 0x556   :  { %v708_v0 = vmul.f32 %v3692_v33, %v4440_v60  ;;  %v3694_v52 = vpop.eup %3693  ;;  %v4534_v60 = vld [vmem:[#allocation4] sm:$0xff]  ;;  %v4642_v33 = vld [vmem:[#allocation4 + $0xb0] sm:$0xff] }
 0x558   :  { %v4528_v48 = vadd.f32 %v709_v47, %v708_v0  ;;  %v4648_v47 = vld [vmem:[#allocation4 + $0xd8] sm:$0xff]  ;;  %v4651_v0 = vld [vmem:[#allocation4 + $0xc0] sm:$0xff] }
 0x55a   :  { %3695 = vtanh.f32 %v4528_v48 }
 0x564   :  { %v3696_v37 = vpop.eup %3695 }
 0x565   :  { %v712_v3 = vmul.f32 %v3696_v37, %v3694_v52  ;;  %v4654_v52 = vld [vmem:[#allocation4 + $0xd0] sm:$0xff]  ;;  %v4657_v37 = vld [vmem:[#allocation4 + $0xe8] sm:$0xff] }
 0x567   :  { %v720_v12 = vpack.c.bf16 %v712_v3, %v712_v3  ;;  %v2222_v42 = vcombine.high %v712_v3, %v712_v3  ;;  %v2229_v44 = vrot.slane %v712_v3, %v4270_v51  ;;  %v4660_v3 = vld [vmem:[#allocation4 + $0xf8] sm:$0xff] }
 0x569   :  { %754 = vmatmul.mubr.bf16.vlgmr.msra.gmra.mrb[20].mxu0 %v720_v12  ;;  %v2236_v4 = vrot.slane %v2222_v42, %v4270_v51  ;;  %v2237_v5 = vcombine.high %v2229_v44, %v2229_v44  ;;  %v2245_v54 = vrot.slane %v2229_v44, %v4270_v51  ;;  %795 = vmatmul.mubr.bf16.vlgmr.msra.gmra.mrb[20].mxu1 %v720_v12  ;;  %v4663_v12 = vld [vmem:[#allocation4 + $0xe0] sm:$0xff]  ;;  %v4666_v42 = vld [vmem:[#allocation4 + $0xf0] sm:$0xff] }
 0x56a   :  { %840 = vmatpush1.bf16.msra.mxu0 %v4534_v60  ;;  %881 = vmatpush1.bf16.msra.mxu1 %v4537_v55  ;;  %5565 = vst [vmem:[#allocation20_spill] sm:$0xff] %v4663_v12  ;;  %5566 = vst [vmem:[#allocation21_spill] sm:$0xff] %v4666_v42  ;;  %v714_v44 = vld [vmem:[#allocation6 + $0x50] sm:$0xff] }
 0x56b   :  { %v2238_v7 = vcombine.high %v2236_v4, %v2236_v4  ;;  %v2252_v50 = vrot.slane %v2236_v4, %v4270_v51  ;;  %v2259_v39 = vrot.slane %v2237_v5, %v4270_v51  ;;  %v2267_v57 = vcombine.high %v2245_v54, %v2245_v54  ;;  %841 = vmatprep.subr.bf16.mxu0 %v4542_v9  ;;  %v715_v4 = vld [vmem:[#allocation6 + $0x58] sm:$0xff] }
 0x56c   :  { %v2952_v13 = vrot.slane %v2245_v54, %v4281_v35  ;;  %882 = vmatprep.subr.bf16.mxu1 %v4546_v14  ;;  %871 = vmatprep.mubr.bf16.mxu0 %v5557_v61  ;;  %v716_v5 = vunpack.c.l.bf16 %v714_v44  ;;  %v718_v54 = vunpack.c.l.bf16 %v715_v4 }
 0x56d   :  { %v2266_v17 = vrot.slane %v2238_v7, %v4270_v51  ;;  %v2268_v18 = vcombine.high %v2252_v50, %v2252_v50  ;;  %v2269_v19 = vcombine.high %v2259_v39, %v2259_v39  ;;  %v2956_v20 = vrot.slane %v2259_v39, %v4281_v35  ;;  %912 = vmatprep.mubr.bf16.mxu1 %v5557_v61 }
 0x56e   :  { %v2960_v21 = vrot.slane %v2267_v57, %v4281_v35  ;;  %v2968_v22 = vrot.slane %v2252_v50, %v4281_v35  ;;  %v4557_v23 = vsel %vm3416_vm3, %v4461_v6, %v2952_v13  ;;  %842 = vmatpush1.bf16.msra.mxu0 %v4559_v24  ;;  %883 = vmatpush1.bf16.msra.mxu1 %v4562_v25 }
 0x56f   :  { %v2270_v26 = vcombine.high %v2266_v17, %v2266_v17  ;;  %v2964_v27 = vrot.slane %v2269_v19, %v4281_v35  ;;  %v2972_v28 = vrot.slane %v2266_v17, %v4281_v35  ;;  %v2976_v29 = vrot.slane %v2268_v18, %v4281_v35  ;;  %843 = vmatprep.subr.bf16.mxu0 %v4568_v30 }
 0x570   :  { %v4573_v6 = vsel %vm3416_vm3, %v4471_v58, %v2956_v20  ;;  %v4577_v31 = vsel %vm3416_vm3, %v4475_v43, %v2960_v21  ;;  %v4581_v32 = vsel %vm3416_vm3, %v4479_v8, %v2968_v22  ;;  %884 = vmatprep.subr.bf16.mxu1 %v4583_v56  ;;  %v4599_v8 = vld [vmem:[#allocation4 + $0x40] sm:$0xff] }
 0x571   :  { %v2980_v2 = vrot.slane %v2270_v26, %v4281_v35  ;;  %v4589_v34 = vsel %vm3416_vm3, %v4485_v63, %v2964_v27  ;;  %v4593_v58 = vsel %vm3416_vm3, %v4489_v10, %v2972_v28  ;;  %v4597_v43 = vsel %vm3416_vm3, %v4493_v49, %v2976_v29  ;;  %v4612_v10 = vld [vmem:[#allocation4 + $0x78] sm:$0xff]  ;;  %v4615_v49 = vld [vmem:[#allocation4 + $0x60] sm:$0xff] }
 0x572   :  { %844 = vmatpush1.bf16.msra.mxu0 %v4599_v8  ;;  %885 = vmatpush1.bf16.msra.mxu1 %v4602_v62  ;;  %v717_v27 = vunpack.c.h.bf16 %v714_v44  ;;  %v719_v29 = vunpack.c.h.bf16 %v715_v4 }
 0x573   :  { %v4607_v63 = vsel %vm3416_vm3, %v4499_v11, %v2980_v2  ;;  %845 = vmatprep.subr.bf16.mxu0 %v4609_v59  ;;  %886 = vmatprep.subr.bf16.mxu1 %v4612_v10  ;;  %v4624_v11 = vld [vmem:[#allocation4 + $0x98] sm:$0xff] }
 0x576   :  { %846 = vmatpush1.bf16.msra.mxu0 %v4615_v49  ;;  %887 = vmatpush1.bf16.msra.mxu1 %v4618_v41 }
 0x577   :  { %847 = vmatprep.subr.bf16.mxu0 %v4621_v40  ;;  %888 = vmatprep.subr.bf16.mxu1 %v4624_v11 }
 0x57a   :  { %848 = vmatpush1.bf16.msra.mxu0 %v4627_v53  ;;  %889 = vmatpush1.bf16.msra.mxu1 %v4630_v36 }
 0x57b   :  { %849 = vmatprep.subr.bf16.mxu0 %v4633_v1  ;;  %890 = vmatprep.subr.bf16.mxu1 %v4636_v38 }
 0x57e   :  { %850 = vmatpush1.bf16.msra.mxu0 %v4639_v45  ;;  %891 = vmatpush1.bf16.msra.mxu1 %v4642_v33 }
 0x57f   :  { %851 = vmatprep.subr.bf16.mxu0 %v4645_v46  ;;  %892 = vmatprep.subr.bf16.mxu1 %v4648_v47 }
 0x582   :  { %852 = vmatpush1.bf16.msra.mxu0 %v4651_v0  ;;  %893 = vmatpush1.bf16.msra.mxu1 %v4654_v52 }
 0x583   :  { %853 = vmatprep.subr.bf16.mxu0 %v4657_v37  ;;  %894 = vmatprep.subr.bf16.mxu1 %v4660_v3 }
 0x586   :  { %854 = vmatpush1.bf16.msra.mxu0 %v4663_v12  ;;  %895 = vmatpush1.bf16.msra.mxu1 %v4666_v42 }
 0x587   :  { %957 = vmatprep.subr.bf16.mxu0 %v4521_v15  ;;  %998 = vmatprep.subr.bf16.mxu1 %v4524_v16 }
 0x63c   :  { %v755_v7 = vpop.f32.mrb[20].mxu0  ;;  %v796_v50 = vpop.f32.mrb[20].mxu1 }
 0x63d   :  { %v803_v39 = vadd.f32 %v755_v7, %v716_v5  ;;  %v805_v57 = vadd.f32 %v796_v50, %v718_v54  ;;  %v757_v13 = vpop.f32.mrb[21].mxu0  ;;  %v798_v17 = vpop.f32.mrb[21].mxu1 }
 0x63e   :  { %v759_v18 = vpop.f32.mrb[22].mxu0  ;;  %v800_v19 = vpop.f32.mrb[22].mxu1  ;;  %v804_v28 = vadd.f32 %v757_v13, %v717_v27  ;;  %v806_v16 = vadd.f32 %v798_v17, %v719_v29 }
 0x63f   :  { %v3565_v20 = vmul.f32 -1.442695, %v803_v39  ;;  %v3567_v21 = vmul.f32 -1.442695, %v805_v57  ;;  %v760_v22 = vpop.f32.mrb[23].mxu0  ;;  %v801_v26 = vpop.f32.mrb[23].mxu1 }
 0x640   :  { %v3566_v2 = vmul.f32 -1.442695, %v804_v28 }
 0x641   :  { %3697 = vpow2.f32 %v3565_v20 }
 0x642   :  { %3699 = vpow2.f32 %v3567_v21 }
 0x643   :  { %3701 = vpow2.f32 %v3566_v2 }
 0x644   :  { %3703 = vtanh.f32 %v806_v16 }
 0x64b   :  { %v3698_v15 = vpop.eup %3697 }
 0x64c   :  { %v3700_v42 = vpop.eup %3699  ;;  %v816_v12 = vadd.f32 1.0, %v3698_v15 }
 0x64d   :  { %v818_v5 = vadd.f32 1.0, %v3700_v42  ;;  %v3702_v54 = vpop.eup %3701 }
 0x64e   :  { %3705 = vrcp.f32 %v816_v12  ;;  %v3704_v7 = vpop.eup %3703  ;;  %v817_v57 = vadd.f32 1.0, %v3702_v54 }
 0x64f   :  { %3707 = vrcp.f32 %v818_v5 }
 0x650   :  { %3709 = vrcp.f32 %v817_v57 }
 0x658   :  { %v3706_v50 = vpop.eup %3705 }
 0x659   :  { %v3708_v39 = vpop.eup %3707  ;;  %v827_v44 = vmul.f32 %v3706_v50, %v3704_v7 }
 0x65a   :  { %v826_v18 = vmul.f32 %v3708_v39, %v4528_v48  ;;  %v3710_v4 = vpop.eup %3709 }
 0x65c   :  { %v4672_v13 = vadd.f32 %v827_v44, %v826_v18 }
 0x65e   :  { %3711 = vtanh.f32 %v4672_v13 }
 0x668   :  { %v3712_v15 = vpop.eup %3711 }
 0x669   :  { %v830_v17 = vmul.f32 %v3712_v15, %v3710_v4 }
 0x66b   :  { %v838_v42 = vpack.c.bf16 %v830_v17, %v830_v17  ;;  %v2272_v16 = vcombine.high %v830_v17, %v830_v17  ;;  %v2279_v12 = vrot.slane %v830_v17, %v4270_v51 }
 0x66d   :  { %872 = vmatmul.mubr.bf16.vlgmr.msra.gmra.mrb[24].mxu0 %v838_v42  ;;  %v2286_v19 = vrot.slane %v2272_v16, %v4270_v51  ;;  %v2287_v20 = vcombine.high %v2279_v12, %v2279_v12  ;;  %v2295_v21 = vrot.slane %v2279_v12, %v4270_v51  ;;  %913 = vmatmul.mubr.bf16.vlgmr.msra.gmra.mrb[24].mxu1 %v838_v42  ;;  %v832_v12 = vld [vmem:[#allocation6 + $0x60] sm:$0xff] }
 0x66e   :  { %958 = vmatpush1.bf16.msra.mxu0 %v4534_v60  ;;  %999 = vmatpush1.bf16.msra.mxu1 %v4537_v55 }
 0x66f   :  { %v2288_v48 = vcombine.high %v2286_v19, %v2286_v19  ;;  %v2302_v22 = vrot.slane %v2286_v19, %v4270_v51  ;;  %v2309_v26 = vrot.slane %v2287_v20, %v4270_v51  ;;  %v2317_v27 = vcombine.high %v2295_v21, %v2295_v21  ;;  %959 = vmatprep.subr.bf16.mxu0 %v4542_v9  ;;  %v833_v19 = vld [vmem:[#allocation6 + $0x68] sm:$0xff] }
 0x670   :  { %v2992_v28 = vrot.slane %v2295_v21, %v4281_v35  ;;  %1000 = vmatprep.subr.bf16.mxu1 %v4546_v14  ;;  %989 = vmatprep.mubr.bf16.mxu0 %v5557_v61  ;;  %v834_v20 = vunpack.c.l.bf16 %v832_v12  ;;  %v836_v21 = vunpack.c.l.bf16 %v833_v19 }
 0x671   :  { %v2316_v29 = vrot.slane %v2288_v48, %v4270_v51  ;;  %v2318_v2 = vcombine.high %v2302_v22, %v2302_v22  ;;  %v2319_v5 = vcombine.high %v2309_v26, %v2309_v26  ;;  %v2996_v54 = vrot.slane %v2309_v26, %v4281_v35  ;;  %1030 = vmatprep.mubr.bf16.mxu1 %v5557_v61 }
 0x672   :  { %v3000_v7 = vrot.slane %v2317_v27, %v4281_v35  ;;  %v3008_v50 = vrot.slane %v2302_v22, %v4281_v35  ;;  %v4693_v39 = vsel %vm3425_vm4, %v4557_v23, %v2992_v28  ;;  %960 = vmatpush1.bf16.msra.mxu0 %v4559_v24  ;;  %1001 = vmatpush1.bf16.msra.mxu1 %v4562_v25 }
 0x673   :  { %v2320_v57 = vcombine.high %v2316_v29, %v2316_v29  ;;  %v3004_v44 = vrot.slane %v2319_v5, %v4281_v35  ;;  %v3012_v18 = vrot.slane %v2316_v29, %v4281_v35  ;;  %v3016_v4 = vrot.slane %v2318_v2, %v4281_v35  ;;  %961 = vmatprep.subr.bf16.mxu0 %v4568_v30 }
 0x674   :  { %v4703_v15 = vsel %vm3425_vm4, %v4573_v6, %v2996_v54  ;;  %v4707_v23 = vsel %vm3425_vm4, %v4577_v31, %v3000_v7  ;;  %v4711_v17 = vsel %vm3425_vm4, %v4581_v32, %v3008_v50  ;;  %1002 = vmatprep.subr.bf16.mxu1 %v4583_v56 }
 0x675   :  { %v3020_v42 = vrot.slane %v2320_v57, %v4281_v35  ;;  %v4717_v16 = vsel %vm3425_vm4, %v4589_v34, %v3004_v44  ;;  %v4721_v6 = vsel %vm3425_vm4, %v4593_v58, %v3012_v18  ;;  %v4725_v31 = vsel %vm3425_vm4, %v4597_v43, %v3016_v4  ;;  %v5567_v34 = vld [vmem:[#allocation20_spill] sm:$0xff]  ;;  %v5568_v58 = vld [vmem:[#allocation21_spill] sm:$0xff]  ;;  %v5569_v43 = vld [vmem:[#allocation18_spill] sm:$0xff] }
 0x676   :  { %962 = vmatpush1.bf16.msra.mxu0 %v4599_v8  ;;  %1003 = vmatpush1.bf16.msra.mxu1 %v4602_v62  ;;  %v835_v44 = vunpack.c.h.bf16 %v832_v12  ;;  %v837_v4 = vunpack.c.h.bf16 %v833_v19 }
 0x677   :  { %v4731_v32 = vsel %vm3425_vm4, %v4607_v63, %v3020_v42  ;;  %963 = vmatprep.subr.bf16.mxu0 %v4609_v59  ;;  %1004 = vmatprep.subr.bf16.mxu1 %v4612_v10  ;;  %v5570_v63 = vld [vmem:[#allocation19_spill] sm:$0xff] }
 0x67a   :  { %964 = vmatpush1.bf16.msra.mxu0 %v4615_v49  ;;  %1005 = vmatpush1.bf16.msra.mxu1 %v4618_v41 }
 0x67b   :  { %965 = vmatprep.subr.bf16.mxu0 %v4621_v40  ;;  %1006 = vmatprep.subr.bf16.mxu1 %v4624_v11 }
 0x67e   :  { %966 = vmatpush1.bf16.msra.mxu0 %v4627_v53  ;;  %1007 = vmatpush1.bf16.msra.mxu1 %v4630_v36 }
 0x67f   :  { %967 = vmatprep.subr.bf16.mxu0 %v4633_v1  ;;  %1008 = vmatprep.subr.bf16.mxu1 %v4636_v38 }
 0x682   :  { %968 = vmatpush1.bf16.msra.mxu0 %v4639_v45  ;;  %1009 = vmatpush1.bf16.msra.mxu1 %v4642_v33 }
 0x683   :  { %969 = vmatprep.subr.bf16.mxu0 %v4645_v46  ;;  %1010 = vmatprep.subr.bf16.mxu1 %v4648_v47 }
 0x686   :  { %970 = vmatpush1.bf16.msra.mxu0 %v4651_v0  ;;  %1011 = vmatpush1.bf16.msra.mxu1 %v4654_v52 }
 0x687   :  { %971 = vmatprep.subr.bf16.mxu0 %v4657_v37  ;;  %1012 = vmatprep.subr.bf16.mxu1 %v4660_v3 }
 0x68a   :  { %972 = vmatpush1.bf16.msra.mxu0 %v5567_v34  ;;  %1013 = vmatpush1.bf16.msra.mxu1 %v5568_v58 }
 0x68b   :  { %1075 = vmatprep.subr.bf16.mxu0 %v5569_v43  ;;  %1116 = vmatprep.subr.bf16.mxu1 %v5570_v63 }
 0x740   :  { %v873_v48 = vpop.f32.mrb[24].mxu0  ;;  %v914_v22 = vpop.f32.mrb[24].mxu1 }
 0x741   :  { %v921_v26 = vadd.f32 %v873_v48, %v834_v20  ;;  %v923_v27 = vadd.f32 %v914_v22, %v836_v21  ;;  %v875_v28 = vpop.f32.mrb[25].mxu0  ;;  %v916_v29 = vpop.f32.mrb[25].mxu1 }
 0x742   :  { %v877_v2 = vpop.f32.mrb[26].mxu0  ;;  %v918_v5 = vpop.f32.mrb[26].mxu1  ;;  %v922_v18 = vadd.f32 %v875_v28, %v835_v44  ;;  %v924_v63 = vadd.f32 %v916_v29, %v837_v4 }
 0x743   :  { %v3568_v54 = vmul.f32 -1.442695, %v921_v26  ;;  %v3570_v7 = vmul.f32 -1.442695, %v923_v27  ;;  %v878_v50 = vpop.f32.mrb[27].mxu0  ;;  %v919_v57 = vpop.f32.mrb[27].mxu1 }
 0x744   :  { %v3569_v42 = vmul.f32 -1.442695, %v922_v18 }
 0x745   :  { %3713 = vpow2.f32 %v3568_v54 }
 0x746   :  { %3715 = vpow2.f32 %v3570_v7 }
 0x747   :  { %3717 = vpow2.f32 %v3569_v42 }
 0x748   :  { %3719 = vtanh.f32 %v924_v63 }
 0x74f   :  { %v3714_v43 = vpop.eup %3713 }
 0x750   :  { %v3716_v58 = vpop.eup %3715  ;;  %v934_v34 = vadd.f32 1.0, %v3714_v43 }
 0x751   :  { %v936_v20 = vadd.f32 1.0, %v3716_v58  ;;  %v3718_v21 = vpop.eup %3717 }
 0x752   :  { %3721 = vrcp.f32 %v934_v34  ;;  %v3720_v48 = vpop.eup %3719  ;;  %v935_v27 = vadd.f32 1.0, %v3718_v21 }
 0x753   :  { %3723 = vrcp.f32 %v936_v20 }
 0x754   :  { %3725 = vrcp.f32 %v935_v27 }
 0x75c   :  { %v3722_v22 = vpop.eup %3721 }
 0x75d   :  { %v3724_v26 = vpop.eup %3723  ;;  %v945_v12 = vmul.f32 %v3722_v22, %v3720_v48 }
 0x75e   :  { %v944_v2 = vmul.f32 %v3724_v26, %v4672_v13  ;;  %v3726_v19 = vpop.eup %3725 }
 0x760   :  { %v4756_v28 = vadd.f32 %v945_v12, %v944_v2 }
 0x762   :  { %3727 = vtanh.f32 %v4756_v28 }
 0x76c   :  { %v3728_v43 = vpop.eup %3727 }
 0x76d   :  { %v948_v29 = vmul.f32 %v3728_v43, %v3726_v19 }
 0x76f   :  { %v956_v58 = vpack.c.bf16 %v948_v29, %v948_v29  ;;  %v2322_v63 = vcombine.high %v948_v29, %v948_v29  ;;  %v2329_v34 = vrot.slane %v948_v29, %v4270_v51 }
 0x771   :  { %990 = vmatmul.mubr.bf16.vlgmr.msra.gmra.mrb[28].mxu0 %v956_v58  ;;  %v2336_v5 = vrot.slane %v2322_v63, %v4270_v51  ;;  %v2337_v54 = vcombine.high %v2329_v34, %v2329_v34  ;;  %v2345_v7 = vrot.slane %v2329_v34, %v4270_v51  ;;  %1031 = vmatmul.mubr.bf16.vlgmr.msra.gmra.mrb[28].mxu1 %v956_v58  ;;  %v950_v34 = vld [vmem:[#allocation6 + $0x70] sm:$0xff] }
 0x772   :  { %1076 = vmatpush1.bf16.msra.mxu0 %v4534_v60  ;;  %1117 = vmatpush1.bf16.msra.mxu1 %v4537_v55 }
 0x773   :  { %v2338_v13 = vcombine.high %v2336_v5, %v2336_v5  ;;  %v2352_v50 = vrot.slane %v2336_v5, %v4270_v51  ;;  %v2359_v57 = vrot.slane %v2337_v54, %v4270_v51  ;;  %v2367_v44 = vcombine.high %v2345_v7, %v2345_v7  ;;  %1077 = vmatprep.subr.bf16.mxu0 %v4542_v9  ;;  %v951_v5 = vld [vmem:[#allocation6 + $0x78] sm:$0xff] }
 0x774   :  { %v3032_v18 = vrot.slane %v2345_v7, %v4281_v35  ;;  %1118 = vmatprep.subr.bf16.mxu1 %v4546_v14  ;;  %1107 = vmatprep.mubr.bf16.mxu0 %v5557_v61  ;;  %v952_v54 = vunpack.c.l.bf16 %v950_v34  ;;  %v954_v7 = vunpack.c.l.bf16 %v951_v5 }
 0x775   :  { %v2366_v4 = vrot.slane %v2338_v13, %v4270_v51  ;;  %v2368_v42 = vcombine.high %v2352_v50, %v2352_v50  ;;  %v2369_v20 = vcombine.high %v2359_v57, %v2359_v57  ;;  %v3036_v21 = vrot.slane %v2359_v57, %v4281_v35  ;;  %1148 = vmatprep.mubr.bf16.mxu1 %v5557_v61 }
 0x776   :  { %v3040_v48 = vrot.slane %v2367_v44, %v4281_v35  ;;  %v3048_v22 = vrot.slane %v2352_v50, %v4281_v35  ;;  %v4777_v26 = vsel %vm3434_vm5, %v4693_v39, %v3032_v18  ;;  %1078 = vmatpush1.bf16.msra.mxu0 %v4559_v24  ;;  %1119 = vmatpush1.bf16.msra.mxu1 %v4562_v25 }
 0x777   :  { %v2370_v27 = vcombine.high %v2366_v4, %v2366_v4  ;;  %v3044_v12 = vrot.slane %v2369_v20, %v4281_v35  ;;  %v3052_v2 = vrot.slane %v2366_v4, %v4281_v35  ;;  %v3056_v19 = vrot.slane %v2368_v42, %v4281_v35  ;;  %1079 = vmatprep.subr.bf16.mxu0 %v4568_v30 }
 0x778   :  { %v4787_v43 = vsel %vm3434_vm5, %v4703_v15, %v3036_v21  ;;  %v4791_v39 = vsel %vm3434_vm5, %v4707_v23, %v3040_v48  ;;  %v4795_v29 = vsel %vm3434_vm5, %v4711_v17, %v3048_v22  ;;  %1120 = vmatprep.subr.bf16.mxu1 %v4583_v56 }
 0x779   :  { %v3060_v58 = vrot.slane %v2370_v27, %v4281_v35  ;;  %v4801_v63 = vsel %vm3434_vm5, %v4717_v16, %v3044_v12  ;;  %v4805_v15 = vsel %vm3434_vm5, %v4721_v6, %v3052_v2  ;;  %v4809_v23 = vsel %vm3434_vm5, %v4725_v31, %v3056_v19  ;;  %v5571_v16 = vld [vmem:[#allocation20_spill] sm:$0xff]  ;;  %v5572_v6 = vld [vmem:[#allocation21_spill] sm:$0xff]  ;;  %v5573_v31 = vld [vmem:[#allocation18_spill] sm:$0xff] }
 0x77a   :  { %1080 = vmatpush1.bf16.msra.mxu0 %v4599_v8  ;;  %1121 = vmatpush1.bf16.msra.mxu1 %v4602_v62  ;;  %v953_v12 = vunpack.c.h.bf16 %v950_v34  ;;  %v955_v19 = vunpack.c.h.bf16 %v951_v5 }
 0x77b   :  { %v4815_v17 = vsel %vm3434_vm5, %v4731_v32, %v3060_v58  ;;  %1081 = vmatprep.subr.bf16.mxu0 %v4609_v59  ;;  %1122 = vmatprep.subr.bf16.mxu1 %v4612_v10  ;;  %v5574_v32 = vld [vmem:[#allocation19_spill] sm:$0xff] }
 0x77e   :  { %1082 = vmatpush1.bf16.msra.mxu0 %v4615_v49  ;;  %1123 = vmatpush1.bf16.msra.mxu1 %v4618_v41 }
 0x77f   :  { %1083 = vmatprep.subr.bf16.mxu0 %v4621_v40  ;;  %1124 = vmatprep.subr.bf16.mxu1 %v4624_v11 }
 0x782   :  { %1084 = vmatpush1.bf16.msra.mxu0 %v4627_v53  ;;  %1125 = vmatpush1.bf16.msra.mxu1 %v4630_v36 }
 0x783   :  { %1085 = vmatprep.subr.bf16.mxu0 %v4633_v1  ;;  %1126 = vmatprep.subr.bf16.mxu1 %v4636_v38 }
 0x786   :  { %1086 = vmatpush1.bf16.msra.mxu0 %v4639_v45  ;;  %1127 = vmatpush1.bf16.msra.mxu1 %v4642_v33 }
 0x787   :  { %1087 = vmatprep.subr.bf16.mxu0 %v4645_v46  ;;  %1128 = vmatprep.subr.bf16.mxu1 %v4648_v47 }
 0x78a   :  { %1088 = vmatpush1.bf16.msra.mxu0 %v4651_v0  ;;  %1129 = vmatpush1.bf16.msra.mxu1 %v4654_v52 }
 0x78b   :  { %1089 = vmatprep.subr.bf16.mxu0 %v4657_v37  ;;  %1130 = vmatprep.subr.bf16.mxu1 %v4660_v3 }
 0x78e   :  { %1090 = vmatpush1.bf16.msra.mxu0 %v5571_v16  ;;  %1131 = vmatpush1.bf16.msra.mxu1 %v5572_v6 }
 0x78f   :  { %1193 = vmatprep.subr.bf16.mxu0 %v5573_v31  ;;  %1234 = vmatprep.subr.bf16.mxu1 %v5574_v32 }
 0x844   :  { %v991_v13 = vpop.f32.mrb[28].mxu0  ;;  %v1032_v50 = vpop.f32.mrb[28].mxu1 }
 0x845   :  { %v1039_v57 = vadd.f32 %v991_v13, %v952_v54  ;;  %v1041_v44 = vadd.f32 %v1032_v50, %v954_v7  ;;  %v993_v18 = vpop.f32.mrb[29].mxu0  ;;  %v1034_v4 = vpop.f32.mrb[29].mxu1 }
 0x846   :  { %v995_v42 = vpop.f32.mrb[30].mxu0  ;;  %v1036_v20 = vpop.f32.mrb[30].mxu1  ;;  %v1040_v2 = vadd.f32 %v993_v18, %v953_v12  ;;  %v1042_v32 = vadd.f32 %v1034_v4, %v955_v19 }
 0x847   :  { %v3571_v21 = vmul.f32 -1.442695, %v1039_v57  ;;  %v3573_v48 = vmul.f32 -1.442695, %v1041_v44  ;;  %v996_v22 = vpop.f32.mrb[31].mxu0  ;;  %v1037_v27 = vpop.f32.mrb[31].mxu1 }
 0x848   :  { %v3572_v58 = vmul.f32 -1.442695, %v1040_v2 }
 0x849   :  { %3729 = vpow2.f32 %v3571_v21 }
 0x84a   :  { %3731 = vpow2.f32 %v3573_v48 }
 0x84b   :  { %3733 = vpow2.f32 %v3572_v58 }
 0x84c   :  { %3735 = vtanh.f32 %v1042_v32 }
 0x853   :  { %v3730_v31 = vpop.eup %3729 }
 0x854   :  { %v3732_v6 = vpop.eup %3731  ;;  %v1052_v16 = vadd.f32 1.0, %v3730_v31 }
 0x855   :  { %v1054_v54 = vadd.f32 1.0, %v3732_v6  ;;  %v3734_v7 = vpop.eup %3733 }
 0x856   :  { %3737 = vrcp.f32 %v1052_v16  ;;  %v3736_v13 = vpop.eup %3735  ;;  %v1053_v44 = vadd.f32 1.0, %v3734_v7 }
 0x857   :  { %3739 = vrcp.f32 %v1054_v54 }
 0x858   :  { %3741 = vrcp.f32 %v1053_v44 }
 0x860   :  { %v3738_v50 = vpop.eup %3737 }
 0x861   :  { %v3740_v57 = vpop.eup %3739  ;;  %v1063_v34 = vmul.f32 %v3738_v50, %v3736_v13 }
 0x862   :  { %v1062_v42 = vmul.f32 %v3740_v57, %v4756_v28  ;;  %v3742_v5 = vpop.eup %3741 }
 0x864   :  { %v4840_v18 = vadd.f32 %v1063_v34, %v1062_v42 }
 0x866   :  { %3743 = vtanh.f32 %v4840_v18 }
 0x870   :  { %v3744_v31 = vpop.eup %3743 }
 0x871   :  { %v1066_v4 = vmul.f32 %v3744_v31, %v3742_v5 }
 0x873   :  { %v1074_v6 = vpack.c.bf16 %v1066_v4, %v1066_v4  ;;  %v2372_v32 = vcombine.high %v1066_v4, %v1066_v4  ;;  %v2379_v16 = vrot.slane %v1066_v4, %v4270_v51 }
 0x875   :  { %1108 = vmatmul.mubr.bf16.vlgmr.msra.gmra.mrb[32].mxu0 %v1074_v6  ;;  %v2386_v20 = vrot.slane %v2372_v32, %v4270_v51  ;;  %v2387_v21 = vcombine.high %v2379_v16, %v2379_v16  ;;  %v2395_v48 = vrot.slane %v2379_v16, %v4270_v51  ;;  %1149 = vmatmul.mubr.bf16.vlgmr.msra.gmra.mrb[32].mxu1 %v1074_v6 }
 0x876   :  { %1194 = vmatpush1.bf16.msra.mxu0 %v4534_v60  ;;  %1235 = vmatpush1.bf16.msra.mxu1 %v4537_v55 }
 0x877   :  { %v2388_v28 = vcombine.high %v2386_v20, %v2386_v20  ;;  %v2402_v22 = vrot.slane %v2386_v20, %v4270_v51  ;;  %v2409_v27 = vrot.slane %v2387_v21, %v4270_v51  ;;  %v2417_v12 = vcombine.high %v2395_v48, %v2395_v48  ;;  %1195 = vmatprep.subr.bf16.mxu0 %v4542_v9 }
 0x878   :  { %v3072_v2 = vrot.slane %v2395_v48, %v4281_v35  ;;  %1236 = vmatprep.subr.bf16.mxu1 %v4546_v14  ;;  %1225 = vmatprep.mubr.bf16.mxu0 %v5557_v61 }
 0x879   :  { %v2416_v19 = vrot.slane %v2388_v28, %v4270_v51  ;;  %v2418_v58 = vcombine.high %v2402_v22, %v2402_v22  ;;  %v2419_v54 = vcombine.high %v2409_v27, %v2409_v27  ;;  %v3076_v7 = vrot.slane %v2409_v27, %v4281_v35  ;;  %1266 = vmatprep.mubr.bf16.mxu1 %v5557_v61 }
 0x87a   :  { %v3080_v13 = vrot.slane %v2417_v12, %v4281_v35  ;;  %v3088_v50 = vrot.slane %v2402_v22, %v4281_v35  ;;  %v3444_v57 = vsel %vm3443_vm6, %v4777_v26, %v3072_v2  ;;  %1196 = vmatpush1.bf16.msra.mxu0 %v4559_v24  ;;  %1237 = vmatpush1.bf16.msra.mxu1 %v4562_v25 }
 0x87b   :  { %v2420_v44 = vcombine.high %v2416_v19, %v2416_v19  ;;  %v3084_v34 = vrot.slane %v2419_v54, %v4281_v35  ;;  %v3092_v42 = vrot.slane %v2416_v19, %v4281_v35  ;;  %v3096_v5 = vrot.slane %v2418_v58, %v4281_v35  ;;  %3508 = vst [vmem:[#allocation11] sm:$0xff] %v3444_v57 }
 0x87c   :  { %1197 = vmatprep.subr.bf16.mxu0 %v4568_v30  ;;  %v3445_v31 = vsel %vm3443_vm6, %v4787_v43, %v3076_v7  ;;  %v3446_v26 = vsel %vm3443_vm6, %v4791_v39, %v3080_v13  ;;  %v3448_v4 = vsel %vm3443_vm6, %v4795_v29, %v3088_v50  ;;  %1238 = vmatprep.subr.bf16.mxu1 %v4583_v56  ;;  %v5575_v39 = vld [vmem:[#allocation20_spill] sm:$0xff]  ;;  %v5576_v29 = vld [vmem:[#allocation21_spill] sm:$0xff] }
 0x87d   :  { %v3100_v6 = vrot.slane %v2420_v44, %v4281_v35  ;;  %v3447_v32 = vsel %vm3443_vm6, %v4801_v63, %v3084_v34  ;;  %v3449_v16 = vsel %vm3443_vm6, %v4805_v15, %v3092_v42  ;;  %v3450_v20 = vsel %vm3443_vm6, %v4809_v23, %v3096_v5  ;;  %3510 = vst [vmem:[#allocation11 + $0x10] sm:$0xff] %v3445_v31  ;;  %v5577_v63 = vld [vmem:[#allocation18_spill] sm:$0xff]  ;;  %v5578_v15 = vld [vmem:[#allocation19_spill] sm:$0xff]  ;;  %v1068_v23 = vld [vmem:[#allocation6 + $0x80] sm:$0xff] }
 0x87e   :  { %3512 = vst [vmem:[#allocation11 + $0x20] sm:$0xff] %v3446_v26  ;;  %3516 = vst [vmem:[#allocation11 + $0x40] sm:$0xff] %v3448_v4  ;;  %1198 = vmatpush1.bf16.msra.mxu0 %v4599_v8  ;;  %1239 = vmatpush1.bf16.msra.mxu1 %v4602_v62  ;;  %v1070_v21 = vunpack.c.l.bf16 %v1068_v23  ;;  %v1071_v44 = vunpack.c.h.bf16 %v1068_v23 }
 0x87f   :  { %3514 = vst [vmem:[#allocation11 + $0x30] sm:$0xff] %v3447_v32  ;;  %3518 = vst [vmem:[#allocation11 + $0x50] sm:$0xff] %v3449_v16  ;;  %v3451_v43 = vsel %vm3443_vm6, %v4815_v17, %v3100_v6  ;;  %1199 = vmatprep.subr.bf16.mxu0 %v4609_v59  ;;  %1240 = vmatprep.subr.bf16.mxu1 %v4612_v10  ;;  %v1069_v17 = vld [vmem:[#allocation6 + $0x88] sm:$0xff] }
 0x880   :  { %3520 = vst [vmem:[#allocation11 + $0x60] sm:$0xff] %v3450_v20  ;;  %3522 = vst [vmem:[#allocation11 + $0x70] sm:$0xff] %v3451_v43  ;;  %v1072_v48 = vunpack.c.l.bf16 %v1069_v17  ;;  %v1073_v42 = vunpack.c.h.bf16 %v1069_v17 }
 0x882   :  { %1200 = vmatpush1.bf16.msra.mxu0 %v4615_v49  ;;  %1241 = vmatpush1.bf16.msra.mxu1 %v4618_v41 }
 0x883   :  { %1201 = vmatprep.subr.bf16.mxu0 %v4621_v40  ;;  %1242 = vmatprep.subr.bf16.mxu1 %v4624_v11 }
 0x886   :  { %1202 = vmatpush1.bf16.msra.mxu0 %v4627_v53  ;;  %1243 = vmatpush1.bf16.msra.mxu1 %v4630_v36 }
 0x887   :  { %1203 = vmatprep.subr.bf16.mxu0 %v4633_v1  ;;  %1244 = vmatprep.subr.bf16.mxu1 %v4636_v38 }
 0x88a   :  { %1204 = vmatpush1.bf16.msra.mxu0 %v4639_v45  ;;  %1245 = vmatpush1.bf16.msra.mxu1 %v4642_v33 }
 0x88b   :  { %1205 = vmatprep.subr.bf16.mxu0 %v4645_v46  ;;  %1246 = vmatprep.subr.bf16.mxu1 %v4648_v47 }
 0x88e   :  { %1206 = vmatpush1.bf16.msra.mxu0 %v4651_v0  ;;  %1247 = vmatpush1.bf16.msra.mxu1 %v4654_v52 }
 0x88f   :  { %1207 = vmatprep.subr.bf16.mxu0 %v4657_v37  ;;  %1248 = vmatprep.subr.bf16.mxu1 %v4660_v3 }
 0x892   :  { %1208 = vmatpush1.bf16.msra.mxu0 %v5575_v39  ;;  %1249 = vmatpush1.bf16.msra.mxu1 %v5576_v29 }
 0x893   :  { %1311 = vmatprep.subr.bf16.mxu0 %v5577_v63  ;;  %1352 = vmatprep.subr.bf16.mxu1 %v5578_v15 }
 0x948   :  { %v1109_v28 = vpop.f32.mrb[32].mxu0  ;;  %v1150_v22 = vpop.f32.mrb[32].mxu1 }
 0x949   :  { %v1157_v27 = vadd.f32 %v1109_v28, %v1070_v21  ;;  %v1159_v12 = vadd.f32 %v1150_v22, %v1072_v48  ;;  %v1111_v2 = vpop.f32.mrb[33].mxu0  ;;  %v1152_v19 = vpop.f32.mrb[33].mxu1 }
 0x94a   :  { %v1113_v58 = vpop.f32.mrb[34].mxu0  ;;  %v1154_v54 = vpop.f32.mrb[34].mxu1  ;;  %v1158_v34 = vadd.f32 %v1111_v2, %v1071_v44  ;;  %v1160_v31 = vadd.f32 %v1152_v19, %v1073_v42 }
 0x94b   :  { %v3574_v7 = vmul.f32 -1.442695, %v1157_v27  ;;  %v3576_v13 = vmul.f32 -1.442695, %v1159_v12  ;;  %v1114_v50 = vpop.f32.mrb[35].mxu0  ;;  %v1155_v57 = vpop.f32.mrb[35].mxu1 }
 0x94c   :  { %v3575_v5 = vmul.f32 -1.442695, %v1158_v34 }
 0x94d   :  { %3745 = vpow2.f32 %v3574_v7 }
 0x94e   :  { %3747 = vpow2.f32 %v3576_v13 }
 0x94f   :  { %3749 = vpow2.f32 %v3575_v5 }
 0x950   :  { %3751 = vtanh.f32 %v1160_v31 }
 0x957   :  { %v3746_v26 = vpop.eup %3745 }
 0x958   :  { %v3748_v4 = vpop.eup %3747  ;;  %v1170_v6 = vadd.f32 1.0, %v3746_v26 }
 0x959   :  { %v1172_v32 = vadd.f32 1.0, %v3748_v4  ;;  %v3750_v16 = vpop.eup %3749 }
 0x95a   :  { %3753 = vrcp.f32 %v1170_v6  ;;  %v3752_v20 = vpop.eup %3751  ;;  %v1171_v15 = vadd.f32 1.0, %v3750_v16 }
 0x95b   :  { %3755 = vrcp.f32 %v1172_v32 }
 0x95c   :  { %3757 = vrcp.f32 %v1171_v15 }
 0x964   :  { %v3754_v43 = vpop.eup %3753 }
 0x965   :  { %v3756_v63 = vpop.eup %3755  ;;  %v1181_v23 = vmul.f32 %v3754_v43, %v3752_v20 }
 0x966   :  { %v1180_v21 = vmul.f32 %v3756_v63, %v4840_v18  ;;  %v3758_v17 = vpop.eup %3757 }
 0x968   :  { %v4908_v48 = vadd.f32 %v1181_v23, %v1180_v21  ;;  %v4969_v23 = vld [vmem:[#allocation4] sm:$0xff]  ;;  %v4972_v21 = vld [vmem:[#allocation4 + $0x10] sm:$0xff] }
 0x96a   :  { %3759 = vtanh.f32 %v4908_v48 }
 0x974   :  { %v3760_v28 = vpop.eup %3759 }
 0x975   :  { %v4911_v22 = vmul.f32 %v3760_v28, %v3758_v17 }
 0x977   :  { %v1192_v27 = vpack.c.bf16 %v4911_v22, %v4911_v22  ;;  %v2422_v54 = vcombine.high %v4911_v22, %v4911_v22  ;;  %v2429_v7 = vrot.slane %v4911_v22, %v4270_v51 }
 0x979   :  { %1226 = vmatmul.mubr.bf16.vlgmr.msra.gmra.mrb[36].mxu0 %v1192_v27  ;;  %1267 = vmatmul.mubr.bf16.vlgmr.msra.gmra.mrb[36].mxu1 %v1192_v27  ;;  %v2436_v13 = vrot.slane %v2422_v54, %v4270_v51  ;;  %v2437_v44 = vcombine.high %v2429_v7, %v2429_v7  ;;  %v2445_v5 = vrot.slane %v2429_v7, %v4270_v51  ;;  %v4977_v27 = vld [vmem:[#allocation4 + $0x28] sm:$0xff]  ;;  %v5042_v54 = vld [vmem:[#allocation4 + $0x60] sm:$0xff]  ;;  %v5045_v7 = vld [vmem:[#allocation4 + $0x70] sm:$0xff] }
 0x97a   :  { %1312 = vmatpush1.bf16.msra.mxu0 %v4534_v60  ;;  %1353 = vmatpush1.bf16.msra.mxu1 %v4537_v55  ;;  %v4947_v60 = vld [vmem:[#allocation4 + $0x8] sm:$0xff]  ;;  %v4950_v55 = vld [vmem:[#allocation4 + $0x18] sm:$0xff] }
 0x97b   :  { %1313 = vmatprep.subr.bf16.mxu0 %v4542_v9  ;;  %1354 = vmatprep.subr.bf16.mxu1 %v4546_v14  ;;  %5579 = vst [vmem:[#allocation20_spill] sm:$0xff] %v4947_v60  ;;  %5580 = vst [vmem:[#allocation21_spill] sm:$0xff] %v4950_v55  ;;  %v1186_v9 = vld [vmem:[#allocation6 + $0x90] sm:$0xff]  ;;  %v1187_v14 = vld [vmem:[#allocation6 + $0x98] sm:$0xff]  ;;  %v2438_v42 = vcombine.high %v2436_v13, %v2436_v13  ;;  %v2452_v6 = vrot.slane %v2436_v13, %v4270_v51 }
 0x97c   :  { %1343 = vmatprep.mubr.bf16.mxu0 %v5557_v61  ;;  %1384 = vmatprep.mubr.bf16.mxu1 %v5557_v61  ;;  %v2459_v32 = vrot.slane %v2437_v44, %v4270_v51  ;;  %v2467_v15 = vcombine.high %v2445_v5, %v2445_v5  ;;  %v5048_v13 = vld [vmem:[#allocation4 + $0x88] sm:$0xff]  ;;  %v5057_v44 = vld [vmem:[#allocation4 + $0x90] sm:$0xff] }
 0x97d   :  { %v2466_v63 = vrot.slane %v2438_v42, %v4270_v51  ;;  %v5063_v42 = vld [vmem:[#allocation4 + $0xb8] sm:$0xff] }
 0x97e   :  { %1314 = vmatpush1.bf16.msra.mxu0 %v4559_v24  ;;  %1355 = vmatpush1.bf16.msra.mxu1 %v4562_v25  ;;  %v1188_v24 = vunpack.c.l.bf16 %v1186_v9  ;;  %v1190_v25 = vunpack.c.l.bf16 %v1187_v14 }
 0x97f   :  { %1315 = vmatprep.subr.bf16.mxu0 %v4568_v30  ;;  %1356 = vmatprep.subr.bf16.mxu1 %v4583_v56 }
 0x982   :  { %1316 = vmatpush1.bf16.msra.mxu0 %v4599_v8  ;;  %1357 = vmatpush1.bf16.msra.mxu1 %v4602_v62 }
 0x983   :  { %1317 = vmatprep.subr.bf16.mxu0 %v4609_v59  ;;  %1358 = vmatprep.subr.bf16.mxu1 %v4612_v10 }
 0x986   :  { %1318 = vmatpush1.bf16.msra.mxu0 %v4615_v49  ;;  %1359 = vmatpush1.bf16.msra.mxu1 %v4618_v41 }
 0x987   :  { %1319 = vmatprep.subr.bf16.mxu0 %v4621_v40  ;;  %1360 = vmatprep.subr.bf16.mxu1 %v4624_v11 }
 0x98a   :  { %1320 = vmatpush1.bf16.msra.mxu0 %v4627_v53  ;;  %1361 = vmatpush1.bf16.msra.mxu1 %v4630_v36 }
 0x98b   :  { %1321 = vmatprep.subr.bf16.mxu0 %v4633_v1  ;;  %1362 = vmatprep.subr.bf16.mxu1 %v4636_v38  ;;  %v1189_v1 = vunpack.c.h.bf16 %v1186_v9  ;;  %v2468_v9 = vcombine.high %v2452_v6, %v2452_v6 }
 0x98e   :  { %1322 = vmatpush1.bf16.msra.mxu0 %v4639_v45  ;;  %1363 = vmatpush1.bf16.msra.mxu1 %v4642_v33  ;;  %v1191_v45 = vunpack.c.h.bf16 %v1187_v14  ;;  %v2469_v14 = vcombine.high %v2459_v32, %v2459_v32 }
 0x98f   :  { %1323 = vmatprep.subr.bf16.mxu0 %v4645_v46  ;;  %1364 = vmatprep.subr.bf16.mxu1 %v4648_v47 }
 0x992   :  { %1324 = vmatpush1.bf16.msra.mxu0 %v4651_v0  ;;  %1365 = vmatpush1.bf16.msra.mxu1 %v4654_v52 }
 0x993   :  { %1325 = vmatprep.subr.bf16.mxu0 %v4657_v37  ;;  %1366 = vmatprep.subr.bf16.mxu1 %v4660_v3 }
 0x996   :  { %1326 = vmatpush1.bf16.msra.mxu0 %v5575_v39  ;;  %1367 = vmatpush1.bf16.msra.mxu1 %v5576_v29 }
 0x997   :  { %1429 = vmatprep.subr.bf16.mxu0 %v4947_v60  ;;  %1470 = vmatprep.subr.bf16.mxu1 %v4950_v55 }
 0xa4c   :  { %v1227_v30 = vpop.f32.mrb[36].mxu0  ;;  %v1268_v56 = vpop.f32.mrb[36].mxu1 }
 0xa4d   :  { %v1275_v8 = vadd.f32 %v1227_v30, %v1188_v24  ;;  %v1277_v62 = vadd.f32 %v1268_v56, %v1190_v25  ;;  %v1229_v59 = vpop.f32.mrb[37].mxu0  ;;  %v1270_v10 = vpop.f32.mrb[37].mxu1  ;;  %v4981_v25 = vld [vmem:[#allocation4 + $0x38] sm:$0xff] }
 0xa4e   :  { %v1231_v49 = vpop.f32.mrb[38].mxu0  ;;  %v1272_v41 = vpop.f32.mrb[38].mxu1  ;;  %v1276_v38 = vadd.f32 %v1229_v59, %v1189_v1  ;;  %v1278_v46 = vadd.f32 %v1270_v10, %v1191_v45  ;;  %v2470_v45 = vcombine.high %v2466_v63, %v2466_v63 }
 0xa4f   :  { %v3577_v40 = vmul.f32 -1.442695, %v1275_v8  ;;  %v3579_v11 = vmul.f32 -1.442695, %v1277_v62  ;;  %v1232_v53 = vpop.f32.mrb[39].mxu0  ;;  %v1273_v36 = vpop.f32.mrb[39].mxu1 }
 0xa50   :  { %v3578_v33 = vmul.f32 -1.442695, %v1276_v38  ;;  %v4993_v41 = vld [vmem:[#allocation4 + $0x20] sm:$0xff]  ;;  %v5002_v38 = vld [vmem:[#allocation4 + $0x48] sm:$0xff] }
 0xa51   :  { %3761 = vpow2.f32 %v3577_v40  ;;  %v4996_v40 = vld [vmem:[#allocation4 + $0x30] sm:$0xff] }
 0xa52   :  { %3763 = vpow2.f32 %v3579_v11 }
 0xa53   :  { %3765 = vpow2.f32 %v3578_v33 }
 0xa54   :  { %3767 = vtanh.f32 %v1278_v46 }
 0xa5b   :  { %v3762_v47 = vpop.eup %3761 }
 0xa5c   :  { %v3764_v0 = vpop.eup %3763  ;;  %v1288_v52 = vadd.f32 1.0, %v3762_v47 }
 0xa5d   :  { %v1290_v37 = vadd.f32 1.0, %v3764_v0  ;;  %v3766_v3 = vpop.eup %3765  ;;  %v5014_v0 = vld [vmem:[#allocation4 + $0x58] sm:$0xff] }
 0xa5e   :  { %3769 = vrcp.f32 %v1288_v52  ;;  %v3768_v18 = vpop.eup %3767  ;;  %v1289_v12 = vadd.f32 1.0, %v3766_v3 }
 0xa5f   :  { %3771 = vrcp.f32 %v1290_v37 }
 0xa60   :  { %3773 = vrcp.f32 %v1289_v12 }
 0xa68   :  { %v3770_v39 = vpop.eup %3769 }
 0xa69   :  { %v3772_v29 = vpop.eup %3771  ;;  %v1299_v2 = vmul.f32 %v3770_v39, %v3768_v18  ;;  %v5027_v39 = vld [vmem:[#allocation4 + $0x40] sm:$0xff] }
 0xa6a   :  { %v1298_v19 = vmul.f32 %v3772_v29, %v4908_v48  ;;  %v3774_v50 = vpop.eup %3773  ;;  %v5030_v29 = vld [vmem:[#allocation4 + $0x50] sm:$0xff] }
 0xa6c   :  { %v4954_v58 = vadd.f32 %v1299_v2, %v1298_v19  ;;  %v5036_v2 = vld [vmem:[#allocation4 + $0x68] sm:$0xff]  ;;  %v5039_v19 = vld [vmem:[#allocation4 + $0x78] sm:$0xff] }
 0xa6e   :  { %3775 = vtanh.f32 %v4954_v58 }
 0xa78   :  { %v3776_v57 = vpop.eup %3775 }
 0xa79   :  { %v1302_v34 = vmul.f32 %v3776_v57, %v3774_v50  ;;  %v5051_v50 = vld [vmem:[#allocation4 + $0x98] sm:$0xff]  ;;  %v5054_v57 = vld [vmem:[#allocation4 + $0x80] sm:$0xff] }
 0xa7b   :  { %v1310_v31 = vpack.c.bf16 %v1302_v34, %v1302_v34  ;;  %v2480_v26 = vcombine.high %v1302_v34, %v1302_v34  ;;  %v2487_v4 = vrot.slane %v1302_v34, %v4270_v51  ;;  %v5060_v34 = vld [vmem:[#allocation4 + $0xa8] sm:$0xff] }
 0xa7d   :  { %1344 = vmatmul.mubr.bf16.vlgmr.msra.gmra.mrb[40].mxu0 %v1310_v31  ;;  %v2494_v16 = vrot.slane %v2480_v26, %v4270_v51  ;;  %v2495_v20 = vcombine.high %v2487_v4, %v2487_v4  ;;  %v2503_v43 = vrot.slane %v2487_v4, %v4270_v51  ;;  %1385 = vmatmul.mubr.bf16.vlgmr.msra.gmra.mrb[40].mxu1 %v1310_v31  ;;  %v5069_v31 = vld [vmem:[#allocation4 + $0xb0] sm:$0xff]  ;;  %v5072_v26 = vld [vmem:[#allocation4 + $0xc8] sm:$0xff]  ;;  %v5075_v4 = vld [vmem:[#allocation4 + $0xd8] sm:$0xff] }
 0xa7e   :  { %1430 = vmatpush1.bf16.msra.mxu0 %v4969_v23  ;;  %1471 = vmatpush1.bf16.msra.mxu1 %v4972_v21 }
 0xa7f   :  { %v2496_v48 = vcombine.high %v2494_v16, %v2494_v16  ;;  %v2510_v17 = vrot.slane %v2494_v16, %v4270_v51  ;;  %v2517_v28 = vrot.slane %v2495_v20, %v4270_v51  ;;  %v2525_v22 = vcombine.high %v2503_v43, %v2503_v43  ;;  %1431 = vmatprep.subr.bf16.mxu0 %v4977_v27  ;;  %v5084_v16 = vld [vmem:[#allocation4 + $0xe8] sm:$0xff]  ;;  %v5087_v20 = vld [vmem:[#allocation4 + $0xf8] sm:$0xff] }
 0xa80   :  { %v3112_v24 = vrot.slane %v2503_v43, %v4281_v35  ;;  %1472 = vmatprep.subr.bf16.mxu1 %v4981_v25  ;;  %1461 = vmatprep.mubr.bf16.mxu0 %v5557_v61  ;;  %v5090_v43 = vld [vmem:[#allocation4 + $0xe0] sm:$0xff] }
 0xa81   :  { %v2524_v30 = vrot.slane %v2496_v48, %v4270_v51  ;;  %v2526_v56 = vcombine.high %v2510_v17, %v2510_v17  ;;  %v2527_v8 = vcombine.high %v2517_v28, %v2517_v28  ;;  %v3116_v62 = vrot.slane %v2517_v28, %v4281_v35  ;;  %1502 = vmatprep.mubr.bf16.mxu1 %v5557_v61  ;;  %v1305_v48 = vld [vmem:[#allocation6 + $0xa8] sm:$0xff] }
 0xa82   :  { %v3120_v59 = vrot.slane %v2525_v22, %v4281_v35  ;;  %v3128_v10 = vrot.slane %v2510_v17, %v4281_v35  ;;  %v4991_v49 = vsel %vm3389_vm0, %v2445_v5, %v3112_v24  ;;  %1432 = vmatpush1.bf16.msra.mxu0 %v4993_v41  ;;  %1473 = vmatpush1.bf16.msra.mxu1 %v4996_v40  ;;  %v5066_v5 = vld [vmem:[#allocation4 + $0xa0] sm:$0xff]  ;;  %v1308_v28 = vunpack.c.l.bf16 %v1305_v48 }
 0xa83   :  { %v2528_v11 = vcombine.high %v2524_v30, %v2524_v30  ;;  %v3124_v53 = vrot.slane %v2527_v8, %v4281_v35  ;;  %v3132_v36 = vrot.slane %v2524_v30, %v4281_v35  ;;  %v3136_v1 = vrot.slane %v2526_v56, %v4281_v35  ;;  %1433 = vmatprep.subr.bf16.mxu0 %v5002_v38 }
 0xa84   :  { %v5006_v33 = vsel %vm3389_vm0, %v2459_v32, %v3116_v62  ;;  %v5009_v46 = vsel %vm3389_vm0, %v2467_v15, %v3120_v59  ;;  %v5012_v47 = vsel %vm3389_vm0, %v2452_v6, %v3128_v10  ;;  %1474 = vmatprep.subr.bf16.mxu1 %v5014_v0  ;;  %v5078_v6 = vld [vmem:[#allocation4 + $0xc0] sm:$0xff]  ;;  %v5081_v32 = vld [vmem:[#allocation4 + $0xd0] sm:$0xff]  ;;  %5581 = vst [vmem:[#allocation18_spill] sm:$0xff] %v5090_v43 }
 0xa85   :  { %v3140_v52 = vrot.slane %v2528_v11, %v4281_v35  ;;  %v5019_v37 = vsel %vm3389_vm0, %v2469_v14, %v3124_v53  ;;  %v5022_v3 = vsel %vm3389_vm0, %v2466_v63, %v3132_v36  ;;  %v5025_v18 = vsel %vm3389_vm0, %v2468_v9, %v3136_v1  ;;  %v5093_v63 = vld [vmem:[#allocation4 + $0xf0] sm:$0xff]  ;;  %v1304_v15 = vld [vmem:[#allocation6 + $0xa0] sm:$0xff] }
 0xa86   :  { %1434 = vmatpush1.bf16.msra.mxu0 %v5027_v39  ;;  %1475 = vmatpush1.bf16.msra.mxu1 %v5030_v29  ;;  %5582 = vst [vmem:[#allocation19_spill] sm:$0xff] %v5093_v63  ;;  %v1306_v17 = vunpack.c.l.bf16 %v1304_v15  ;;  %v1307_v36 = vunpack.c.h.bf16 %v1304_v15 }
 0xa87   :  { %v5034_v12 = vsel %vm3389_vm0, %v2470_v45, %v3140_v52  ;;  %1435 = vmatprep.subr.bf16.mxu0 %v5036_v2  ;;  %1476 = vmatprep.subr.bf16.mxu1 %v5039_v19  ;;  %v1309_v45 = vunpack.c.h.bf16 %v1305_v48 }
 0xa8a   :  { %1436 = vmatpush1.bf16.msra.mxu0 %v5042_v54  ;;  %1477 = vmatpush1.bf16.msra.mxu1 %v5045_v7 }
 0xa8b   :  { %1437 = vmatprep.subr.bf16.mxu0 %v5048_v13  ;;  %1478 = vmatprep.subr.bf16.mxu1 %v5051_v50 }
 0xa8e   :  { %1438 = vmatpush1.bf16.msra.mxu0 %v5054_v57  ;;  %1479 = vmatpush1.bf16.msra.mxu1 %v5057_v44 }
 0xa8f   :  { %1439 = vmatprep.subr.bf16.mxu0 %v5060_v34  ;;  %1480 = vmatprep.subr.bf16.mxu1 %v5063_v42 }
 0xa92   :  { %1440 = vmatpush1.bf16.msra.mxu0 %v5066_v5  ;;  %1481 = vmatpush1.bf16.msra.mxu1 %v5069_v31 }
 0xa93   :  { %1441 = vmatprep.subr.bf16.mxu0 %v5072_v26  ;;  %1482 = vmatprep.subr.bf16.mxu1 %v5075_v4 }
 0xa96   :  { %1442 = vmatpush1.bf16.msra.mxu0 %v5078_v6  ;;  %1483 = vmatpush1.bf16.msra.mxu1 %v5081_v32 }
 0xa97   :  { %1443 = vmatprep.subr.bf16.mxu0 %v5084_v16  ;;  %1484 = vmatprep.subr.bf16.mxu1 %v5087_v20 }
 0xa9a   :  { %1444 = vmatpush1.bf16.msra.mxu0 %v5090_v43  ;;  %1485 = vmatpush1.bf16.msra.mxu1 %v5093_v63 }
 0xa9b   :  { %1547 = vmatprep.subr.bf16.mxu0 %v4947_v60  ;;  %1588 = vmatprep.subr.bf16.mxu1 %v4950_v55 }
 0xb50   :  { %v1345_v22 = vpop.f32.mrb[40].mxu0  ;;  %v1386_v9 = vpop.f32.mrb[40].mxu1 }
 0xb51   :  { %v1393_v14 = vadd.f32 %v1345_v22, %v1306_v17  ;;  %v1395_v24 = vadd.f32 %v1386_v9, %v1308_v28  ;;  %v1347_v30 = vpop.f32.mrb[41].mxu0  ;;  %v1388_v56 = vpop.f32.mrb[41].mxu1 }
 0xb52   :  { %v1349_v8 = vpop.f32.mrb[42].mxu0  ;;  %v1390_v62 = vpop.f32.mrb[42].mxu1  ;;  %v1394_v1 = vadd.f32 %v1347_v30, %v1307_v36  ;;  %v1396_v55 = vadd.f32 %v1388_v56, %v1309_v45 }
 0xb53   :  { %v3580_v59 = vmul.f32 -1.442695, %v1393_v14  ;;  %v3582_v10 = vmul.f32 -1.442695, %v1395_v24  ;;  %v1350_v11 = vpop.f32.mrb[43].mxu0  ;;  %v1391_v53 = vpop.f32.mrb[43].mxu1 }
 0xb54   :  { %v3581_v52 = vmul.f32 -1.442695, %v1394_v1 }
 0xb55   :  { %3777 = vpow2.f32 %v3580_v59 }
 0xb56   :  { %3779 = vpow2.f32 %v3582_v10 }
 0xb57   :  { %3781 = vpow2.f32 %v3581_v52 }
 0xb58   :  { %3783 = vtanh.f32 %v1396_v55 }
 0xb5f   :  { %v3778_v60 = vpop.eup %3777 }
 0xb60   :  { %v3780_v63 = vpop.eup %3779  ;;  %v1406_v43 = vadd.f32 1.0, %v3778_v60 }
 0xb61   :  { %v1408_v17 = vadd.f32 1.0, %v3780_v63  ;;  %v3782_v28 = vpop.eup %3781 }
 0xb62   :  { %3785 = vrcp.f32 %v1406_v43  ;;  %v3784_v22 = vpop.eup %3783  ;;  %v1407_v24 = vadd.f32 1.0, %v3782_v28 }
 0xb63   :  { %3787 = vrcp.f32 %v1408_v17 }
 0xb64   :  { %3789 = vrcp.f32 %v1407_v24 }
 0xb6c   :  { %v3786_v9 = vpop.eup %3785 }
 0xb6d   :  { %v3788_v14 = vpop.eup %3787  ;;  %v1417_v15 = vmul.f32 %v3786_v9, %v3784_v22 }
 0xb6e   :  { %v1416_v8 = vmul.f32 %v3788_v14, %v4954_v58  ;;  %v3790_v48 = vpop.eup %3789 }
 0xb70   :  { %v5099_v30 = vadd.f32 %v1417_v15, %v1416_v8 }
 0xb72   :  { %3791 = vtanh.f32 %v5099_v30 }
 0xb7c   :  { %v3792_v60 = vpop.eup %3791 }
 0xb7d   :  { %v1420_v56 = vmul.f32 %v3792_v60, %v3790_v48 }
 0xb7f   :  { %v1428_v63 = vpack.c.bf16 %v1420_v56, %v1420_v56  ;;  %v2530_v55 = vcombine.high %v1420_v56, %v1420_v56  ;;  %v2537_v43 = vrot.slane %v1420_v56, %v4270_v51 }
 0xb81   :  { %1462 = vmatmul.mubr.bf16.vlgmr.msra.gmra.mrb[44].mxu0 %v1428_v63  ;;  %v2544_v62 = vrot.slane %v2530_v55, %v4270_v51  ;;  %v2545_v59 = vcombine.high %v2537_v43, %v2537_v43  ;;  %v2553_v10 = vrot.slane %v2537_v43, %v4270_v51  ;;  %1503 = vmatmul.mubr.bf16.vlgmr.msra.gmra.mrb[44].mxu1 %v1428_v63  ;;  %v1422_v43 = vld [vmem:[#allocation6 + $0xb0] sm:$0xff] }
 0xb82   :  { %1548 = vmatpush1.bf16.msra.mxu0 %v4969_v23  ;;  %1589 = vmatpush1.bf16.msra.mxu1 %v4972_v21 }
 0xb83   :  { %v2546_v58 = vcombine.high %v2544_v62, %v2544_v62  ;;  %v2560_v11 = vrot.slane %v2544_v62, %v4270_v51  ;;  %v2567_v53 = vrot.slane %v2545_v59, %v4270_v51  ;;  %v2575_v36 = vcombine.high %v2553_v10, %v2553_v10  ;;  %1549 = vmatprep.subr.bf16.mxu0 %v4977_v27  ;;  %v1423_v62 = vld [vmem:[#allocation6 + $0xb8] sm:$0xff] }
 0xb84   :  { %v3152_v1 = vrot.slane %v2553_v10, %v4281_v35  ;;  %1590 = vmatprep.subr.bf16.mxu1 %v4981_v25  ;;  %1579 = vmatprep.mubr.bf16.mxu0 %v5557_v61  ;;  %v1424_v59 = vunpack.c.l.bf16 %v1422_v43  ;;  %v1426_v10 = vunpack.c.l.bf16 %v1423_v62 }
 0xb85   :  { %v2574_v45 = vrot.slane %v2546_v58, %v4270_v51  ;;  %v2576_v52 = vcombine.high %v2560_v11, %v2560_v11  ;;  %v2577_v17 = vcombine.high %v2567_v53, %v2567_v53  ;;  %v3156_v28 = vrot.slane %v2567_v53, %v4281_v35  ;;  %1620 = vmatprep.mubr.bf16.mxu1 %v5557_v61 }
 0xb86   :  { %v3160_v22 = vrot.slane %v2575_v36, %v4281_v35  ;;  %v3168_v9 = vrot.slane %v2560_v11, %v4281_v35  ;;  %v5120_v14 = vsel %vm3398_vm1, %v4991_v49, %v3152_v1  ;;  %1550 = vmatpush1.bf16.msra.mxu0 %v4993_v41  ;;  %1591 = vmatpush1.bf16.msra.mxu1 %v4996_v40 }
 0xb87   :  { %v2578_v24 = vcombine.high %v2574_v45, %v2574_v45  ;;  %v3164_v15 = vrot.slane %v2577_v17, %v4281_v35  ;;  %v3172_v8 = vrot.slane %v2574_v45, %v4281_v35  ;;  %v3176_v48 = vrot.slane %v2576_v52, %v4281_v35  ;;  %1551 = vmatprep.subr.bf16.mxu0 %v5002_v38 }
 0xb88   :  { %v5130_v60 = vsel %vm3398_vm1, %v5006_v33, %v3156_v28  ;;  %v5134_v49 = vsel %vm3398_vm1, %v5009_v46, %v3160_v22  ;;  %v5138_v56 = vsel %vm3398_vm1, %v5012_v47, %v3168_v9  ;;  %1592 = vmatprep.subr.bf16.mxu1 %v5014_v0 }
 0xb89   :  { %v3180_v63 = vrot.slane %v2578_v24, %v4281_v35  ;;  %v5144_v55 = vsel %vm3398_vm1, %v5019_v37, %v3164_v15  ;;  %v5148_v33 = vsel %vm3398_vm1, %v5022_v3, %v3172_v8  ;;  %v5152_v46 = vsel %vm3398_vm1, %v5025_v18, %v3176_v48  ;;  %v5583_v37 = vld [vmem:[#allocation18_spill] sm:$0xff]  ;;  %v5584_v3 = vld [vmem:[#allocation19_spill] sm:$0xff]  ;;  %v5585_v18 = vld [vmem:[#allocation20_spill] sm:$0xff] }
 0xb8a   :  { %1552 = vmatpush1.bf16.msra.mxu0 %v5027_v39  ;;  %1593 = vmatpush1.bf16.msra.mxu1 %v5030_v29  ;;  %v1425_v15 = vunpack.c.h.bf16 %v1422_v43  ;;  %v1427_v48 = vunpack.c.h.bf16 %v1423_v62 }
 0xb8b   :  { %v5158_v47 = vsel %vm3398_vm1, %v5034_v12, %v3180_v63  ;;  %1553 = vmatprep.subr.bf16.mxu0 %v5036_v2  ;;  %1594 = vmatprep.subr.bf16.mxu1 %v5039_v19  ;;  %v5586_v12 = vld [vmem:[#allocation21_spill] sm:$0xff] }
 0xb8e   :  { %1554 = vmatpush1.bf16.msra.mxu0 %v5042_v54  ;;  %1595 = vmatpush1.bf16.msra.mxu1 %v5045_v7 }
 0xb8f   :  { %1555 = vmatprep.subr.bf16.mxu0 %v5048_v13  ;;  %1596 = vmatprep.subr.bf16.mxu1 %v5051_v50 }
 0xb92   :  { %1556 = vmatpush1.bf16.msra.mxu0 %v5054_v57  ;;  %1597 = vmatpush1.bf16.msra.mxu1 %v5057_v44 }
 0xb93   :  { %1557 = vmatprep.subr.bf16.mxu0 %v5060_v34  ;;  %1598 = vmatprep.subr.bf16.mxu1 %v5063_v42 }
 0xb96   :  { %1558 = vmatpush1.bf16.msra.mxu0 %v5066_v5  ;;  %1599 = vmatpush1.bf16.msra.mxu1 %v5069_v31 }
 0xb97   :  { %1559 = vmatprep.subr.bf16.mxu0 %v5072_v26  ;;  %1600 = vmatprep.subr.bf16.mxu1 %v5075_v4 }
 0xb9a   :  { %1560 = vmatpush1.bf16.msra.mxu0 %v5078_v6  ;;  %1601 = vmatpush1.bf16.msra.mxu1 %v5081_v32 }
 0xb9b   :  { %1561 = vmatprep.subr.bf16.mxu0 %v5084_v16  ;;  %1602 = vmatprep.subr.bf16.mxu1 %v5087_v20 }
 0xb9e   :  { %1562 = vmatpush1.bf16.msra.mxu0 %v5583_v37  ;;  %1603 = vmatpush1.bf16.msra.mxu1 %v5584_v3 }
 0xb9f   :  { %1665 = vmatprep.subr.bf16.mxu0 %v5585_v18  ;;  %1706 = vmatprep.subr.bf16.mxu1 %v5586_v12 }
 0xc54   :  { %v1463_v58 = vpop.f32.mrb[44].mxu0  ;;  %v1504_v11 = vpop.f32.mrb[44].mxu1 }
 0xc55   :  { %v1511_v53 = vadd.f32 %v1463_v58, %v1424_v59  ;;  %v1513_v36 = vadd.f32 %v1504_v11, %v1426_v10  ;;  %v1465_v1 = vpop.f32.mrb[45].mxu0  ;;  %v1506_v45 = vpop.f32.mrb[45].mxu1 }
 0xc56   :  { %v1467_v52 = vpop.f32.mrb[46].mxu0  ;;  %v1508_v17 = vpop.f32.mrb[46].mxu1  ;;  %v1512_v8 = vadd.f32 %v1465_v1, %v1425_v15  ;;  %v1514_v12 = vadd.f32 %v1506_v45, %v1427_v48 }
 0xc57   :  { %v3583_v28 = vmul.f32 -1.442695, %v1511_v53  ;;  %v3585_v22 = vmul.f32 -1.442695, %v1513_v36  ;;  %v1468_v9 = vpop.f32.mrb[47].mxu0  ;;  %v1509_v24 = vpop.f32.mrb[47].mxu1 }
 0xc58   :  { %v3584_v63 = vmul.f32 -1.442695, %v1512_v8 }
 0xc59   :  { %3793 = vpow2.f32 %v3583_v28 }
 0xc5a   :  { %3795 = vpow2.f32 %v3585_v22 }
 0xc5b   :  { %3797 = vpow2.f32 %v3584_v63 }
 0xc5c   :  { %3799 = vtanh.f32 %v1514_v12 }
 0xc63   :  { %v3794_v18 = vpop.eup %3793 }
 0xc64   :  { %v3796_v3 = vpop.eup %3795  ;;  %v1524_v37 = vadd.f32 1.0, %v3794_v18 }
 0xc65   :  { %v1526_v59 = vadd.f32 1.0, %v3796_v3  ;;  %v3798_v10 = vpop.eup %3797 }
 0xc66   :  { %3801 = vrcp.f32 %v1524_v37  ;;  %v3800_v58 = vpop.eup %3799  ;;  %v1525_v36 = vadd.f32 1.0, %v3798_v10 }
 0xc67   :  { %3803 = vrcp.f32 %v1526_v59 }
 0xc68   :  { %3805 = vrcp.f32 %v1525_v36 }
 0xc70   :  { %v3802_v11 = vpop.eup %3801 }
 0xc71   :  { %v3804_v53 = vpop.eup %3803  ;;  %v1535_v43 = vmul.f32 %v3802_v11, %v3800_v58 }
 0xc72   :  { %v1534_v52 = vmul.f32 %v3804_v53, %v5099_v30  ;;  %v3806_v62 = vpop.eup %3805 }
 0xc74   :  { %v5183_v1 = vadd.f32 %v1535_v43, %v1534_v52 }
 0xc76   :  { %3807 = vtanh.f32 %v5183_v1 }
 0xc80   :  { %v3808_v18 = vpop.eup %3807 }
 0xc81   :  { %v1538_v45 = vmul.f32 %v3808_v18, %v3806_v62 }
 0xc83   :  { %v1546_v3 = vpack.c.bf16 %v1538_v45, %v1538_v45  ;;  %v2580_v12 = vcombine.high %v1538_v45, %v1538_v45  ;;  %v2587_v37 = vrot.slane %v1538_v45, %v4270_v51 }
 0xc85   :  { %1580 = vmatmul.mubr.bf16.vlgmr.msra.gmra.mrb[48].mxu0 %v1546_v3  ;;  %v2594_v17 = vrot.slane %v2580_v12, %v4270_v51  ;;  %v2595_v28 = vcombine.high %v2587_v37, %v2587_v37  ;;  %v2603_v22 = vrot.slane %v2587_v37, %v4270_v51  ;;  %1621 = vmatmul.mubr.bf16.vlgmr.msra.gmra.mrb[48].mxu1 %v1546_v3  ;;  %v1540_v37 = vld [vmem:[#allocation6 + $0xc0] sm:$0xff] }
 0xc86   :  { %1666 = vmatpush1.bf16.msra.mxu0 %v4969_v23  ;;  %1707 = vmatpush1.bf16.msra.mxu1 %v4972_v21 }
 0xc87   :  { %v2596_v30 = vcombine.high %v2594_v17, %v2594_v17  ;;  %v2610_v9 = vrot.slane %v2594_v17, %v4270_v51  ;;  %v2617_v24 = vrot.slane %v2595_v28, %v4270_v51  ;;  %v2625_v15 = vcombine.high %v2603_v22, %v2603_v22  ;;  %1667 = vmatprep.subr.bf16.mxu0 %v4977_v27  ;;  %v1541_v17 = vld [vmem:[#allocation6 + $0xc8] sm:$0xff] }
 0xc88   :  { %v3192_v8 = vrot.slane %v2603_v22, %v4281_v35  ;;  %1708 = vmatprep.subr.bf16.mxu1 %v4981_v25  ;;  %1697 = vmatprep.mubr.bf16.mxu0 %v5557_v61  ;;  %v1542_v28 = vunpack.c.l.bf16 %v1540_v37  ;;  %v1544_v22 = vunpack.c.l.bf16 %v1541_v17 }
 0xc89   :  { %v2624_v48 = vrot.slane %v2596_v30, %v4270_v51  ;;  %v2626_v63 = vcombine.high %v2610_v9, %v2610_v9  ;;  %v2627_v59 = vcombine.high %v2617_v24, %v2617_v24  ;;  %v3196_v10 = vrot.slane %v2617_v24, %v4281_v35  ;;  %1738 = vmatprep.mubr.bf16.mxu1 %v5557_v61 }
 0xc8a   :  { %v3200_v58 = vrot.slane %v2625_v15, %v4281_v35  ;;  %v3208_v11 = vrot.slane %v2610_v9, %v4281_v35  ;;  %v5204_v53 = vsel %vm3407_vm2, %v5120_v14, %v3192_v8  ;;  %1668 = vmatpush1.bf16.msra.mxu0 %v4993_v41  ;;  %1709 = vmatpush1.bf16.msra.mxu1 %v4996_v40 }
 0xc8b   :  { %v2628_v36 = vcombine.high %v2624_v48, %v2624_v48  ;;  %v3204_v43 = vrot.slane %v2627_v59, %v4281_v35  ;;  %v3212_v52 = vrot.slane %v2624_v48, %v4281_v35  ;;  %v3216_v62 = vrot.slane %v2626_v63, %v4281_v35  ;;  %1669 = vmatprep.subr.bf16.mxu0 %v5002_v38 }
 0xc8c   :  { %v5214_v18 = vsel %vm3407_vm2, %v5130_v60, %v3196_v10  ;;  %v5218_v14 = vsel %vm3407_vm2, %v5134_v49, %v3200_v58  ;;  %v5222_v45 = vsel %vm3407_vm2, %v5138_v56, %v3208_v11  ;;  %1710 = vmatprep.subr.bf16.mxu1 %v5014_v0 }
 0xc8d   :  { %v3220_v3 = vrot.slane %v2628_v36, %v4281_v35  ;;  %v5228_v12 = vsel %vm3407_vm2, %v5144_v55, %v3204_v43  ;;  %v5232_v60 = vsel %vm3407_vm2, %v5148_v33, %v3212_v52  ;;  %v5236_v49 = vsel %vm3407_vm2, %v5152_v46, %v3216_v62  ;;  %v5587_v55 = vld [vmem:[#allocation18_spill] sm:$0xff]  ;;  %v5588_v33 = vld [vmem:[#allocation19_spill] sm:$0xff]  ;;  %v5589_v46 = vld [vmem:[#allocation20_spill] sm:$0xff] }
 0xc8e   :  { %1670 = vmatpush1.bf16.msra.mxu0 %v5027_v39  ;;  %1711 = vmatpush1.bf16.msra.mxu1 %v5030_v29  ;;  %v1543_v43 = vunpack.c.h.bf16 %v1540_v37  ;;  %v1545_v62 = vunpack.c.h.bf16 %v1541_v17 }
 0xc8f   :  { %v5242_v56 = vsel %vm3407_vm2, %v5158_v47, %v3220_v3  ;;  %1671 = vmatprep.subr.bf16.mxu0 %v5036_v2  ;;  %1712 = vmatprep.subr.bf16.mxu1 %v5039_v19  ;;  %v5590_v47 = vld [vmem:[#allocation21_spill] sm:$0xff] }
 0xc92   :  { %1672 = vmatpush1.bf16.msra.mxu0 %v5042_v54  ;;  %1713 = vmatpush1.bf16.msra.mxu1 %v5045_v7 }
 0xc93   :  { %1673 = vmatprep.subr.bf16.mxu0 %v5048_v13  ;;  %1714 = vmatprep.subr.bf16.mxu1 %v5051_v50 }
 0xc96   :  { %1674 = vmatpush1.bf16.msra.mxu0 %v5054_v57  ;;  %1715 = vmatpush1.bf16.msra.mxu1 %v5057_v44 }
 0xc97   :  { %1675 = vmatprep.subr.bf16.mxu0 %v5060_v34  ;;  %1716 = vmatprep.subr.bf16.mxu1 %v5063_v42 }
 0xc9a   :  { %1676 = vmatpush1.bf16.msra.mxu0 %v5066_v5  ;;  %1717 = vmatpush1.bf16.msra.mxu1 %v5069_v31 }
 0xc9b   :  { %1677 = vmatprep.subr.bf16.mxu0 %v5072_v26  ;;  %1718 = vmatprep.subr.bf16.mxu1 %v5075_v4 }
 0xc9e   :  { %1678 = vmatpush1.bf16.msra.mxu0 %v5078_v6  ;;  %1719 = vmatpush1.bf16.msra.mxu1 %v5081_v32 }
 0xc9f   :  { %1679 = vmatprep.subr.bf16.mxu0 %v5084_v16  ;;  %1720 = vmatprep.subr.bf16.mxu1 %v5087_v20 }
 0xca2   :  { %1680 = vmatpush1.bf16.msra.mxu0 %v5587_v55  ;;  %1721 = vmatpush1.bf16.msra.mxu1 %v5588_v33 }
 0xca3   :  { %1783 = vmatprep.subr.bf16.mxu0 %v5589_v46  ;;  %1824 = vmatprep.subr.bf16.mxu1 %v5590_v47 }
 0xd58   :  { %v1581_v30 = vpop.f32.mrb[48].mxu0  ;;  %v1622_v9 = vpop.f32.mrb[48].mxu1 }
 0xd59   :  { %v1629_v24 = vadd.f32 %v1581_v30, %v1542_v28  ;;  %v1631_v15 = vadd.f32 %v1622_v9, %v1544_v22  ;;  %v1583_v8 = vpop.f32.mrb[49].mxu0  ;;  %v1624_v48 = vpop.f32.mrb[49].mxu1 }
 0xd5a   :  { %v1585_v63 = vpop.f32.mrb[50].mxu0  ;;  %v1626_v59 = vpop.f32.mrb[50].mxu1  ;;  %v1630_v52 = vadd.f32 %v1583_v8, %v1543_v43  ;;  %v1632_v47 = vadd.f32 %v1624_v48, %v1545_v62 }
 0xd5b   :  { %v3586_v10 = vmul.f32 -1.442695, %v1629_v24  ;;  %v3588_v58 = vmul.f32 -1.442695, %v1631_v15  ;;  %v1586_v11 = vpop.f32.mrb[51].mxu0  ;;  %v1627_v36 = vpop.f32.mrb[51].mxu1 }
 0xd5c   :  { %v3587_v3 = vmul.f32 -1.442695, %v1630_v52 }
 0xd5d   :  { %3809 = vpow2.f32 %v3586_v10 }
 0xd5e   :  { %3811 = vpow2.f32 %v3588_v58 }
 0xd5f   :  { %3813 = vpow2.f32 %v3587_v3 }
 0xd60   :  { %3815 = vtanh.f32 %v1632_v47 }
 0xd67   :  { %v3810_v46 = vpop.eup %3809 }
 0xd68   :  { %v3812_v33 = vpop.eup %3811  ;;  %v1642_v55 = vadd.f32 1.0, %v3810_v46 }
 0xd69   :  { %v1644_v28 = vadd.f32 1.0, %v3812_v33  ;;  %v3814_v22 = vpop.eup %3813 }
 0xd6a   :  { %3817 = vrcp.f32 %v1642_v55  ;;  %v3816_v30 = vpop.eup %3815  ;;  %v1643_v15 = vadd.f32 1.0, %v3814_v22 }
 0xd6b   :  { %3819 = vrcp.f32 %v1644_v28 }
 0xd6c   :  { %3821 = vrcp.f32 %v1643_v15 }
 0xd74   :  { %v3818_v9 = vpop.eup %3817 }
 0xd75   :  { %v3820_v24 = vpop.eup %3819  ;;  %v1653_v37 = vmul.f32 %v3818_v9, %v3816_v30 }
 0xd76   :  { %v1652_v63 = vmul.f32 %v3820_v24, %v5183_v1  ;;  %v3822_v17 = vpop.eup %3821 }
 0xd78   :  { %v5267_v8 = vadd.f32 %v1653_v37, %v1652_v63 }
 0xd7a   :  { %3823 = vtanh.f32 %v5267_v8 }
 0xd84   :  { %v3824_v46 = vpop.eup %3823 }
 0xd85   :  { %v1656_v48 = vmul.f32 %v3824_v46, %v3822_v17 }
 0xd87   :  { %v1664_v33 = vpack.c.bf16 %v1656_v48, %v1656_v48  ;;  %v2630_v47 = vcombine.high %v1656_v48, %v1656_v48  ;;  %v2637_v55 = vrot.slane %v1656_v48, %v4270_v51 }
 0xd89   :  { %1698 = vmatmul.mubr.bf16.vlgmr.msra.gmra.mrb[52].mxu0 %v1664_v33  ;;  %v2644_v59 = vrot.slane %v2630_v47, %v4270_v51  ;;  %v2645_v10 = vcombine.high %v2637_v55, %v2637_v55  ;;  %v2653_v58 = vrot.slane %v2637_v55, %v4270_v51  ;;  %1739 = vmatmul.mubr.bf16.vlgmr.msra.gmra.mrb[52].mxu1 %v1664_v33  ;;  %v1658_v55 = vld [vmem:[#allocation6 + $0xd0] sm:$0xff] }
 0xd8a   :  { %1784 = vmatpush1.bf16.msra.mxu0 %v4969_v23  ;;  %1825 = vmatpush1.bf16.msra.mxu1 %v4972_v21 }
 0xd8b   :  { %v2646_v1 = vcombine.high %v2644_v59, %v2644_v59  ;;  %v2660_v11 = vrot.slane %v2644_v59, %v4270_v51  ;;  %v2667_v36 = vrot.slane %v2645_v10, %v4270_v51  ;;  %v2675_v43 = vcombine.high %v2653_v58, %v2653_v58  ;;  %1785 = vmatprep.subr.bf16.mxu0 %v4977_v27  ;;  %v1659_v59 = vld [vmem:[#allocation6 + $0xd8] sm:$0xff] }
 0xd8c   :  { %v3232_v52 = vrot.slane %v2653_v58, %v4281_v35  ;;  %1826 = vmatprep.subr.bf16.mxu1 %v4981_v25  ;;  %1815 = vmatprep.mubr.bf16.mxu0 %v5557_v61  ;;  %v1660_v10 = vunpack.c.l.bf16 %v1658_v55  ;;  %v1662_v58 = vunpack.c.l.bf16 %v1659_v59 }
 0xd8d   :  { %v2674_v62 = vrot.slane %v2646_v1, %v4270_v51  ;;  %v2676_v3 = vcombine.high %v2660_v11, %v2660_v11  ;;  %v2677_v28 = vcombine.high %v2667_v36, %v2667_v36  ;;  %v3236_v22 = vrot.slane %v2667_v36, %v4281_v35  ;;  %1856 = vmatprep.mubr.bf16.mxu1 %v5557_v61 }
 0xd8e   :  { %v3240_v30 = vrot.slane %v2675_v43, %v4281_v35  ;;  %v3248_v9 = vrot.slane %v2660_v11, %v4281_v35  ;;  %v5288_v24 = vsel %vm3416_vm3, %v5204_v53, %v3232_v52  ;;  %1786 = vmatpush1.bf16.msra.mxu0 %v4993_v41  ;;  %1827 = vmatpush1.bf16.msra.mxu1 %v4996_v40 }
 0xd8f   :  { %v2678_v15 = vcombine.high %v2674_v62, %v2674_v62  ;;  %v3244_v37 = vrot.slane %v2677_v28, %v4281_v35  ;;  %v3252_v63 = vrot.slane %v2674_v62, %v4281_v35  ;;  %v3256_v17 = vrot.slane %v2676_v3, %v4281_v35  ;;  %1787 = vmatprep.subr.bf16.mxu0 %v5002_v38 }
 0xd90   :  { %v5298_v46 = vsel %vm3416_vm3, %v5214_v18, %v3236_v22  ;;  %v5302_v53 = vsel %vm3416_vm3, %v5218_v14, %v3240_v30  ;;  %v5306_v48 = vsel %vm3416_vm3, %v5222_v45, %v3248_v9  ;;  %1828 = vmatprep.subr.bf16.mxu1 %v5014_v0 }
 0xd91   :  { %v3260_v33 = vrot.slane %v2678_v15, %v4281_v35  ;;  %v5312_v47 = vsel %vm3416_vm3, %v5228_v12, %v3244_v37  ;;  %v5316_v18 = vsel %vm3416_vm3, %v5232_v60, %v3252_v63  ;;  %v5320_v14 = vsel %vm3416_vm3, %v5236_v49, %v3256_v17  ;;  %v5591_v12 = vld [vmem:[#allocation18_spill] sm:$0xff]  ;;  %v5592_v60 = vld [vmem:[#allocation19_spill] sm:$0xff]  ;;  %v5593_v49 = vld [vmem:[#allocation20_spill] sm:$0xff] }
 0xd92   :  { %1788 = vmatpush1.bf16.msra.mxu0 %v5027_v39  ;;  %1829 = vmatpush1.bf16.msra.mxu1 %v5030_v29  ;;  %v1661_v37 = vunpack.c.h.bf16 %v1658_v55  ;;  %v1663_v17 = vunpack.c.h.bf16 %v1659_v59 }
 0xd93   :  { %v5326_v45 = vsel %vm3416_vm3, %v5242_v56, %v3260_v33  ;;  %1789 = vmatprep.subr.bf16.mxu0 %v5036_v2  ;;  %1830 = vmatprep.subr.bf16.mxu1 %v5039_v19  ;;  %v5594_v56 = vld [vmem:[#allocation21_spill] sm:$0xff] }
 0xd96   :  { %1790 = vmatpush1.bf16.msra.mxu0 %v5042_v54  ;;  %1831 = vmatpush1.bf16.msra.mxu1 %v5045_v7 }
 0xd97   :  { %1791 = vmatprep.subr.bf16.mxu0 %v5048_v13  ;;  %1832 = vmatprep.subr.bf16.mxu1 %v5051_v50 }
 0xd9a   :  { %1792 = vmatpush1.bf16.msra.mxu0 %v5054_v57  ;;  %1833 = vmatpush1.bf16.msra.mxu1 %v5057_v44 }
 0xd9b   :  { %1793 = vmatprep.subr.bf16.mxu0 %v5060_v34  ;;  %1834 = vmatprep.subr.bf16.mxu1 %v5063_v42 }
 0xd9e   :  { %1794 = vmatpush1.bf16.msra.mxu0 %v5066_v5  ;;  %1835 = vmatpush1.bf16.msra.mxu1 %v5069_v31 }
 0xd9f   :  { %1795 = vmatprep.subr.bf16.mxu0 %v5072_v26  ;;  %1836 = vmatprep.subr.bf16.mxu1 %v5075_v4 }
 0xda2   :  { %1796 = vmatpush1.bf16.msra.mxu0 %v5078_v6  ;;  %1837 = vmatpush1.bf16.msra.mxu1 %v5081_v32 }
 0xda3   :  { %1797 = vmatprep.subr.bf16.mxu0 %v5084_v16  ;;  %1838 = vmatprep.subr.bf16.mxu1 %v5087_v20 }
 0xda6   :  { %1798 = vmatpush1.bf16.msra.mxu0 %v5591_v12  ;;  %1839 = vmatpush1.bf16.msra.mxu1 %v5592_v60 }
 0xda7   :  { %1901 = vmatprep.subr.bf16.mxu0 %v5593_v49  ;;  %1942 = vmatprep.subr.bf16.mxu1 %v5594_v56 }
 0xe5c   :  { %v1699_v1 = vpop.f32.mrb[52].mxu0  ;;  %v1740_v11 = vpop.f32.mrb[52].mxu1 }
 0xe5d   :  { %v1747_v36 = vadd.f32 %v1699_v1, %v1660_v10  ;;  %v1749_v43 = vadd.f32 %v1740_v11, %v1662_v58  ;;  %v1701_v52 = vpop.f32.mrb[53].mxu0  ;;  %v1742_v62 = vpop.f32.mrb[53].mxu1 }
 0xe5e   :  { %v1703_v3 = vpop.f32.mrb[54].mxu0  ;;  %v1744_v28 = vpop.f32.mrb[54].mxu1  ;;  %v1748_v63 = vadd.f32 %v1701_v52, %v1661_v37  ;;  %v1750_v49 = vadd.f32 %v1742_v62, %v1663_v17 }
 0xe5f   :  { %v3589_v22 = vmul.f32 -1.442695, %v1747_v36  ;;  %v3591_v30 = vmul.f32 -1.442695, %v1749_v43  ;;  %v1704_v9 = vpop.f32.mrb[55].mxu0  ;;  %v1745_v15 = vpop.f32.mrb[55].mxu1 }
 0xe60   :  { %v3590_v33 = vmul.f32 -1.442695, %v1748_v63 }
 0xe61   :  { %3825 = vpow2.f32 %v3589_v22 }
 0xe62   :  { %3827 = vpow2.f32 %v3591_v30 }
 0xe63   :  { %3829 = vpow2.f32 %v3590_v33 }
 0xe64   :  { %3831 = vtanh.f32 %v1750_v49 }
 0xe6b   :  { %v3826_v56 = vpop.eup %3825 }
 0xe6c   :  { %v3828_v60 = vpop.eup %3827  ;;  %v1760_v12 = vadd.f32 1.0, %v3826_v56 }
 0xe6d   :  { %v1762_v10 = vadd.f32 1.0, %v3828_v60  ;;  %v3830_v58 = vpop.eup %3829 }
 0xe6e   :  { %3833 = vrcp.f32 %v1760_v12  ;;  %v3832_v1 = vpop.eup %3831  ;;  %v1761_v43 = vadd.f32 1.0, %v3830_v58 }
 0xe6f   :  { %3835 = vrcp.f32 %v1762_v10 }
 0xe70   :  { %3837 = vrcp.f32 %v1761_v43 }
 0xe78   :  { %v3834_v11 = vpop.eup %3833 }
 0xe79   :  { %v3836_v36 = vpop.eup %3835  ;;  %v1771_v55 = vmul.f32 %v3834_v11, %v3832_v1 }
 0xe7a   :  { %v1770_v3 = vmul.f32 %v3836_v36, %v5267_v8  ;;  %v3838_v59 = vpop.eup %3837 }
 0xe7c   :  { %v5351_v52 = vadd.f32 %v1771_v55, %v1770_v3 }
 0xe7e   :  { %3839 = vtanh.f32 %v5351_v52 }
 0xe88   :  { %v3840_v62 = vpop.eup %3839 }
 0xe89   :  { %v1774_v28 = vmul.f32 %v3840_v62, %v3838_v59 }
 0xe8b   :  { %v1782_v60 = vpack.c.bf16 %v1774_v28, %v1774_v28  ;;  %v2680_v22 = vcombine.high %v1774_v28, %v1774_v28  ;;  %v2687_v12 = vrot.slane %v1774_v28, %v4270_v51 }
 0xe8d   :  { %1816 = vmatmul.mubr.bf16.vlgmr.msra.gmra.mrb[56].mxu0 %v1782_v60  ;;  %v2694_v30 = vrot.slane %v2680_v22, %v4270_v51  ;;  %v2695_v9 = vcombine.high %v2687_v12, %v2687_v12  ;;  %v2703_v15 = vrot.slane %v2687_v12, %v4270_v51  ;;  %1857 = vmatmul.mubr.bf16.vlgmr.msra.gmra.mrb[56].mxu1 %v1782_v60 }
 0xe8e   :  { %1902 = vmatpush1.bf16.msra.mxu0 %v4969_v23  ;;  %1943 = vmatpush1.bf16.msra.mxu1 %v4972_v21 }
 0xe8f   :  { %v2696_v8 = vcombine.high %v2694_v30, %v2694_v30  ;;  %v2710_v37 = vrot.slane %v2694_v30, %v4270_v51  ;;  %v2717_v63 = vrot.slane %v2695_v9, %v4270_v51  ;;  %v2725_v17 = vcombine.high %v2703_v15, %v2703_v15  ;;  %1903 = vmatprep.subr.bf16.mxu0 %v4977_v27 }
 0xe90   :  { %v3272_v33 = vrot.slane %v2703_v15, %v4281_v35  ;;  %1944 = vmatprep.subr.bf16.mxu1 %v4981_v25  ;;  %1933 = vmatprep.mubr.bf16.mxu0 %v5557_v61 }
 0xe91   :  { %v2724_v49 = vrot.slane %v2696_v8, %v4270_v51  ;;  %v2726_v56 = vcombine.high %v2710_v37, %v2710_v37  ;;  %v2727_v23 = vcombine.high %v2717_v63, %v2717_v63  ;;  %v3276_v21 = vrot.slane %v2717_v63, %v4281_v35  ;;  %1974 = vmatprep.mubr.bf16.mxu1 %v5557_v61 }
 0xe92   :  { %v3280_v10 = vrot.slane %v2725_v17, %v4281_v35  ;;  %v3288_v58 = vrot.slane %v2710_v37, %v4281_v35  ;;  %v5372_v27 = vsel %vm3425_vm4, %v5288_v24, %v3272_v33  ;;  %1904 = vmatpush1.bf16.msra.mxu0 %v4993_v41  ;;  %1945 = vmatpush1.bf16.msra.mxu1 %v4996_v40 }
 0xe93   :  { %v2728_v25 = vcombine.high %v2724_v49, %v2724_v49  ;;  %v3284_v1 = vrot.slane %v2727_v23, %v4281_v35  ;;  %v3292_v11 = vrot.slane %v2724_v49, %v4281_v35  ;;  %v3296_v36 = vrot.slane %v2726_v56, %v4281_v35  ;;  %1905 = vmatprep.subr.bf16.mxu0 %v5002_v38 }
 0xe94   :  { %v5382_v61 = vsel %vm3425_vm4, %v5298_v46, %v3276_v21  ;;  %v5386_v24 = vsel %vm3425_vm4, %v5302_v53, %v3280_v10  ;;  %v5390_v41 = vsel %vm3425_vm4, %v5306_v48, %v3288_v58  ;;  %1946 = vmatprep.subr.bf16.mxu1 %v5014_v0 }
 0xe95   :  { %v3300_v40 = vrot.slane %v2728_v25, %v4281_v35  ;;  %v5396_v43 = vsel %vm3425_vm4, %v5312_v47, %v3284_v1  ;;  %v5400_v38 = vsel %vm3425_vm4, %v5316_v18, %v3292_v11  ;;  %v5404_v46 = vsel %vm3425_vm4, %v5320_v14, %v3296_v36 }
 0xe96   :  { %1906 = vmatpush1.bf16.msra.mxu0 %v5027_v39  ;;  %1947 = vmatpush1.bf16.msra.mxu1 %v5030_v29  ;;  %v5595_v39 = vld [vmem:[#allocation18_spill] sm:$0xff]  ;;  %v5596_v29 = vld [vmem:[#allocation19_spill] sm:$0xff] }
 0xe97   :  { %v5410_v0 = vsel %vm3425_vm4, %v5326_v45, %v3300_v40  ;;  %1907 = vmatprep.subr.bf16.mxu0 %v5036_v2  ;;  %1948 = vmatprep.subr.bf16.mxu1 %v5039_v19  ;;  %v1776_v2 = vld [vmem:[#allocation6 + $0xe0] sm:$0xff]  ;;  %v1777_v19 = vld [vmem:[#allocation6 + $0xe8] sm:$0xff] }
 0xe98   :  { %v1781_v53 = vunpack.c.h.bf16 %v1777_v19 }
 0xe9a   :  { %1908 = vmatpush1.bf16.msra.mxu0 %v5042_v54  ;;  %1949 = vmatpush1.bf16.msra.mxu1 %v5045_v7  ;;  %v1778_v54 = vunpack.c.l.bf16 %v1776_v2  ;;  %v1780_v7 = vunpack.c.l.bf16 %v1777_v19 }
 0xe9b   :  { %1909 = vmatprep.subr.bf16.mxu0 %v5048_v13  ;;  %1950 = vmatprep.subr.bf16.mxu1 %v5051_v50 }
 0xe9e   :  { %1910 = vmatpush1.bf16.msra.mxu0 %v5054_v57  ;;  %1951 = vmatpush1.bf16.msra.mxu1 %v5057_v44 }
 0xe9f   :  { %1911 = vmatprep.subr.bf16.mxu0 %v5060_v34  ;;  %1952 = vmatprep.subr.bf16.mxu1 %v5063_v42 }
 0xea2   :  { %1912 = vmatpush1.bf16.msra.mxu0 %v5066_v5  ;;  %1953 = vmatpush1.bf16.msra.mxu1 %v5069_v31 }
 0xea3   :  { %1913 = vmatprep.subr.bf16.mxu0 %v5072_v26  ;;  %1954 = vmatprep.subr.bf16.mxu1 %v5075_v4 }
 0xea6   :  { %1914 = vmatpush1.bf16.msra.mxu0 %v5078_v6  ;;  %1955 = vmatpush1.bf16.msra.mxu1 %v5081_v32 }
 0xea7   :  { %1915 = vmatprep.subr.bf16.mxu0 %v5084_v16  ;;  %1956 = vmatprep.subr.bf16.mxu1 %v5087_v20  ;;  %v1779_v16 = vunpack.c.h.bf16 %v1776_v2 }
 0xeaa   :  { %1916 = vmatpush1.bf16.msra.mxu0 %v5595_v39  ;;  %1957 = vmatpush1.bf16.msra.mxu1 %v5596_v29 }
 0xf60   :  { %v1817_v13 = vpop.f32.mrb[56].mxu0  ;;  %v1858_v50 = vpop.f32.mrb[56].mxu1 }
 0xf61   :  { %v1865_v57 = vadd.f32 %v1817_v13, %v1778_v54  ;;  %v1867_v44 = vadd.f32 %v1858_v50, %v1780_v7  ;;  %v1819_v34 = vpop.f32.mrb[57].mxu0  ;;  %v1860_v42 = vpop.f32.mrb[57].mxu1 }
 0xf62   :  { %v1821_v5 = vpop.f32.mrb[58].mxu0  ;;  %v1862_v31 = vpop.f32.mrb[58].mxu1  ;;  %v1866_v20 = vadd.f32 %v1819_v34, %v1779_v16  ;;  %v1868_v47 = vadd.f32 %v1860_v42, %v1781_v53  ;;  %v1895_v42 = vld [vmem:[#allocation6 + $0xf8] sm:$0xff] }
 0xf63   :  { %v3592_v26 = vmul.f32 -1.442695, %v1865_v57  ;;  %v3594_v4 = vmul.f32 -1.442695, %v1867_v44  ;;  %v1822_v6 = vpop.f32.mrb[59].mxu0  ;;  %v1863_v32 = vpop.f32.mrb[59].mxu1  ;;  %v1898_v31 = vunpack.c.l.bf16 %v1895_v42 }
 0xf64   :  { %v3593_v48 = vmul.f32 -1.442695, %v1866_v20 }
 0xf65   :  { %3841 = vpow2.f32 %v3592_v26 }
 0xf66   :  { %3843 = vpow2.f32 %v3594_v4 }
 0xf67   :  { %3845 = vpow2.f32 %v3593_v48 }
 0xf68   :  { %3847 = vtanh.f32 %v1868_v47 }
 0xf6f   :  { %v3842_v18 = vpop.eup %3841 }
 0xf70   :  { %v3844_v14 = vpop.eup %3843  ;;  %v1878_v45 = vadd.f32 1.0, %v3842_v18 }
 0xf71   :  { %v1880_v55 = vadd.f32 1.0, %v3844_v14  ;;  %v3846_v3 = vpop.eup %3845  ;;  %v1899_v14 = vunpack.c.h.bf16 %v1895_v42 }
 0xf72   :  { %3849 = vrcp.f32 %v1878_v45  ;;  %v3848_v59 = vpop.eup %3847  ;;  %v1879_v60 = vadd.f32 1.0, %v3846_v3 }
 0xf73   :  { %3851 = vrcp.f32 %v1880_v55 }
 0xf74   :  { %3853 = vrcp.f32 %v1879_v60 }
 0xf7c   :  { %v3850_v62 = vpop.eup %3849 }
 0xf7d   :  { %v3852_v28 = vpop.eup %3851  ;;  %v1889_v22 = vmul.f32 %v3850_v62, %v3848_v59 }
 0xf7e   :  { %v1888_v12 = vmul.f32 %v3852_v28, %v5351_v52  ;;  %v3854_v9 = vpop.eup %3853 }
 0xf80   :  { %v5433_v30 = vadd.f32 %v1889_v22, %v1888_v12 }
 0xf82   :  { %3855 = vtanh.f32 %v5433_v30 }
 0xf8c   :  { %v3856_v15 = vpop.eup %3855 }
 0xf8d   :  { %v1892_v8 = vmul.f32 %v3856_v15, %v3854_v9 }
 0xf8f   :  { %v1900_v37 = vpack.c.bf16 %v1892_v8, %v1892_v8  ;;  %v2730_v63 = vcombine.high %v1892_v8, %v1892_v8  ;;  %v2737_v17 = vrot.slane %v1892_v8, %v4270_v51 }
 0xf91   :  { %1934 = vmatmul.mubr.bf16.vlgmr.msra.gmra.mrb[60].mxu0 %v1900_v37  ;;  %v2744_v33 = vrot.slane %v2730_v63, %v4270_v51  ;;  %v2745_v49 = vcombine.high %v2737_v17, %v2737_v17  ;;  %v2753_v56 = vrot.slane %v2737_v17, %v4270_v51  ;;  %1975 = vmatmul.mubr.bf16.vlgmr.msra.gmra.mrb[60].mxu1 %v1900_v37 }
 0xf93   :  { %v2746_v52 = vcombine.high %v2744_v33, %v2744_v33  ;;  %v2760_v23 = vrot.slane %v2744_v33, %v4270_v51  ;;  %v2767_v21 = vrot.slane %v2745_v49, %v4270_v51  ;;  %v2775_v10 = vcombine.high %v2753_v56, %v2753_v56 }
 0xf94   :  { %v3312_v58 = vrot.slane %v2753_v56, %v4281_v35 }
 0xf95   :  { %v2774_v25 = vrot.slane %v2746_v52, %v4270_v51  ;;  %v2776_v1 = vcombine.high %v2760_v23, %v2760_v23  ;;  %v2777_v11 = vcombine.high %v2767_v21, %v2767_v21  ;;  %v3316_v36 = vrot.slane %v2767_v21, %v4281_v35 }
 0xf96   :  { %v3320_v40 = vrot.slane %v2775_v10, %v4281_v35  ;;  %v3328_v39 = vrot.slane %v2760_v23, %v4281_v35  ;;  %v5448_v29 = vsel %vm3434_vm5, %v5372_v27, %v3312_v58 }
 0xf97   :  { %v2778_v2 = vcombine.high %v2774_v25, %v2774_v25  ;;  %v3324_v19 = vrot.slane %v2777_v11, %v4281_v35  ;;  %v3332_v54 = vrot.slane %v2774_v25, %v4281_v35  ;;  %v3336_v7 = vrot.slane %v2776_v1, %v4281_v35 }
 0xf98   :  { %v5455_v13 = vsel %vm3434_vm5, %v5382_v61, %v3316_v36  ;;  %v5459_v50 = vsel %vm3434_vm5, %v5386_v24, %v3320_v40  ;;  %v5463_v57 = vsel %vm3434_vm5, %v5390_v41, %v3328_v39  ;;  %v1894_v41 = vld [vmem:[#allocation6 + $0xf0] sm:$0xff] }
 0xf99   :  { %v3340_v27 = vrot.slane %v2778_v2, %v4281_v35  ;;  %v5468_v44 = vsel %vm3434_vm5, %v5396_v43, %v3324_v19  ;;  %v5472_v34 = vsel %vm3434_vm5, %v5400_v38, %v3332_v54  ;;  %v5476_v61 = vsel %vm3434_vm5, %v5404_v46, %v3336_v7 }
 0xf9a   :  { %v1896_v5 = vunpack.c.l.bf16 %v1894_v41  ;;  %v1897_v18 = vunpack.c.h.bf16 %v1894_v41 }
 0xf9b   :  { %v5480_v24 = vsel %vm3434_vm5, %v5410_v0, %v3340_v27 }
0x1064   :  { %v1935_v26 = vpop.f32.mrb[60].mxu0  ;;  %v1976_v4 = vpop.f32.mrb[60].mxu1 }
0x1065   :  { %v1983_v43 = vadd.f32 %v1935_v26, %v1896_v5  ;;  %v1985_v6 = vadd.f32 %v1976_v4, %v1898_v31  ;;  %v1937_v32 = vpop.f32.mrb[61].mxu0  ;;  %v1978_v16 = vpop.f32.mrb[61].mxu1 }
0x1066   :  { %v1939_v38 = vpop.f32.mrb[62].mxu0  ;;  %v1980_v20 = vpop.f32.mrb[62].mxu1  ;;  %v1984_v0 = vadd.f32 %v1937_v32, %v1897_v18  ;;  %v1986_v55 = vadd.f32 %v1978_v16, %v1899_v14 }
0x1067   :  { %v3595_v53 = vmul.f32 -1.442695, %v1983_v43  ;;  %v3597_v48 = vmul.f32 -1.442695, %v1985_v6  ;;  %v1940_v46 = vpop.f32.mrb[63].mxu0  ;;  %v1981_v47 = vpop.f32.mrb[63].mxu1 }
0x1068   :  { %v3596_v45 = vmul.f32 -1.442695, %v1984_v0 }
0x1069   :  { %3857 = vpow2.f32 %v3595_v53 }
0x106a   :  { %3859 = vpow2.f32 %v3597_v48 }
0x106b   :  { %3861 = vpow2.f32 %v3596_v45 }
0x106c   :  { %3863 = vtanh.f32 %v1986_v55 }
0x1073   :  { %v3858_v3 = vpop.eup %3857 }
0x1074   :  { %v3860_v59 = vpop.eup %3859  ;;  %v1996_v62 = vadd.f32 1.0, %v3858_v3 }
0x1075   :  { %v1998_v28 = vadd.f32 1.0, %v3860_v59  ;;  %v3862_v60 = vpop.eup %3861 }
0x1076   :  { %3865 = vrcp.f32 %v1996_v62  ;;  %v3864_v22 = vpop.eup %3863  ;;  %v1997_v15 = vadd.f32 1.0, %v3862_v60 }
0x1077   :  { %3867 = vrcp.f32 %v1998_v28 }
0x1078   :  { %3869 = vrcp.f32 %v1997_v15 }
0x1080   :  { %v3866_v12 = vpop.eup %3865 }
0x1081   :  { %v3868_v9 = vpop.eup %3867  ;;  %v2007_v8 = vmul.f32 %v3866_v12, %v3864_v22 }
0x1082   :  { %v2006_v37 = vmul.f32 %v3868_v9, %v5433_v30  ;;  %v3870_v17 = vpop.eup %3869 }
0x1084   :  { %v2008_v63 = vadd.f32 %v2007_v8, %v2006_v37 }
0x1086   :  { %3871 = vtanh.f32 %v2008_v63 }
0x1090   :  { %v3872_v33 = vpop.eup %3871 }
0x1091   :  { %v2010_v49 = vmul.f32 %v3872_v33, %v3870_v17 }
0x1093   :  { %v2780_v56 = vcombine.high %v2010_v49, %v2010_v49  ;;  %v2787_v52 = vrot.slane %v2010_v49, %v4270_v51 }
0x1095   :  { %v2794_v23 = vrot.slane %v2780_v56, %v4270_v51  ;;  %v2795_v21 = vcombine.high %v2787_v52, %v2787_v52  ;;  %v2803_v10 = vrot.slane %v2787_v52, %v4270_v51 }
0x1097   :  { %v2796_v58 = vcombine.high %v2794_v23, %v2794_v23  ;;  %v2810_v25 = vrot.slane %v2794_v23, %v4270_v51  ;;  %v2817_v1 = vrot.slane %v2795_v21, %v4270_v51  ;;  %v2825_v30 = vcombine.high %v2803_v10, %v2803_v10 }
0x1098   :  { %v3352_v11 = vrot.slane %v2803_v10, %v4281_v35 }
0x1099   :  { %v2824_v36 = vrot.slane %v2796_v58, %v4270_v51  ;;  %v2826_v40 = vcombine.high %v2810_v25, %v2810_v25  ;;  %v2827_v39 = vcombine.high %v2817_v1, %v2817_v1  ;;  %v3356_v2 = vrot.slane %v2817_v1, %v4281_v35 }
0x109a   :  { %v3360_v19 = vrot.slane %v2825_v30, %v4281_v35  ;;  %v3368_v54 = vrot.slane %v2810_v25, %v4281_v35  ;;  %v3500_v7 = vsel %vm3443_vm6, %v5448_v29, %v3352_v11 }
0x109b   :  { %v2828_v27 = vcombine.high %v2824_v36, %v2824_v36  ;;  %v3364_v41 = vrot.slane %v2827_v39, %v4281_v35  ;;  %v3372_v42 = vrot.slane %v2824_v36, %v4281_v35  ;;  %v3376_v5 = vrot.slane %v2826_v40, %v4281_v35  ;;  %3509 = vst [vmem:[#allocation11 + $0x8] sm:$0xff] %v3500_v7 }
0x109c   :  { %v3501_v51 = vsel %vm3443_vm6, %v5455_v13, %v3356_v2  ;;  %v3502_v31 = vsel %vm3443_vm6, %v5459_v50, %v3360_v19  ;;  %v3504_v26 = vsel %vm3443_vm6, %v5463_v57, %v3368_v54 }
0x109d   :  { %v3380_v29 = vrot.slane %v2828_v27, %v4281_v35  ;;  %v3503_v4 = vsel %vm3443_vm6, %v5468_v44, %v3364_v41  ;;  %v3505_v43 = vsel %vm3443_vm6, %v5472_v34, %v3372_v42  ;;  %v3506_v6 = vsel %vm3443_vm6, %v5476_v61, %v3376_v5  ;;  %3511 = vst [vmem:[#allocation11 + $0x18] sm:$0xff] %v3501_v51 }
0x109e   :  { %3513 = vst [vmem:[#allocation11 + $0x28] sm:$0xff] %v3502_v31  ;;  %3517 = vst [vmem:[#allocation11 + $0x48] sm:$0xff] %v3504_v26 }
0x109f   :  { %3515 = vst [vmem:[#allocation11 + $0x38] sm:$0xff] %v3503_v4  ;;  %3519 = vst [vmem:[#allocation11 + $0x58] sm:$0xff] %v3505_v43  ;;  %v3507_v13 = vsel %vm3443_vm6, %v5480_v24, %v3380_v29 }
0x10a0   :  { %3521 = vst [vmem:[#allocation11 + $0x68] sm:$0xff] %v3506_v6  ;;  %3523 = vst [vmem:[#allocation11 + $0x78] sm:$0xff] %v3507_v13 }
0x10a1   :  { %3992 = shalt.err (!%p3989_p6)
}
0x10a2   :  { %s3993_s7 = scalar_lea.hbm %s5529_s4, 2048 }
0x10a3   :  { %p3994_p7 = scmp.ne.s32.totalorder %s5529_s4, %s3993_s7  ;;  %p3997_p8 = scmp.lt.u32.totalorder %s3993_s7, %s5529_s4 }
0x10a5   :  { %p3999_p9 = pnand %p3997_p8, %p3994_p7 }
0x10a7   :  { %4002 = shalt.err (!%p3999_p9)
}
0x10a8   :  { %s4027_s12 = smov 128   ;;  %s4028_s0 = smov 8  }
0x10a9   :  { %3535 = dma.vmem_to_hbm [thread:$0]  %s3530_s29, 2048, %s5529_s4, [#allocation8], %s4027_s12, %s4027_s12, %s4028_s0  }
0x10aa   :  { %4009 = dma.done.wait [#allocation8], 2048  }
0x10ab   :  { %4010 = vsyncadd [#allocation8], 4294965248 }
0x10ac   :  { %3539 = vsyncpa [#allocation7], 1 }
0x10ad   :  { %3540 = vsyncpa [#allocation10], 1 }
0x10ae   :  { %3541 = vsyncpa [#allocation8], 1 }
0x10af   :  { %3542 = vsyncmov [#allocation5] }
0x10b2   :  { %s3543_s15 = vpop.sfrf %3542 }
0x10b3   :  { %p3598_p10 = scmp.ne.s32.totalorder %s3543_s15, 0 }
0x10b5   :  { %3547 = shalt.err (%p3598_p10)  }

</bundles_post_ra>
